<compile_context>
chip_gen: v7x
topology: tpu7x:2x2x1
jax: 0.10.0
libtpu: 0.0.40
codegen_flags: <defaults>
</compile_context>

<pallas_src>
import functools
from math import ceil, log

import jax
import jax.numpy as jnp
from jax.experimental import pallas as pl
from jax.experimental.pallas import tpu as pltpu

_EPS = 1e-5
_VMEM_LIMIT = 64 * 2**20      # safe scoped limit on v5e/v6e/v7x


# ---------------------------------------------------------------------------
# Trace-time helpers / tiny per-sample glue.
# ---------------------------------------------------------------------------
def _doda_sizes(channel, n=2, b=2):
    ks = int(abs((log(channel, 2) + 1) / 2))
    ks = ks if ks % 2 else ks + 1
    layer_size = ceil(1 + (log(channel, 2) - b) / (2 * n))
    return ks, layer_size


def _fold_bn(w, gamma, beta, mean, var):
    """Fold eval-mode BN into a bias-free 1x1 conv, (Cout, Cin) orientation."""
    s = gamma / jnp.sqrt(var + _EPS)
    w_f = (w * s[:, None]).astype(jnp.float32)       # (Cout, Cin)
    bias = (beta - mean * s).astype(jnp.float32)     # (Cout,)
    return w_f, bias


def _doda_vec(v, w, n_apply):
    """DODA on a pooled (B, C) descriptor: v + sigmoid(conv1d^n(v) over channels)."""
    k = w.shape[0]
    pad = k // 2
    c = v.shape[-1]
    h = v
    for _ in range(n_apply):
        hp = jnp.pad(h, ((0, 0), (pad, pad)))
        h = sum(w[j] * hp[:, j:j + c] for j in range(k))
    return v + jax.nn.sigmoid(h)


def _layer_norm(x, gamma, beta):
    mu = x.mean(axis=-1, keepdims=True)
    var = x.var(axis=-1, keepdims=True)
    return (x - mu) * jax.lax.rsqrt(var + _EPS) * gamma + beta


# ---------------------------------------------------------------------------
# Kernel 1: stream E once -> conv_1 attention logits + conv_3 spatial mean.
# ---------------------------------------------------------------------------
def _e_stream_kernel(e_ref, w13a_ref, b13a_ref, w1b_ref, b1b_ref,
                     w3b_ref, b3b_ref, logit_ref, pool_ref, acc_ref,
                     *, ci, inv_hw):
    t = pl.program_id(1)

    @pl.when(t == 0)
    def _():
        acc_ref[...] = jnp.zeros_like(acc_ref)

    x = e_ref[0]                                            # (Cin, T) native dtype
    # Fused first stage of conv_1|conv_3: a single (2Ci,Cin)@(Cin,T) MXU pass.
    h = jnp.dot(w13a_ref[...], x, preferred_element_type=jnp.float32)
    h = jnp.maximum(h + b13a_ref[...], 0.0)                 # (2Ci, T) f32

    # conv_1 second stage (Ci -> 1): VPU mul + sublane reduce; lane-dense store.
    logit = jnp.sum(h[:ci] * w1b_ref[...], axis=0, keepdims=True) + b1b_ref[...]
    logit_ref[0] = jnp.maximum(logit, 0.0)                  # (1, T)

    # conv_3 second stage (Ci -> Ci) + running spatial sum (global avg pool).
    e3 = jnp.dot(w3b_ref[...], h[ci:].astype(x.dtype),
                 preferred_element_type=jnp.float32)
    e3 = jnp.maximum(e3 + b3b_ref[...], 0.0)                # (Ci, T)
    acc_ref[...] += jnp.sum(e3, axis=1, keepdims=True)      # (Ci, 1)

    @pl.when(t == pl.num_programs(1) - 1)
    def _():
        pool_ref[0] = acc_ref[...] * inv_hw


# ---------------------------------------------------------------------------
# Kernel 2: stream D once -> channel context (B, Ci) + spatial context (B, HW).
# ---------------------------------------------------------------------------
def _d_stream_kernel(attn_ref, ws_ref, d_ref, w24a_ref, b24a_ref,
                     w2b_ref, b2b_ref, w4b_ref, b4b_ref,
                     ctxs_ref, ctxc_ref, acc_ref, *, ci):
    t = pl.program_id(1)

    @pl.when(t == 0)
    def _():
        acc_ref[...] = jnp.zeros_like(acc_ref)

    x = d_ref[0]                                            # (Cin, T)
    # Fused first stage of conv_2|conv_4.
    h = jnp.dot(w24a_ref[...], x, preferred_element_type=jnp.float32)
    h = jnp.maximum(h + b24a_ref[...], 0.0)                 # (2Ci, T)

    # conv_2 features weighted by the softmaxed spatial attention -> ctx_c.
    f2 = jnp.maximum(
        jnp.dot(w2b_ref[...], h[:ci].astype(x.dtype),
                preferred_element_type=jnp.float32) + b2b_ref[...], 0.0)
    acc_ref[...] += jnp.sum(f2 * attn_ref[0], axis=1, keepdims=True)   # (Ci, 1)

    # conv_4 features weighted over channels -> ctx_s tile (lane dense).
    f4 = jnp.maximum(
        jnp.dot(w4b_ref[...], h[ci:].astype(x.dtype),
                preferred_element_type=jnp.float32) + b4b_ref[...], 0.0)
    ctxs_ref[0] = jnp.sum(f4 * ws_ref[0], axis=0, keepdims=True)       # (1, T)

    @pl.when(t == pl.num_programs(1) - 1)
    def _():
        ctxc_ref[0] = acc_ref[...]


# ---------------------------------------------------------------------------
# Kernel 3: per-batch gating combine + 3x3 conv as ONE im2col matmul (K=9*Cin)
#           + folded BN/bias + ReLU.  Output stays in NCHW ((Cout, HW) block).
# ---------------------------------------------------------------------------
def _fuse_conv_out_kernel(e_ref, d_ref, gc_ref, gs_ref, mask_ref, w_ref, b_ref,
                          o_ref, xpad_ref, col_ref, *, hw, w_img, cin):
    pad = w_img + 1
    # Zero only the halo strips (one flat row + one pixel each side); the
    # interior is fully overwritten every grid step.
    xpad_ref[:, pl.ds(0, pad)] = jnp.zeros((cin, pad), xpad_ref.dtype)
    xpad_ref[:, pl.ds(pad + hw, pad)] = jnp.zeros((cin, pad), xpad_ref.dtype)

    e = e_ref[0].astype(jnp.float32)                        # (Cin, HW)
    d = d_ref[0].astype(jnp.float32)
    # out_c + out_s  =  D*gate_c + E*(2 + gate_s)
    x = d * gc_ref[0] + e * (2.0 + gs_ref[0])
    xpad_ref[:, pl.ds(pad, hw)] = x.astype(xpad_ref.dtype)

    # im2col: 9 shifted taps stacked along the contraction dim (K = 9*Cin).
    # Vertical out-of-range taps read the zero halo; horizontal row wrap is
    # removed by the precomputed left/right column masks.
    for ky in range(3):
        for kx in range(3):
            xs = xpad_ref[:, pl.ds(ky * w_img + kx, hw)]    # (Cin, HW)
            if kx == 0:
                xs = xs * mask_ref[0:1, :]
            elif kx == 2:
                xs = xs * mask_ref[1:2, :]
            col_ref[pl.ds((ky * 3 + kx) * cin, cin), :] = xs

    acc = jnp.dot(w_ref[...], col_ref[...], preferred_element_type=jnp.float32)
    o_ref[0] = jnp.maximum(acc + b_ref[...], 0.0).astype(o_ref.dtype)   # (Cout, HW)


# ---------------------------------------------------------------------------
# Wrapper: full IPOF forward (inputs / output in NCHW, any float dtype;
# bf16 inputs recommended — they are streamed as-is to the MXU).
# ---------------------------------------------------------------------------
def ipof_forward(E, D, p, *, tile_hw=None):
    B, Cin, H, W = E.shape
    assert D.shape == E.shape and D.dtype == E.dtype
    Ci = Cin // 2
    HW = H * W
    Cout = p["wo"].shape[0]
    n_apply = p["n_doda"]
    sdt = E.dtype                                    # streamed / MXU operand dtype

    if tile_hw is None:
        cand = [t for t in (2048, 1024, 512, 256, 128) if HW % t == 0]
        tile_hw = cand[0] if cand else HW
    assert HW % tile_hw == 0
    nt = HW // tile_hw

    # NCHW kept as-is: H*W flattened into lanes (free reshape, no HBM copy).
    e_cl = E.reshape(B, Cin, HW)
    d_cl = D.reshape(B, Cin, HW)

    # Fold eval-mode BN into bias-free 1x1 convs (weight-stationary layout).
    w1a, b1a = _fold_bn(p["w1a"], *p["bn1a"])
    w1b, b1b = _fold_bn(p["w1b"], *p["bn1b"])
    w2a, b2a = _fold_bn(p["w2a"], *p["bn2a"])
    w2b, b2b = _fold_bn(p["w2b"], *p["bn2b"])
    w3a, b3a = _fold_bn(p["w3a"], *p["bn3a"])
    w3b, b3b = _fold_bn(p["w3b"], *p["bn3b"])
    w4a, b4a = _fold_bn(p["w4a"], *p["bn4a"])
    w4b, b4b = _fold_bn(p["w4b"], *p["bn4b"])

    # Concatenate first-stage weights -> one Cin->2Ci matmul per streamed tile.
    w13a = jnp.concatenate([w1a, w3a], axis=0).astype(sdt)     # (2Ci, Cin)
    b13a = jnp.concatenate([b1a, b3a]).reshape(2 * Ci, 1)
    w24a = jnp.concatenate([w2a, w4a], axis=0).astype(sdt)
    b24a = jnp.concatenate([b2a, b4a]).reshape(2 * Ci, 1)
    w1b_c = w1b.reshape(Ci, 1)                                  # f32 (VPU path)
    b1b_c = b1b.reshape(1, 1)
    w3b_s, b3b_c = w3b.astype(sdt), b3b.reshape(Ci, 1)
    w2b_s, b2b_c = w2b.astype(sdt), b2b.reshape(Ci, 1)
    w4b_s, b4b_c = w4b.astype(sdt), b4b.reshape(Ci, 1)

    wmap2 = lambda b, t: (0, 0)
    cparams = pltpu.CompilerParams(
        dimension_semantics=("parallel", "arbitrary"),
        vmem_limit_bytes=_VMEM_LIMIT)

    # ---- K1: stream E once ----
    logits, pool3 = pl.pallas_call(
        functools.partial(_e_stream_kernel, ci=Ci, inv_hw=1.0 / float(HW)),
        out_shape=(jax.ShapeDtypeStruct((B, 1, HW), jnp.float32),
                   jax.ShapeDtypeStruct((B, Ci, 1), jnp.float32)),
        grid_spec=pltpu.PrefetchScalarGridSpec(
            num_scalar_prefetch=0,
            grid=(B, nt),
            in_specs=[
                pl.BlockSpec((1, Cin, tile_hw), lambda b, t: (b, 0, t)),
                pl.BlockSpec((2 * Ci, Cin), wmap2),
                pl.BlockSpec((2 * Ci, 1), wmap2),
                pl.BlockSpec((Ci, 1), wmap2),
                pl.BlockSpec((1, 1), wmap2),
                pl.BlockSpec((Ci, Ci), wmap2),
                pl.BlockSpec((Ci, 1), wmap2),
            ],
            out_specs=[pl.BlockSpec((1, 1, tile_hw), lambda b, t: (b, 0, t)),
                       pl.BlockSpec((1, Ci, 1), lambda b, t: (b, 0, 0))],
            scratch_shapes=[pltpu.VMEM((Ci, 1), jnp.float32)],
        ),
        compiler_params=cparams,
    )(e_cl, w13a, b13a, w1b_c, b1b_c, w3b_s, b3b_c)

    attn = jax.nn.softmax(logits, axis=-1)                              # (B, 1, HW)
    ws = jax.nn.softmax(_doda_vec(pool3[:, :, 0], p["wd"], n_apply), axis=-1)
    ws3 = ws[:, :, None].astype(jnp.float32)                            # (B, Ci, 1)

    # ---- K2: stream D once ----
    ctx_s3, ctxc3 = pl.pallas_call(
        functools.partial(_d_stream_kernel, ci=Ci),
        out_shape=(jax.ShapeDtypeStruct((B, 1, HW), jnp.float32),
                   jax.ShapeDtypeStruct((B, Ci, 1), jnp.float32)),
        grid_spec=pltpu.PrefetchScalarGridSpec(
            num_scalar_prefetch=0,
            grid=(B, nt),
            in_specs=[
                pl.BlockSpec((1, 1, tile_hw), lambda b, t: (b, 0, t)),    # attn
                pl.BlockSpec((1, Ci, 1), lambda b, t: (b, 0, 0)),         # ws
                pl.BlockSpec((1, Cin, tile_hw), lambda b, t: (b, 0, t)),  # D
                pl.BlockSpec((2 * Ci, Cin), wmap2),
                pl.BlockSpec((2 * Ci, 1), wmap2),
                pl.BlockSpec((Ci, Ci), wmap2),
                pl.BlockSpec((Ci, 1), wmap2),
                pl.BlockSpec((Ci, Ci), wmap2),
                pl.BlockSpec((Ci, 1), wmap2),
            ],
            out_specs=[pl.BlockSpec((1, 1, tile_hw), lambda b, t: (b, 0, t)),
                       pl.BlockSpec((1, Ci, 1), lambda b, t: (b, 0, 0))],
            scratch_shapes=[pltpu.VMEM((Ci, 1), jnp.float32)],
        ),
        compiler_params=cparams,
    )(attn, ws3, d_cl, w24a, b24a, w2b_s, b2b_c, w4b_s, b4b_c)

    # channel gate: sigmoid(conv_up(DODA(ctx_c)))
    v = _doda_vec(ctxc3[:, :, 0], p["wd"], n_apply)
    y1 = v @ p["wu1"].T + p["bu1"]
    y1 = jax.nn.relu(_layer_norm(y1, p["ln1_g"], p["ln1_b"]))
    y2 = y1 @ p["wu2"].T + p["bu2"]
    gate_c = jax.nn.sigmoid(_layer_norm(y2, p["ln2_g"], p["ln2_b"]))    # (B, Cin)

    # spatial gate: sigmoid(layer_norm over H*W, no affine)
    mu = ctx_s3.mean(axis=-1, keepdims=True)
    var = ctx_s3.var(axis=-1, keepdims=True)
    gate_s = jax.nn.sigmoid((ctx_s3 - mu) * jax.lax.rsqrt(var + _EPS))  # (B, 1, HW)

    # ---- K3: combine + 3x3 conv (single im2col matmul) + folded BN + ReLU ----
    s_o = p["bno"][0] / jnp.sqrt(p["bno"][3] + _EPS)
    wo_f = p["wo"] * s_o[:, None, None, None]                           # (Cout,Cin,3,3)
    wo_k = jnp.transpose(wo_f, (0, 2, 3, 1)).reshape(Cout, 9 * Cin)
    wo_k = wo_k.astype(jnp.float32)                                     # (Cout, 9Cin)
    bo_c = (s_o * p["bo"] + p["bno"][1] - p["bno"][2] * s_o)
    bo_c = bo_c.reshape(Cout, 1).astype(jnp.float32)
    gc_r = gate_c[:, :, None].astype(jnp.float32)                       # (B, Cin, 1)
    gs_r = gate_s.astype(jnp.float32)                                   # (B, 1, HW)
    pos = jnp.arange(HW, dtype=jnp.int32) % W
    masks = jnp.stack([pos != 0, pos != W - 1]).astype(jnp.float32)     # (2, HW)

    out_flat = pl.pallas_call(
        functools.partial(_fuse_conv_out_kernel, hw=HW, w_img=W, cin=Cin),
        out_shape=jax.ShapeDtypeStruct((B, Cout, HW), jnp.float32),
        grid_spec=pltpu.PrefetchScalarGridSpec(
            num_scalar_prefetch=0,
            grid=(B,),
            in_specs=[
                pl.BlockSpec((1, Cin, HW), lambda b: (b, 0, 0)),
                pl.BlockSpec((1, Cin, HW), lambda b: (b, 0, 0)),
                pl.BlockSpec((1, Cin, 1), lambda b: (b, 0, 0)),
                pl.BlockSpec((1, 1, HW), lambda b: (b, 0, 0)),
                pl.BlockSpec((2, HW), lambda b: (0, 0)),
                pl.BlockSpec((Cout, 9 * Cin), lambda b: (0, 0)),
                pl.BlockSpec((Cout, 1), lambda b: (0, 0)),
            ],
            out_specs=pl.BlockSpec((1, Cout, HW), lambda b: (b, 0, 0)),
            scratch_shapes=[pltpu.VMEM((Cin, HW + 2 * W + 2), jnp.float32),
                            pltpu.VMEM((9 * Cin, HW), jnp.float32)],
        ),
        compiler_params=pltpu.CompilerParams(
            dimension_semantics=("parallel",),
            vmem_limit_bytes=_VMEM_LIMIT),
    )(e_cl, d_cl, gc_r, gs_r, masks, wo_k, bo_c)

    return out_flat.reshape(B, Cout, H, W)                              # NCHW, no transpose


# ---------------------------------------------------------------------------
# Deterministic parameter construction and plain-JAX reference.
# ---------------------------------------------------------------------------
def init_params(key, in_channel, out_channel):
    ci = in_channel // 2
    ciq = ci // 4
    ks, layer_size = _doda_sizes(ci)
    keys = iter(jax.random.split(key, 32))

    def conv_w(k, cout, cin, kh=1, kw=1):
        fan_in = cin * kh * kw
        w = jax.random.normal(k, (cout, cin, kh, kw), jnp.float32) * jnp.sqrt(2.0 / fan_in)
        return w[:, :, 0, 0] if kh == kw == 1 else w

    def bn_p(k, c):
        k1, k2, k3, k4 = jax.random.split(k, 4)
        return (1.0 + 0.1 * jax.random.normal(k1, (c,), jnp.float32),
                0.1 * jax.random.normal(k2, (c,), jnp.float32),
                0.1 * jax.random.normal(k3, (c,), jnp.float32),
                jax.random.uniform(k4, (c,), jnp.float32, 0.5, 1.5))

    return {
        "w1a": conv_w(next(keys), ci, in_channel), "bn1a": bn_p(next(keys), ci),
        "w1b": conv_w(next(keys), 1, ci),          "bn1b": bn_p(next(keys), 1),
        "w2a": conv_w(next(keys), ci, in_channel), "bn2a": bn_p(next(keys), ci),
        "w2b": conv_w(next(keys), ci, ci),         "bn2b": bn_p(next(keys), ci),
        "w3a": conv_w(next(keys), ci, in_channel), "bn3a": bn_p(next(keys), ci),
        "w3b": conv_w(next(keys), ci, ci),         "bn3b": bn_p(next(keys), ci),
        "w4a": conv_w(next(keys), ci, in_channel), "bn4a": bn_p(next(keys), ci),
        "w4b": conv_w(next(keys), ci, ci),         "bn4b": bn_p(next(keys), ci),
        "wu1": conv_w(next(keys), ciq, ci),
        "bu1": 0.1 * jax.random.normal(next(keys), (ciq,), jnp.float32),
        "ln1_g": 1.0 + 0.1 * jax.random.normal(next(keys), (ciq,), jnp.float32),
        "ln1_b": 0.1 * jax.random.normal(next(keys), (ciq,), jnp.float32),
        "wu2": conv_w(next(keys), in_channel, ciq),
        "bu2": 0.1 * jax.random.normal(next(keys), (in_channel,), jnp.float32),
        "ln2_g": 1.0 + 0.1 * jax.random.normal(next(keys), (in_channel,), jnp.float32),
        "ln2_b": 0.1 * jax.random.normal(next(keys), (in_channel,), jnp.float32),
        "wd": jax.random.normal(next(keys), (ks,), jnp.float32) / float(ks),
        "n_doda": layer_size + 1,
        "wo": conv_w(next(keys), out_channel, in_channel, 3, 3),
        "bo": 0.1 * jax.random.normal(next(keys), (out_channel,), jnp.float32),
        "bno": bn_p(next(keys), out_channel),
    }


def _reference_ipof(E, D, p):
    B, Cin, H, W = E.shape
    Ci = Cin // 2
    HW = H * W
    hi = jax.lax.Precision.HIGHEST

    def bn(x, prm):
        g, b, m, v = prm
        s = g / jnp.sqrt(v + _EPS)
        return x * s[None, :, None, None] + (b - m * s)[None, :, None, None]

    def conv1x1(x, w):
        return jnp.einsum("bchw,oc->bohw", x, w, precision=hi)

    def two_stage(x, wa, bna, wb, bnb):
        h = jax.nn.relu(bn(conv1x1(x, wa), bna))
        return jax.nn.relu(bn(conv1x1(h, wb), bnb))

    pad = p["wd"].shape[0] // 2

    def doda(x4):  # (B, C, 1, 1)
        h = x4[:, :, 0, 0][:, None, :]
        for _ in range(p["n_doda"]):
            h = jax.lax.conv_general_dilated(
                h, p["wd"][None, None, :], (1,), ((pad, pad),),
                dimension_numbers=("NCH", "OIH", "NCH"), precision=hi)
        return x4 + jax.nn.sigmoid(h[:, 0, :])[:, :, None, None]

    # channel branch
    D_ = two_stage(D, p["w2a"], p["bn2a"], p["w2b"], p["bn2b"]).reshape(B, Ci, HW)
    E1 = jax.nn.softmax(
        two_stage(E, p["w1a"], p["bn1a"], p["w1b"], p["bn1b"]).reshape(B, 1, HW), axis=2)
    context = doda(jnp.einsum("bch,bkh->bck", D_, E1, precision=hi)[..., None])
    v = context[:, :, 0, 0]
    y1 = jax.nn.relu(_layer_norm(jnp.einsum("bc,oc->bo", v, p["wu1"], precision=hi)
                                 + p["bu1"], p["ln1_g"], p["ln1_b"]))
    y2 = _layer_norm(jnp.einsum("bc,oc->bo", y1, p["wu2"], precision=hi) + p["bu2"],
                     p["ln2_g"], p["ln2_b"])
    out_c = D * jax.nn.sigmoid(y2)[:, :, None, None] + E

    # spatial branch
    E3 = two_stage(E, p["w3a"], p["bn3a"], p["w3b"], p["bn3b"])
    p3 = jnp.mean(E3, axis=(2, 3), keepdims=True)
    ws = jax.nn.softmax(doda(p3)[:, :, 0, 0], axis=1)
    D4 = two_stage(D, p["w4a"], p["bn4a"], p["w4b"], p["bn4b"]).reshape(B, Ci, HW)
    ctx = jnp.einsum("bc,bch->bh", ws, D4, precision=hi).reshape(B, 1, H, W)
    mu = ctx.mean(axis=(1, 2, 3), keepdims=True)
    var = ctx.var(axis=(1, 2, 3), keepdims=True)
    out_s = E * jax.nn.sigmoid((ctx - mu) * jax.lax.rsqrt(var + _EPS)) + E

    # out head
    S = out_c + out_s
    conv = jax.lax.conv_general_dilated(
        S, p["wo"], (1, 1), ((1, 1), (1, 1)),
        dimension_numbers=("NCHW", "OIHW", "NCHW"), precision=hi)
    conv = conv + p["bo"][None, :, None, None]
    return jax.nn.relu(bn(conv, p["bno"]))


if __name__ == "__main__":
    B, Cin, Cout, H, W = 2, 32, 32, 16, 16
    key = jax.random.PRNGKey(0)
    k_e, k_d, k_p = jax.random.split(key, 3)
    E = jax.random.normal(k_e, (B, Cin, H, W), jnp.float32)
    D = jax.random.normal(k_d, (B, Cin, H, W), jnp.float32)
    params = init_params(k_p, Cin, Cout)

    # Activations live in bf16 (their native streaming dtype for the kernels).
    E_bf = E.astype(jnp.bfloat16)
    D_bf = D.astype(jnp.bfloat16)

    fwd = jax.jit(lambda e, d: ipof_forward(e, d, params, tile_hw=128))
    out = jax.block_until_ready(fwd(E_bf, D_bf))

    # Reference on the same (bf16-rounded) inputs, f32 HIGHEST precision math;
    # tolerance covers the bf16 MXU-operand streaming in the kernels.
    ref = _reference_ipof(E_bf.astype(jnp.float32), D_bf.astype(jnp.float32), params)
    assert out.shape == (B, Cout, H, W), out.shape
    err = float(jnp.max(jnp.abs(out - ref)))
    assert jnp.allclose(out, ref, atol=5e-2, rtol=5e-2), f"max abs err {err}"
    print("KERNEL_OK")
</pallas_src>

<mosaic_0001>
module attributes {stable_mosaic.version = 11 : i64} {
  func.func @_e_stream_kernel(%arg0: i32, %arg1: i32, %arg2: memref<1x32x128xbf16, #tpu.memory_space<vmem>>, %arg3: memref<32x32xbf16, #tpu.memory_space<vmem>>, %arg4: memref<32x1xf32, #tpu.memory_space<vmem>>, %arg5: memref<16x1xf32, #tpu.memory_space<vmem>>, %arg6: memref<1x1xf32, #tpu.memory_space<vmem>>, %arg7: memref<16x16xbf16, #tpu.memory_space<vmem>>, %arg8: memref<16x1xf32, #tpu.memory_space<vmem>>, %arg9: memref<1x1x128xf32, #tpu.memory_space<vmem>>, %arg10: memref<1x16x1xf32, #tpu.memory_space<vmem>>, %arg11: memref<16x1xf32, #tpu.memory_space<vmem>>) attributes {dimension_semantics = [#tpu.dimension_semantics<parallel>, #tpu.dimension_semantics<arbitrary>], iteration_bounds = array<i64: 2, 2>, scalar_prefetch = 0 : i64, scratch_operands = 1 : i64, tpu.core_type = #tpu.core_type<tc>, window_params = [{transform_indices = @transform_0, window_bounds = array<i64: 1, 32, 128>}, {pipeline_mode = #tpu.pipeline_mode<synchronous>, transform_indices = @transform_1, window_bounds = array<i64: 32, 32>}, {pipeline_mode = #tpu.pipeline_mode<synchronous>, transform_indices = @transform_2, window_bounds = array<i64: 32, 1>}, {pipeline_mode = #tpu.pipeline_mode<synchronous>, transform_indices = @transform_3, window_bounds = array<i64: 16, 1>}, {pipeline_mode = #tpu.pipeline_mode<synchronous>, transform_indices = @transform_4, window_bounds = array<i64: 1, 1>}, {pipeline_mode = #tpu.pipeline_mode<synchronous>, transform_indices = @transform_5, window_bounds = array<i64: 16, 16>}, {pipeline_mode = #tpu.pipeline_mode<synchronous>, transform_indices = @transform_6, window_bounds = array<i64: 16, 1>}, {transform_indices = @transform_7, window_bounds = array<i64: 1, 1, 128>}, {transform_indices = @transform_8, window_bounds = array<i64: 1, 16, 1>}]} {
    %c0_i32 = arith.constant 0 : i32
    %0 = arith.cmpi eq, %arg1, %c0_i32 : i32
    %1 = arith.extui %0 : i1 to i32
    %c0_i32_0 = arith.constant 0 : i32
    %2 = arith.cmpi ne, %1, %c0_i32_0 : i32
    scf.if %2 {
      %cst_29 = arith.constant 0.000000e+00 : f32
      %43 = vector.broadcast %cst_29 : f32 to vector<16x1xf32>
      %c0_30 = arith.constant 0 : index
      %c0_31 = arith.constant 0 : index
      %44 = vector.load %arg11[%c0_30, %c0_31] : memref<16x1xf32, #tpu.memory_space<vmem>>, vector<16x1xf32>
      tpu.vector_store %arg11[%c0_30, %c0_31], %43 {strides = array<i32>} : memref<16x1xf32, #tpu.memory_space<vmem>>, vector<16x1xf32>,
    } else {
    }
    %c0 = arith.constant 0 : index
    %c0_1 = arith.constant 0 : index
    %c0_2 = arith.constant 0 : index
    %3 = vector.load %arg2[%c0, %c0_1, %c0_2] : memref<1x32x128xbf16, #tpu.memory_space<vmem>>, vector<1x32x128xbf16>
    %4 = vector.shape_cast %3 : vector<1x32x128xbf16> to vector<32x128xbf16>
    %c0_3 = arith.constant 0 : index
    %c0_4 = arith.constant 0 : index
    %5 = vector.load %arg3[%c0_3, %c0_4] : memref<32x32xbf16, #tpu.memory_space<vmem>>, vector<32x32xbf16>
    %cst = arith.constant dense<0.000000e+00> : vector<32x128xf32>
    %6 = tpu.matmul %5, %4, %cst {dimension_numbers = #tpu.dot_dimension_numbers<[1], [0], [0], [1], [0, 0, 1, 1], [], []>} : vector<32x32xbf16>, vector<32x128xbf16>, vector<32x128xf32> -> vector<32x128xf32>
    %c0_5 = arith.constant 0 : index
    %c0_6 = arith.constant 0 : index
    %7 = vector.load %arg4[%c0_5, %c0_6] : memref<32x1xf32, #tpu.memory_space<vmem>>, vector<32x1xf32>
    %8 = vector.broadcast %7 : vector<32x1xf32> to vector<32x128xf32>
    %9 = arith.addf %6, %8 : vector<32x128xf32>
    %cst_7 = arith.constant 0.000000e+00 : f32
    %10 = vector.broadcast %cst_7 : f32 to vector<32x128xf32>
    %11 = arith.maximumf %9, %10 : vector<32x128xf32>
    %12 = vector.extract_strided_slice %11 {offsets = [0, 0], sizes = [16, 128], strides = [1, 1]} : vector<32x128xf32> to vector<16x128xf32>
    %c0_8 = arith.constant 0 : index
    %c0_9 = arith.constant 0 : index
    %13 = vector.load %arg5[%c0_8, %c0_9] : memref<16x1xf32, #tpu.memory_space<vmem>>, vector<16x1xf32>
    %14 = vector.broadcast %13 : vector<16x1xf32> to vector<16x128xf32>
    %15 = arith.mulf %12, %14 : vector<16x128xf32>
    %cst_10 = arith.constant dense<0.000000e+00> : vector<128xf32>
    %16 = vector.multi_reduction <add>, %15, %cst_10 [0] : vector<16x128xf32> to vector<128xf32>
    %17 = vector.shape_cast %16 : vector<128xf32> to vector<1x128xf32>
    %c0_11 = arith.constant 0 : index
    %c0_12 = arith.constant 0 : index
    %18 = vector.load %arg6[%c0_11, %c0_12] : memref<1x1xf32, #tpu.memory_space<vmem>>, vector<1x1xf32>
    %19 = vector.broadcast %18 : vector<1x1xf32> to vector<1x128xf32>
    %20 = arith.addf %17, %19 : vector<1x128xf32>
    %cst_13 = arith.constant 0.000000e+00 : f32
    %21 = vector.broadcast %cst_13 : f32 to vector<1x128xf32>
    %22 = arith.maximumf %20, %21 : vector<1x128xf32>
    %c0_14 = arith.constant 0 : index
    %c0_15 = arith.constant 0 : index
    %c0_16 = arith.constant 0 : index
    %23 = vector.load %arg9[%c0_14, %c0_15, %c0_16] : memref<1x1x128xf32, #tpu.memory_space<vmem>>, vector<1x1x128xf32>
    %24 = vector.shape_cast %23 : vector<1x1x128xf32> to vector<1x128xf32>
    %25 = vector.shape_cast %22 : vector<1x128xf32> to vector<1x1x128xf32>
    tpu.vector_store %arg9[%c0_14, %c0_15, %c0_16], %25 {strides = array<i32>} : memref<1x1x128xf32, #tpu.memory_space<vmem>>, vector<1x1x128xf32>,
    %c0_17 = arith.constant 0 : index
    %c0_18 = arith.constant 0 : index
    %26 = vector.load %arg7[%c0_17, %c0_18] : memref<16x16xbf16, #tpu.memory_space<vmem>>, vector<16x16xbf16>
    %27 = vector.extract_strided_slice %11 {offsets = [16, 0], sizes = [16, 128], strides = [1, 1]} : vector<32x128xf32> to vector<16x128xf32>
    %28 = arith.truncf %27 : vector<16x128xf32> to vector<16x128xbf16>
    %cst_19 = arith.constant dense<0.000000e+00> : vector<16x128xf32>
    %29 = tpu.matmul %26, %28, %cst_19 {dimension_numbers = #tpu.dot_dimension_numbers<[1], [0], [0], [1], [0, 0, 1, 1], [], []>} : vector<16x16xbf16>, vector<16x128xbf16>, vector<16x128xf32> -> vector<16x128xf32>
    %c0_20 = arith.constant 0 : index
    %c0_21 = arith.constant 0 : index
    %30 = vector.load %arg8[%c0_20, %c0_21] : memref<16x1xf32, #tpu.memory_space<vmem>>, vector<16x1xf32>
    %31 = vector.broadcast %30 : vector<16x1xf32> to vector<16x128xf32>
    %32 = arith.addf %29, %31 : vector<16x128xf32>
    %cst_22 = arith.constant 0.000000e+00 : f32
    %33 = vector.broadcast %cst_22 : f32 to vector<16x128xf32>
    %34 = arith.maximumf %32, %33 : vector<16x128xf32>
    %c0_23 = arith.constant 0 : index
    %c0_24 = arith.constant 0 : index
    %35 = vector.load %arg11[%c0_23, %c0_24] : memref<16x1xf32, #tpu.memory_space<vmem>>, vector<16x1xf32>
    %cst_25 = arith.constant dense<0.000000e+00> : vector<16xf32>
    %36 = vector.multi_reduction <add>, %34, %cst_25 [1] : vector<16x128xf32> to vector<16xf32>
    %37 = vector.shape_cast %36 : vector<16xf32> to vector<16x1xf32>
    %38 = arith.addf %35, %37 : vector<16x1xf32>
    %c0_26 = arith.constant 0 : index
    %c0_27 = arith.constant 0 : index
    %39 = vector.load %arg11[%c0_26, %c0_27] : memref<16x1xf32, #tpu.memory_space<vmem>>, vector<16x1xf32>
    tpu.vector_store %arg11[%c0_26, %c0_27], %38 {strides = array<i32>} : memref<16x1xf32, #tpu.memory_space<vmem>>, vector<16x1xf32>,
    %c1_i32 = arith.constant 1 : i32
    %40 = arith.cmpi eq, %arg1, %c1_i32 : i32
    %41 = arith.extui %40 : i1 to i32
    %c0_i32_28 = arith.constant 0 : i32
    %42 = arith.cmpi ne, %41, %c0_i32_28 : i32
    scf.if %42 {
      %c0_29 = arith.constant 0 : index
      %c0_30 = arith.constant 0 : index
      %43 = vector.load %arg11[%c0_29, %c0_30] : memref<16x1xf32, #tpu.memory_space<vmem>>, vector<16x1xf32>
      %cst_31 = arith.constant 3.906250e-03 : f32
      %44 = vector.broadcast %cst_31 : f32 to vector<16x1xf32>
      %45 = arith.mulf %43, %44 : vector<16x1xf32>
      %c0_32 = arith.constant 0 : index
      %c0_33 = arith.constant 0 : index
      %c0_34 = arith.constant 0 : index
      %46 = vector.load %arg10[%c0_32, %c0_33, %c0_34] : memref<1x16x1xf32, #tpu.memory_space<vmem>>, vector<1x16x1xf32>
      %47 = vector.shape_cast %46 : vector<1x16x1xf32> to vector<16x1xf32>
      %48 = vector.shape_cast %45 : vector<16x1xf32> to vector<1x16x1xf32>
      tpu.vector_store %arg10[%c0_32, %c0_33, %c0_34], %48 {strides = array<i32>} : memref<1x16x1xf32, #tpu.memory_space<vmem>>, vector<1x16x1xf32>,
    } else {
    }
    return
  }
  func.func @transform_0(%arg0: i32, %arg1: i32) -> (i32, i32, i32) {
    %c0_i32 = arith.constant 0 : i32
    %c0_i32_0 = arith.constant 0 : i32
    return %arg0, %c0_i32, %arg1 : i32, i32, i32
  }
  func.func @transform_1(%arg0: i32, %arg1: i32) -> (i32, i32) {
    %c0_i32 = arith.constant 0 : i32
    %c0_i32_0 = arith.constant 0 : i32
    %c0_i32_1 = arith.constant 0 : i32
    return %c0_i32, %c0_i32_0 : i32, i32
  }
  func.func @transform_2(%arg0: i32, %arg1: i32) -> (i32, i32) {
    %c0_i32 = arith.constant 0 : i32
    %c0_i32_0 = arith.constant 0 : i32
    %c0_i32_1 = arith.constant 0 : i32
    return %c0_i32, %c0_i32_0 : i32, i32
  }
  func.func @transform_3(%arg0: i32, %arg1: i32) -> (i32, i32) {
    %c0_i32 = arith.constant 0 : i32
    %c0_i32_0 = arith.constant 0 : i32
    %c0_i32_1 = arith.constant 0 : i32
    return %c0_i32, %c0_i32_0 : i32, i32
  }
  func.func @transform_4(%arg0: i32, %arg1: i32) -> (i32, i32) {
    %c0_i32 = arith.constant 0 : i32
    %c0_i32_0 = arith.constant 0 : i32
    %c0_i32_1 = arith.constant 0 : i32
    return %c0_i32, %c0_i32_0 : i32, i32
  }
  func.func @transform_5(%arg0: i32, %arg1: i32) -> (i32, i32) {
    %c0_i32 = arith.constant 0 : i32
    %c0_i32_0 = arith.constant 0 : i32
    %c0_i32_1 = arith.constant 0 : i32
    return %c0_i32, %c0_i32_0 : i32, i32
  }
  func.func @transform_6(%arg0: i32, %arg1: i32) -> (i32, i32) {
    %c0_i32 = arith.constant 0 : i32
    %c0_i32_0 = arith.constant 0 : i32
    %c0_i32_1 = arith.constant 0 : i32
    return %c0_i32, %c0_i32_0 : i32, i32
  }
  func.func @transform_7(%arg0: i32, %arg1: i32) -> (i32, i32, i32) {
    %c0_i32 = arith.constant 0 : i32
    %c0_i32_0 = arith.constant 0 : i32
    return %arg0, %c0_i32, %arg1 : i32, i32, i32
  }
  func.func @transform_8(%arg0: i32, %arg1: i32) -> (i32, i32, i32) {
    %c0_i32 = arith.constant 0 : i32
    %c0_i32_0 = arith.constant 0 : i32
    %c0_i32_1 = arith.constant 0 : i32
    return %arg0, %c0_i32, %c0_i32_0 : i32, i32, i32
  }
}

module attributes {stable_mosaic.version = 11 : i64} {
  func.func @_d_stream_kernel(%arg0: i32, %arg1: i32, %arg2: memref<1x1x128xf32, #tpu.memory_space<vmem>>, %arg3: memref<1x16x1xf32, #tpu.memory_space<vmem>>, %arg4: memref<1x32x128xbf16, #tpu.memory_space<vmem>>, %arg5: memref<32x32xbf16, #tpu.memory_space<vmem>>, %arg6: memref<32x1xf32, #tpu.memory_space<vmem>>, %arg7: memref<16x16xbf16, #tpu.memory_space<vmem>>, %arg8: memref<16x1xf32, #tpu.memory_space<vmem>>, %arg9: memref<16x16xbf16, #tpu.memory_space<vmem>>, %arg10: memref<16x1xf32, #tpu.memory_space<vmem>>, %arg11: memref<1x1x128xf32, #tpu.memory_space<vmem>>, %arg12: memref<1x16x1xf32, #tpu.memory_space<vmem>>, %arg13: memref<16x1xf32, #tpu.memory_space<vmem>>) attributes {dimension_semantics = [#tpu.dimension_semantics<parallel>, #tpu.dimension_semantics<arbitrary>], iteration_bounds = array<i64: 2, 2>, scalar_prefetch = 0 : i64, scratch_operands = 1 : i64, tpu.core_type = #tpu.core_type<tc>, window_params = [{transform_indices = @transform_0, window_bounds = array<i64: 1, 1, 128>}, {transform_indices = @transform_1, window_bounds = array<i64: 1, 16, 1>}, {transform_indices = @transform_2, window_bounds = array<i64: 1, 32, 128>}, {pipeline_mode = #tpu.pipeline_mode<synchronous>, transform_indices = @transform_3, window_bounds = array<i64: 32, 32>}, {pipeline_mode = #tpu.pipeline_mode<synchronous>, transform_indices = @transform_4, window_bounds = array<i64: 32, 1>}, {pipeline_mode = #tpu.pipeline_mode<synchronous>, transform_indices = @transform_5, window_bounds = array<i64: 16, 16>}, {pipeline_mode = #tpu.pipeline_mode<synchronous>, transform_indices = @transform_6, window_bounds = array<i64: 16, 1>}, {pipeline_mode = #tpu.pipeline_mode<synchronous>, transform_indices = @transform_7, window_bounds = array<i64: 16, 16>}, {pipeline_mode = #tpu.pipeline_mode<synchronous>, transform_indices = @transform_8, window_bounds = array<i64: 16, 1>}, {transform_indices = @transform_9, window_bounds = array<i64: 1, 1, 128>}, {transform_indices = @transform_10, window_bounds = array<i64: 1, 16, 1>}]} {
    %c0_i32 = arith.constant 0 : i32
    %0 = arith.cmpi eq, %arg1, %c0_i32 : i32
    %1 = arith.extui %0 : i1 to i32
    %c0_i32_0 = arith.constant 0 : i32
    %2 = arith.cmpi ne, %1, %c0_i32_0 : i32
    scf.if %2 {
      %cst_36 = arith.constant 0.000000e+00 : f32
      %51 = vector.broadcast %cst_36 : f32 to vector<16x1xf32>
      %c0_37 = arith.constant 0 : index
      %c0_38 = arith.constant 0 : index
      %52 = vector.load %arg13[%c0_37, %c0_38] : memref<16x1xf32, #tpu.memory_space<vmem>>, vector<16x1xf32>
      tpu.vector_store %arg13[%c0_37, %c0_38], %51 {strides = array<i32>} : memref<16x1xf32, #tpu.memory_space<vmem>>, vector<16x1xf32>,
    } else {
    }
    %c0 = arith.constant 0 : index
    %c0_1 = arith.constant 0 : index
    %c0_2 = arith.constant 0 : index
    %3 = vector.load %arg4[%c0, %c0_1, %c0_2] : memref<1x32x128xbf16, #tpu.memory_space<vmem>>, vector<1x32x128xbf16>
    %4 = vector.shape_cast %3 : vector<1x32x128xbf16> to vector<32x128xbf16>
    %c0_3 = arith.constant 0 : index
    %c0_4 = arith.constant 0 : index
    %5 = vector.load %arg5[%c0_3, %c0_4] : memref<32x32xbf16, #tpu.memory_space<vmem>>, vector<32x32xbf16>
    %cst = arith.constant dense<0.000000e+00> : vector<32x128xf32>
    %6 = tpu.matmul %5, %4, %cst {dimension_numbers = #tpu.dot_dimension_numbers<[1], [0], [0], [1], [0, 0, 1, 1], [], []>} : vector<32x32xbf16>, vector<32x128xbf16>, vector<32x128xf32> -> vector<32x128xf32>
    %c0_5 = arith.constant 0 : index
    %c0_6 = arith.constant 0 : index
    %7 = vector.load %arg6[%c0_5, %c0_6] : memref<32x1xf32, #tpu.memory_space<vmem>>, vector<32x1xf32>
    %8 = vector.broadcast %7 : vector<32x1xf32> to vector<32x128xf32>
    %9 = arith.addf %6, %8 : vector<32x128xf32>
    %cst_7 = arith.constant 0.000000e+00 : f32
    %10 = vector.broadcast %cst_7 : f32 to vector<32x128xf32>
    %11 = arith.maximumf %9, %10 : vector<32x128xf32>
    %c0_8 = arith.constant 0 : index
    %c0_9 = arith.constant 0 : index
    %12 = vector.load %arg7[%c0_8, %c0_9] : memref<16x16xbf16, #tpu.memory_space<vmem>>, vector<16x16xbf16>
    %13 = vector.extract_strided_slice %11 {offsets = [0, 0], sizes = [16, 128], strides = [1, 1]} : vector<32x128xf32> to vector<16x128xf32>
    %14 = arith.truncf %13 : vector<16x128xf32> to vector<16x128xbf16>
    %cst_10 = arith.constant dense<0.000000e+00> : vector<16x128xf32>
    %15 = tpu.matmul %12, %14, %cst_10 {dimension_numbers = #tpu.dot_dimension_numbers<[1], [0], [0], [1], [0, 0, 1, 1], [], []>} : vector<16x16xbf16>, vector<16x128xbf16>, vector<16x128xf32> -> vector<16x128xf32>
    %c0_11 = arith.constant 0 : index
    %c0_12 = arith.constant 0 : index
    %16 = vector.load %arg8[%c0_11, %c0_12] : memref<16x1xf32, #tpu.memory_space<vmem>>, vector<16x1xf32>
    %17 = vector.broadcast %16 : vector<16x1xf32> to vector<16x128xf32>
    %18 = arith.addf %15, %17 : vector<16x128xf32>
    %cst_13 = arith.constant 0.000000e+00 : f32
    %19 = vector.broadcast %cst_13 : f32 to vector<16x128xf32>
    %20 = arith.maximumf %18, %19 : vector<16x128xf32>
    %c0_14 = arith.constant 0 : index
    %c0_15 = arith.constant 0 : index
    %21 = vector.load %arg13[%c0_14, %c0_15] : memref<16x1xf32, #tpu.memory_space<vmem>>, vector<16x1xf32>
    %c0_16 = arith.constant 0 : index
    %c0_17 = arith.constant 0 : index
    %c0_18 = arith.constant 0 : index
    %22 = vector.load %arg2[%c0_16, %c0_17, %c0_18] : memref<1x1x128xf32, #tpu.memory_space<vmem>>, vector<1x1x128xf32>
    %23 = vector.shape_cast %22 : vector<1x1x128xf32> to vector<1x128xf32>
    %24 = vector.broadcast %23 : vector<1x128xf32> to vector<16x128xf32>
    %25 = arith.mulf %20, %24 : vector<16x128xf32>
    %cst_19 = arith.constant dense<0.000000e+00> : vector<16xf32>
    %26 = vector.multi_reduction <add>, %25, %cst_19 [1] : vector<16x128xf32> to vector<16xf32>
    %27 = vector.shape_cast %26 : vector<16xf32> to vector<16x1xf32>
    %28 = arith.addf %21, %27 : vector<16x1xf32>
    %c0_20 = arith.constant 0 : index
    %c0_21 = arith.constant 0 : index
    %29 = vector.load %arg13[%c0_20, %c0_21] : memref<16x1xf32, #tpu.memory_space<vmem>>, vector<16x1xf32>
    tpu.vector_store %arg13[%c0_20, %c0_21], %28 {strides = array<i32>} : memref<16x1xf32, #tpu.memory_space<vmem>>, vector<16x1xf32>,
    %c0_22 = arith.constant 0 : index
    %c0_23 = arith.constant 0 : index
    %30 = vector.load %arg9[%c0_22, %c0_23] : memref<16x16xbf16, #tpu.memory_space<vmem>>, vector<16x16xbf16>
    %31 = vector.extract_strided_slice %11 {offsets = [16, 0], sizes = [16, 128], strides = [1, 1]} : vector<32x128xf32> to vector<16x128xf32>
    %32 = arith.truncf %31 : vector<16x128xf32> to vector<16x128xbf16>
    %cst_24 = arith.constant dense<0.000000e+00> : vector<16x128xf32>
    %33 = tpu.matmul %30, %32, %cst_24 {dimension_numbers = #tpu.dot_dimension_numbers<[1], [0], [0], [1], [0, 0, 1, 1], [], []>} : vector<16x16xbf16>, vector<16x128xbf16>, vector<16x128xf32> -> vector<16x128xf32>
    %c0_25 = arith.constant 0 : index
    %c0_26 = arith.constant 0 : index
    %34 = vector.load %arg10[%c0_25, %c0_26] : memref<16x1xf32, #tpu.memory_space<vmem>>, vector<16x1xf32>
    %35 = vector.broadcast %34 : vector<16x1xf32> to vector<16x128xf32>
    %36 = arith.addf %33, %35 : vector<16x128xf32>
    %cst_27 = arith.constant 0.000000e+00 : f32
    %37 = vector.broadcast %cst_27 : f32 to vector<16x128xf32>
    %38 = arith.maximumf %36, %37 : vector<16x128xf32>
    %c0_28 = arith.constant 0 : index
    %c0_29 = arith.constant 0 : index
    %c0_30 = arith.constant 0 : index
    %39 = vector.load %arg3[%c0_28, %c0_29, %c0_30] : memref<1x16x1xf32, #tpu.memory_space<vmem>>, vector<1x16x1xf32>
    %40 = vector.shape_cast %39 : vector<1x16x1xf32> to vector<16x1xf32>
    %41 = vector.broadcast %40 : vector<16x1xf32> to vector<16x128xf32>
    %42 = arith.mulf %38, %41 : vector<16x128xf32>
    %cst_31 = arith.constant dense<0.000000e+00> : vector<128xf32>
    %43 = vector.multi_reduction <add>, %42, %cst_31 [0] : vector<16x128xf32> to vector<128xf32>
    %44 = vector.shape_cast %43 : vector<128xf32> to vector<1x128xf32>
    %c0_32 = arith.constant 0 : index
    %c0_33 = arith.constant 0 : index
    %c0_34 = arith.constant 0 : index
    %45 = vector.load %arg11[%c0_32, %c0_33, %c0_34] : memref<1x1x128xf32, #tpu.memory_space<vmem>>, vector<1x1x128xf32>
    %46 = vector.shape_cast %45 : vector<1x1x128xf32> to vector<1x128xf32>
    %47 = vector.shape_cast %44 : vector<1x128xf32> to vector<1x1x128xf32>
    tpu.vector_store %arg11[%c0_32, %c0_33, %c0_34], %47 {strides = array<i32>} : memref<1x1x128xf32, #tpu.memory_space<vmem>>, vector<1x1x128xf32>,
    %c1_i32 = arith.constant 1 : i32
    %48 = arith.cmpi eq, %arg1, %c1_i32 : i32
    %49 = arith.extui %48 : i1 to i32
    %c0_i32_35 = arith.constant 0 : i32
    %50 = arith.cmpi ne, %49, %c0_i32_35 : i32
    scf.if %50 {
      %c0_36 = arith.constant 0 : index
      %c0_37 = arith.constant 0 : index
      %51 = vector.load %arg13[%c0_36, %c0_37] : memref<16x1xf32, #tpu.memory_space<vmem>>, vector<16x1xf32>
      %c0_38 = arith.constant 0 : index
      %c0_39 = arith.constant 0 : index
      %c0_40 = arith.constant 0 : index
      %52 = vector.load %arg12[%c0_38, %c0_39, %c0_40] : memref<1x16x1xf32, #tpu.memory_space<vmem>>, vector<1x16x1xf32>
      %53 = vector.shape_cast %52 : vector<1x16x1xf32> to vector<16x1xf32>
      %54 = vector.shape_cast %51 : vector<16x1xf32> to vector<1x16x1xf32>
      tpu.vector_store %arg12[%c0_38, %c0_39, %c0_40], %54 {strides = array<i32>} : memref<1x16x1xf32, #tpu.memory_space<vmem>>, vector<1x16x1xf32>,
    } else {
    }
    return
  }
  func.func @transform_0(%arg0: i32, %arg1: i32) -> (i32, i32, i32) {
    %c0_i32 = arith.constant 0 : i32
    %c0_i32_0 = arith.constant 0 : i32
    return %arg0, %c0_i32, %arg1 : i32, i32, i32
  }
  func.func @transform_1(%arg0: i32, %arg1: i32) -> (i32, i32, i32) {
    %c0_i32 = arith.constant 0 : i32
    %c0_i32_0 = arith.constant 0 : i32
    %c0_i32_1 = arith.constant 0 : i32
    return %arg0, %c0_i32, %c0_i32_0 : i32, i32, i32
  }
  func.func @transform_2(%arg0: i32, %arg1: i32) -> (i32, i32, i32) {
    %c0_i32 = arith.constant 0 : i32
    %c0_i32_0 = arith.constant 0 : i32
    return %arg0, %c0_i32, %arg1 : i32, i32, i32
  }
  func.func @transform_3(%arg0: i32, %arg1: i32) -> (i32, i32) {
    %c0_i32 = arith.constant 0 : i32
    %c0_i32_0 = arith.constant 0 : i32
    %c0_i32_1 = arith.constant 0 : i32
    return %c0_i32, %c0_i32_0 : i32, i32
  }
  func.func @transform_4(%arg0: i32, %arg1: i32) -> (i32, i32) {
    %c0_i32 = arith.constant 0 : i32
    %c0_i32_0 = arith.constant 0 : i32
    %c0_i32_1 = arith.constant 0 : i32
    return %c0_i32, %c0_i32_0 : i32, i32
  }
  func.func @transform_5(%arg0: i32, %arg1: i32) -> (i32, i32) {
    %c0_i32 = arith.constant 0 : i32
    %c0_i32_0 = arith.constant 0 : i32
    %c0_i32_1 = arith.constant 0 : i32
    return %c0_i32, %c0_i32_0 : i32, i32
  }
  func.func @transform_6(%arg0: i32, %arg1: i32) -> (i32, i32) {
    %c0_i32 = arith.constant 0 : i32
    %c0_i32_0 = arith.constant 0 : i32
    %c0_i32_1 = arith.constant 0 : i32
    return %c0_i32, %c0_i32_0 : i32, i32
  }
  func.func @transform_7(%arg0: i32, %arg1: i32) -> (i32, i32) {
    %c0_i32 = arith.constant 0 : i32
    %c0_i32_0 = arith.constant 0 : i32
    %c0_i32_1 = arith.constant 0 : i32
    return %c0_i32, %c0_i32_0 : i32, i32
  }
  func.func @transform_8(%arg0: i32, %arg1: i32) -> (i32, i32) {
    %c0_i32 = arith.constant 0 : i32
    %c0_i32_0 = arith.constant 0 : i32
    %c0_i32_1 = arith.constant 0 : i32
    return %c0_i32, %c0_i32_0 : i32, i32
  }
  func.func @transform_9(%arg0: i32, %arg1: i32) -> (i32, i32, i32) {
    %c0_i32 = arith.constant 0 : i32
    %c0_i32_0 = arith.constant 0 : i32
    return %arg0, %c0_i32, %arg1 : i32, i32, i32
  }
  func.func @transform_10(%arg0: i32, %arg1: i32) -> (i32, i32, i32) {
    %c0_i32 = arith.constant 0 : i32
    %c0_i32_0 = arith.constant 0 : i32
    %c0_i32_1 = arith.constant 0 : i32
    return %arg0, %c0_i32, %c0_i32_0 : i32, i32, i32
  }
}

module attributes {stable_mosaic.version = 11 : i64} {
  func.func @_fuse_conv_out_kernel(%arg0: i32, %arg1: memref<1x32x256xbf16, #tpu.memory_space<vmem>>, %arg2: memref<1x32x256xbf16, #tpu.memory_space<vmem>>, %arg3: memref<1x32x1xf32, #tpu.memory_space<vmem>>, %arg4: memref<1x1x256xf32, #tpu.memory_space<vmem>>, %arg5: memref<2x256xf32, #tpu.memory_space<vmem>>, %arg6: memref<32x288xf32, #tpu.memory_space<vmem>>, %arg7: memref<32x1xf32, #tpu.memory_space<vmem>>, %arg8: memref<1x32x256xf32, #tpu.memory_space<vmem>>, %arg9: memref<32x290xf32, #tpu.memory_space<vmem>>, %arg10: memref<288x256xf32, #tpu.memory_space<vmem>>) attributes {dimension_semantics = [#tpu.dimension_semantics<parallel>], iteration_bounds = array<i64: 2>, scalar_prefetch = 0 : i64, scratch_operands = 2 : i64, tpu.core_type = #tpu.core_type<tc>, window_params = [{transform_indices = @transform_0, window_bounds = array<i64: 1, 32, 256>}, {transform_indices = @transform_1, window_bounds = array<i64: 1, 32, 256>}, {transform_indices = @transform_2, window_bounds = array<i64: 1, 32, 1>}, {transform_indices = @transform_3, window_bounds = array<i64: 1, 1, 256>}, {pipeline_mode = #tpu.pipeline_mode<synchronous>, transform_indices = @transform_4, window_bounds = array<i64: 2, 256>}, {pipeline_mode = #tpu.pipeline_mode<synchronous>, transform_indices = @transform_5, window_bounds = array<i64: 32, 288>}, {pipeline_mode = #tpu.pipeline_mode<synchronous>, transform_indices = @transform_6, window_bounds = array<i64: 32, 1>}, {transform_indices = @transform_7, window_bounds = array<i64: 1, 32, 256>}]} {
    %cst = arith.constant 0.000000e+00 : f32
    %0 = vector.broadcast %cst : f32 to vector<32x17xf32>
    %c0 = arith.constant 0 : index
    %c0_0 = arith.constant 0 : index
    %1 = vector.load %arg9[%c0, %c0_0] : memref<32x290xf32, #tpu.memory_space<vmem>>, vector<32x17xf32>
    tpu.vector_store %arg9[%c0, %c0_0], %0 {strides = array<i32>} : memref<32x290xf32, #tpu.memory_space<vmem>>, vector<32x17xf32>,
    %cst_1 = arith.constant 0.000000e+00 : f32
    %2 = vector.broadcast %cst_1 : f32 to vector<32x17xf32>
    %c0_2 = arith.constant 0 : index
    %c273 = arith.constant 273 : index
    %3 = vector.load %arg9[%c0_2, %c273] : memref<32x290xf32, #tpu.memory_space<vmem>>, vector<32x17xf32>
    tpu.vector_store %arg9[%c0_2, %c273], %2 {strides = array<i32>} : memref<32x290xf32, #tpu.memory_space<vmem>>, vector<32x17xf32>,
    %c0_3 = arith.constant 0 : index
    %c0_4 = arith.constant 0 : index
    %c0_5 = arith.constant 0 : index
    %4 = vector.load %arg1[%c0_3, %c0_4, %c0_5] : memref<1x32x256xbf16, #tpu.memory_space<vmem>>, vector<1x32x256xbf16>
    %5 = vector.shape_cast %4 : vector<1x32x256xbf16> to vector<32x256xbf16>
    %6 = arith.extf %5 : vector<32x256xbf16> to vector<32x256xf32>
    %c0_6 = arith.constant 0 : index
    %c0_7 = arith.constant 0 : index
    %c0_8 = arith.constant 0 : index
    %7 = vector.load %arg2[%c0_6, %c0_7, %c0_8] : memref<1x32x256xbf16, #tpu.memory_space<vmem>>, vector<1x32x256xbf16>
    %8 = vector.shape_cast %7 : vector<1x32x256xbf16> to vector<32x256xbf16>
    %9 = arith.extf %8 : vector<32x256xbf16> to vector<32x256xf32>
    %c0_9 = arith.constant 0 : index
    %c0_10 = arith.constant 0 : index
    %c0_11 = arith.constant 0 : index
    %10 = vector.load %arg3[%c0_9, %c0_10, %c0_11] : memref<1x32x1xf32, #tpu.memory_space<vmem>>, vector<1x32x1xf32>
    %11 = vector.shape_cast %10 : vector<1x32x1xf32> to vector<32x1xf32>
    %12 = vector.broadcast %11 : vector<32x1xf32> to vector<32x256xf32>
    %13 = arith.mulf %9, %12 : vector<32x256xf32>
    %c0_12 = arith.constant 0 : index
    %c0_13 = arith.constant 0 : index
    %c0_14 = arith.constant 0 : index
    %14 = vector.load %arg4[%c0_12, %c0_13, %c0_14] : memref<1x1x256xf32, #tpu.memory_space<vmem>>, vector<1x1x256xf32>
    %15 = vector.shape_cast %14 : vector<1x1x256xf32> to vector<1x256xf32>
    %cst_15 = arith.constant 2.000000e+00 : f32
    %16 = vector.broadcast %cst_15 : f32 to vector<1x256xf32>
    %17 = arith.addf %16, %15 : vector<1x256xf32>
    %18 = vector.broadcast %17 : vector<1x256xf32> to vector<32x256xf32>
    %19 = arith.mulf %6, %18 : vector<32x256xf32>
    %20 = arith.addf %13, %19 : vector<32x256xf32>
    %c0_16 = arith.constant 0 : index
    %c17 = arith.constant 17 : index
    %21 = vector.load %arg9[%c0_16, %c17] : memref<32x290xf32, #tpu.memory_space<vmem>>, vector<32x256xf32>
    tpu.vector_store %arg9[%c0_16, %c17], %20 {strides = array<i32>} : memref<32x290xf32, #tpu.memory_space<vmem>>, vector<32x256xf32>,
    %c0_17 = arith.constant 0 : index
    %c0_18 = arith.constant 0 : index
    %22 = vector.load %arg9[%c0_17, %c0_18] : memref<32x290xf32, #tpu.memory_space<vmem>>, vector<32x256xf32>
    %c0_19 = arith.constant 0 : index
    %c0_20 = arith.constant 0 : index
    %23 = vector.load %arg5[%c0_19, %c0_20] : memref<2x256xf32, #tpu.memory_space<vmem>>, vector<1x256xf32>
    %24 = vector.broadcast %23 : vector<1x256xf32> to vector<32x256xf32>
    %25 = arith.mulf %22, %24 : vector<32x256xf32>
    %c0_21 = arith.constant 0 : index
    %c0_22 = arith.constant 0 : index
    %26 = vector.load %arg10[%c0_21, %c0_22] : memref<288x256xf32, #tpu.memory_space<vmem>>, vector<32x256xf32>
    tpu.vector_store %arg10[%c0_21, %c0_22], %25 {strides = array<i32>} : memref<288x256xf32, #tpu.memory_space<vmem>>, vector<32x256xf32>,
    %c0_23 = arith.constant 0 : index
    %c1 = arith.constant 1 : index
    %27 = vector.load %arg9[%c0_23, %c1] : memref<32x290xf32, #tpu.memory_space<vmem>>, vector<32x256xf32>
    %c32 = arith.constant 32 : index
    %c0_24 = arith.constant 0 : index
    %28 = vector.load %arg10[%c32, %c0_24] : memref<288x256xf32, #tpu.memory_space<vmem>>, vector<32x256xf32>
    tpu.vector_store %arg10[%c32, %c0_24], %27 {strides = array<i32>} : memref<288x256xf32, #tpu.memory_space<vmem>>, vector<32x256xf32>,
    %c0_25 = arith.constant 0 : index
    %c2 = arith.constant 2 : index
    %29 = vector.load %arg9[%c0_25, %c2] : memref<32x290xf32, #tpu.memory_space<vmem>>, vector<32x256xf32>
    %c1_26 = arith.constant 1 : index
    %c0_27 = arith.constant 0 : index
    %30 = vector.load %arg5[%c1_26, %c0_27] : memref<2x256xf32, #tpu.memory_space<vmem>>, vector<1x256xf32>
    %31 = vector.broadcast %30 : vector<1x256xf32> to vector<32x256xf32>
    %32 = arith.mulf %29, %31 : vector<32x256xf32>
    %c64 = arith.constant 64 : index
    %c0_28 = arith.constant 0 : index
    %33 = vector.load %arg10[%c64, %c0_28] : memref<288x256xf32, #tpu.memory_space<vmem>>, vector<32x256xf32>
    tpu.vector_store %arg10[%c64, %c0_28], %32 {strides = array<i32>} : memref<288x256xf32, #tpu.memory_space<vmem>>, vector<32x256xf32>,
    %c0_29 = arith.constant 0 : index
    %c16 = arith.constant 16 : index
    %34 = vector.load %arg9[%c0_29, %c16] : memref<32x290xf32, #tpu.memory_space<vmem>>, vector<32x256xf32>
    %c0_30 = arith.constant 0 : index
    %c0_31 = arith.constant 0 : index
    %35 = vector.load %arg5[%c0_30, %c0_31] : memref<2x256xf32, #tpu.memory_space<vmem>>, vector<1x256xf32>
    %36 = vector.broadcast %35 : vector<1x256xf32> to vector<32x256xf32>
    %37 = arith.mulf %34, %36 : vector<32x256xf32>
    %c96 = arith.constant 96 : index
    %c0_32 = arith.constant 0 : index
    %38 = vector.load %arg10[%c96, %c0_32] : memref<288x256xf32, #tpu.memory_space<vmem>>, vector<32x256xf32>
    tpu.vector_store %arg10[%c96, %c0_32], %37 {strides = array<i32>} : memref<288x256xf32, #tpu.memory_space<vmem>>, vector<32x256xf32>,
    %c0_33 = arith.constant 0 : index
    %c17_34 = arith.constant 17 : index
    %39 = vector.load %arg9[%c0_33, %c17_34] : memref<32x290xf32, #tpu.memory_space<vmem>>, vector<32x256xf32>
    %c128 = arith.constant 128 : index
    %c0_35 = arith.constant 0 : index
    %40 = vector.load %arg10[%c128, %c0_35] : memref<288x256xf32, #tpu.memory_space<vmem>>, vector<32x256xf32>
    tpu.vector_store %arg10[%c128, %c0_35], %39 {strides = array<i32>} : memref<288x256xf32, #tpu.memory_space<vmem>>, vector<32x256xf32>,
    %c0_36 = arith.constant 0 : index
    %c18 = arith.constant 18 : index
    %41 = vector.load %arg9[%c0_36, %c18] : memref<32x290xf32, #tpu.memory_space<vmem>>, vector<32x256xf32>
    %c1_37 = arith.constant 1 : index
    %c0_38 = arith.constant 0 : index
    %42 = vector.load %arg5[%c1_37, %c0_38] : memref<2x256xf32, #tpu.memory_space<vmem>>, vector<1x256xf32>
    %43 = vector.broadcast %42 : vector<1x256xf32> to vector<32x256xf32>
    %44 = arith.mulf %41, %43 : vector<32x256xf32>
    %c160 = arith.constant 160 : index
    %c0_39 = arith.constant 0 : index
    %45 = vector.load %arg10[%c160, %c0_39] : memref<288x256xf32, #tpu.memory_space<vmem>>, vector<32x256xf32>
    tpu.vector_store %arg10[%c160, %c0_39], %44 {strides = array<i32>} : memref<288x256xf32, #tpu.memory_space<vmem>>, vector<32x256xf32>,
    %c0_40 = arith.constant 0 : index
    %c32_41 = arith.constant 32 : index
    %46 = vector.load %arg9[%c0_40, %c32_41] : memref<32x290xf32, #tpu.memory_space<vmem>>, vector<32x256xf32>
    %c0_42 = arith.constant 0 : index
    %c0_43 = arith.constant 0 : index
    %47 = vector.load %arg5[%c0_42, %c0_43] : memref<2x256xf32, #tpu.memory_space<vmem>>, vector<1x256xf32>
    %48 = vector.broadcast %47 : vector<1x256xf32> to vector<32x256xf32>
    %49 = arith.mulf %46, %48 : vector<32x256xf32>
    %c192 = arith.constant 192 : index
    %c0_44 = arith.constant 0 : index
    %50 = vector.load %arg10[%c192, %c0_44] : memref<288x256xf32, #tpu.memory_space<vmem>>, vector<32x256xf32>
    tpu.vector_store %arg10[%c192, %c0_44], %49 {strides = array<i32>} : memref<288x256xf32, #tpu.memory_space<vmem>>, vector<32x256xf32>,
    %c0_45 = arith.constant 0 : index
    %c33 = arith.constant 33 : index
    %51 = vector.load %arg9[%c0_45, %c33] : memref<32x290xf32, #tpu.memory_space<vmem>>, vector<32x256xf32>
    %c224 = arith.constant 224 : index
    %c0_46 = arith.constant 0 : index
    %52 = vector.load %arg10[%c224, %c0_46] : memref<288x256xf32, #tpu.memory_space<vmem>>, vector<32x256xf32>
    tpu.vector_store %arg10[%c224, %c0_46], %51 {strides = array<i32>} : memref<288x256xf32, #tpu.memory_space<vmem>>, vector<32x256xf32>,
    %c0_47 = arith.constant 0 : index
    %c34 = arith.constant 34 : index
    %53 = vector.load %arg9[%c0_47, %c34] : memref<32x290xf32, #tpu.memory_space<vmem>>, vector<32x256xf32>
    %c1_48 = arith.constant 1 : index
    %c0_49 = arith.constant 0 : index
    %54 = vector.load %arg5[%c1_48, %c0_49] : memref<2x256xf32, #tpu.memory_space<vmem>>, vector<1x256xf32>
    %55 = vector.broadcast %54 : vector<1x256xf32> to vector<32x256xf32>
    %56 = arith.mulf %53, %55 : vector<32x256xf32>
    %c256 = arith.constant 256 : index
    %c0_50 = arith.constant 0 : index
    %57 = vector.load %arg10[%c256, %c0_50] : memref<288x256xf32, #tpu.memory_space<vmem>>, vector<32x256xf32>
    tpu.vector_store %arg10[%c256, %c0_50], %56 {strides = array<i32>} : memref<288x256xf32, #tpu.memory_space<vmem>>, vector<32x256xf32>,
    %c0_51 = arith.constant 0 : index
    %c0_52 = arith.constant 0 : index
    %58 = vector.load %arg6[%c0_51, %c0_52] : memref<32x288xf32, #tpu.memory_space<vmem>>, vector<32x288xf32>
    %c0_53 = arith.constant 0 : index
    %c0_54 = arith.constant 0 : index
    %59 = vector.load %arg10[%c0_53, %c0_54] : memref<288x256xf32, #tpu.memory_space<vmem>>, vector<288x256xf32>
    %cst_55 = arith.constant dense<0.000000e+00> : vector<32x256xf32>
    %60 = tpu.matmul %58, %59, %cst_55 {dimension_numbers = #tpu.dot_dimension_numbers<[1], [0], [0], [1], [0, 0, 1, 1], [], []>} : vector<32x288xf32>, vector<288x256xf32>, vector<32x256xf32> -> vector<32x256xf32>
    %c0_56 = arith.constant 0 : index
    %c0_57 = arith.constant 0 : index
    %61 = vector.load %arg7[%c0_56, %c0_57] : memref<32x1xf32, #tpu.memory_space<vmem>>, vector<32x1xf32>
    %62 = vector.broadcast %61 : vector<32x1xf32> to vector<32x256xf32>
    %63 = arith.addf %60, %62 : vector<32x256xf32>
    %cst_58 = arith.constant 0.000000e+00 : f32
    %64 = vector.broadcast %cst_58 : f32 to vector<32x256xf32>
    %65 = arith.maximumf %63, %64 : vector<32x256xf32>
    %c0_59 = arith.constant 0 : index
    %c0_60 = arith.constant 0 : index
    %c0_61 = arith.constant 0 : index
    %66 = vector.load %arg8[%c0_59, %c0_60, %c0_61] : memref<1x32x256xf32, #tpu.memory_space<vmem>>, vector<1x32x256xf32>
    %67 = vector.shape_cast %66 : vector<1x32x256xf32> to vector<32x256xf32>
    %68 = vector.shape_cast %65 : vector<32x256xf32> to vector<1x32x256xf32>
    tpu.vector_store %arg8[%c0_59, %c0_60, %c0_61], %68 {strides = array<i32>} : memref<1x32x256xf32, #tpu.memory_space<vmem>>, vector<1x32x256xf32>,
    return
  }
  func.func @transform_0(%arg0: i32) -> (i32, i32, i32) {
    %c0_i32 = arith.constant 0 : i32
    %c0_i32_0 = arith.constant 0 : i32
    %c0_i32_1 = arith.constant 0 : i32
    return %arg0, %c0_i32, %c0_i32_0 : i32, i32, i32
  }
  func.func @transform_1(%arg0: i32) -> (i32, i32, i32) {
    %c0_i32 = arith.constant 0 : i32
    %c0_i32_0 = arith.constant 0 : i32
    %c0_i32_1 = arith.constant 0 : i32
    return %arg0, %c0_i32, %c0_i32_0 : i32, i32, i32
  }
  func.func @transform_2(%arg0: i32) -> (i32, i32, i32) {
    %c0_i32 = arith.constant 0 : i32
    %c0_i32_0 = arith.constant 0 : i32
    %c0_i32_1 = arith.constant 0 : i32
    return %arg0, %c0_i32, %c0_i32_0 : i32, i32, i32
  }
  func.func @transform_3(%arg0: i32) -> (i32, i32, i32) {
    %c0_i32 = arith.constant 0 : i32
    %c0_i32_0 = arith.constant 0 : i32
    %c0_i32_1 = arith.constant 0 : i32
    return %arg0, %c0_i32, %c0_i32_0 : i32, i32, i32
  }
  func.func @transform_4(%arg0: i32) -> (i32, i32) {
    %c0_i32 = arith.constant 0 : i32
    %c0_i32_0 = arith.constant 0 : i32
    %c0_i32_1 = arith.constant 0 : i32
    return %c0_i32, %c0_i32_0 : i32, i32
  }
  func.func @transform_5(%arg0: i32) -> (i32, i32) {
    %c0_i32 = arith.constant 0 : i32
    %c0_i32_0 = arith.constant 0 : i32
    %c0_i32_1 = arith.constant 0 : i32
    return %c0_i32, %c0_i32_0 : i32, i32
  }
  func.func @transform_6(%arg0: i32) -> (i32, i32) {
    %c0_i32 = arith.constant 0 : i32
    %c0_i32_0 = arith.constant 0 : i32
    %c0_i32_1 = arith.constant 0 : i32
    return %c0_i32, %c0_i32_0 : i32, i32
  }
  func.func @transform_7(%arg0: i32) -> (i32, i32, i32) {
    %c0_i32 = arith.constant 0 : i32
    %c0_i32_0 = arith.constant 0 : i32
    %c0_i32_1 = arith.constant 0 : i32
    return %arg0, %c0_i32, %c0_i32_0 : i32, i32, i32
  }
}

</mosaic_0001>

<bundles_post_ra>
// kernel: _lambda_.3
= control target key start
LH: loop header
LB: loop body
LE: loop exit
PB: predicated region body
PF: predicated region fallthrough
CT: control target
= control target key end

     0   :  { %s1944_s0 = inlined_call_operand.hbm [shape: bf16[2,32,256], index: 0, kind: input, shape index: {}]   ;;  %s1945_s1 = inlined_call_operand.hbm [shape: bf16[32,32], index: 1, kind: input, shape index: {}]   ;;  %s1946_s2 = inlined_call_operand.hbm [shape: f32[32,1], index: 2, kind: input, shape index: {}]   ;;  %s1947_s3 = inlined_call_operand.hbm [shape: f32[16,1], index: 3, kind: input, shape index: {}]   ;;  %s1948_s4 = inlined_call_operand.<no memory space> [shape: f32[1,1], index: 4, kind: input, shape index: {}]   ;;  %s1949_s5 = inlined_call_operand.hbm [shape: bf16[16,16], index: 5, kind: input, shape index: {}]   ;;  %s1950_s6 = inlined_call_operand.hbm [shape: f32[16,1], index: 6, kind: input, shape index: {}]   ;;  %s1951_s7 = inlined_call_operand.hbm [shape: f32[2,1,256], index: 7, kind: output, shape index: {0}]   ;;  %s1952_s8 = inlined_call_operand.hbm [shape: f32[2,16,1], index: 8, kind: output, shape index: {1}]  }
   0x1   :  { %1979 = sst [smem:[#allocation34_spill]] %s1945_s1  ;;  %v14_v0 = vstv %s1948_s4 }
   0x2   :  { %1980 = sst [smem:[#allocation35_spill]] %s1946_s2  ;;  %15 = vst [vmem:[#allocation3] sm:$0x1] %v14_v0 }
   0x3   :  { %1981 = sst [smem:[#allocation36_spill]] %s1947_s3 }
   0x4   :  { %1982 = sst [smem:[#allocation37_spill]] %s1949_s5 }
   0x5   :  { %1983 = sst [smem:[#allocation38_spill]] %s1950_s6 }
   0x6   :  { %1984 = sst [smem:[#allocation39_spill]] %s1951_s7 }
   0x7   :  { %1985 = sst [smem:[#allocation40_spill]] %s1952_s8 }
   0x8   :  { %16 = vsyncpa [#allocation5], 0 }
   0x9   :  { %18 = vsyncpa [#allocation5 + $0x1], 0 }
   0xa   :  { %19 = vsyncpa [#allocation8], 0 }
   0xb   :  { %20 = vsyncpa [#allocation11], 0 }
   0xc   :  { %21 = vsyncpa [#allocation14], 0 }
   0xd   :  { %22 = vsyncpa [#allocation6], 0 }
   0xe   :  { %24 = vsyncpa [#allocation6 + $0x1], 0 }
   0xf   :  { %25 = vsyncpa [#allocation17], 0 }
  0x10   :  { %27 = vsyncpa [#allocation17 + $0x1], 0  ;;  %s1504_s29 = smov 0   ;;  %s1506_s30 = smov 0  }
  0x11   :  { %s1508_s9 = smov 0   ;;  %s1510_s10 = smov 0  }
  0x12   :  { %s1512_s11 = smov 0   ;;  %s1514_s4 = smov 0  }
  0x13   :  { %s1516_s12 = smov 0   ;;  %s1518_s13 = smov 0  }
  0x14   :  { %s1520_s14 = smov 0   ;;  %s1522_s15 = smov 0  }
  0x15   :  { %s1524_s16 = smov 0  }
  0x16 LB: > { %1986 = sst [smem:[#allocation24_spill]] %s1396_s29  ;;  %s867_s17 = sadd.s32 4294967295, %s1436_s16   ;;  %s1436_s16 = sphi %s1524_s16, %s33_s16   ;;  %s1432_s15 = sphi %s1522_s15, %s2048_s15   ;;  %s1428_s14 = sphi %s1520_s14, %s2047_s14   ;;  %s1424_s13 = sphi %s1518_s13, %s2046_s13   ;;  %s1420_s12 = sphi %s1516_s12, %s2045_s12   ;;  %s1416_s4 = sphi %s1514_s4, %s2044_s4   ;;  %s1412_s11 = sphi %s1512_s11, %s2043_s11   ;;  %s1408_s10 = sphi %s1510_s10, %s2042_s10   ;;  %s1404_s9 = sphi %s1508_s9, %s2041_s9   ;;  %s1400_s30 = sphi %s1506_s30, %s2040_s30   ;;  %s1396_s29 = sphi %s1504_s29, %s2038_s29  }
  0x17   : > { %1987 = sst [smem:[#allocation25_spill]] %s1400_s30  ;;  %s868_s18 = sadd.s32 4294967294, %s1436_s16  }
  0x18   : > { %1988 = sst [smem:[#allocation26_spill]] %s1408_s10  ;;  %p67_p0 = scmp.ne.s32.totalorder %s1412_s11, %s1408_s10 }
  0x19   : > { %1989 = sst [smem:[#allocation27_spill]] %s1420_s12  ;;  %p1563_p1 = scmp.eq.s32.totalorder %s867_s17, 0 }
  0x1a   : > { %1990 = sst [smem:[#allocation28_spill]] %s1424_s13  ;;  %p1567_p2 = scmp.eq.s32.totalorder %s867_s17, 3 }
  0x1b   : > { %s1991_s19 = scalar_select %p1563_p1, 1, 0 }
  0x1c   : > { %s1993_s20 = scalar_select %p1567_p2, 1, 0 }
  0x1d   : > { %1992 = sst [smem:[#allocation29_spill]] %s1991_s19  ;;  %p225_p3 = scmp.eq.s32.totalorder %s868_s18, 3 }
  0x1e   : > { %p1573_p4 = por %p1563_p1, %p67_p0  ;;  %p244_p5 = scmp.ne.s32.totalorder %s1404_s9, %s1400_s30 }
  0x1f   : > { %p1579_p6 = por %p225_p3, %p67_p0  ;;  %p250_p7 = scmp.ne.s32.totalorder %s1400_s30, %s1396_s29 }
  0x20   : > { %s1994_s21 = scalar_select %p1573_p4, 1, 0 }
  0x21   : > { %s1996_s22 = scalar_select %p1579_p6, 1, 0 }
  0x22   : > { %1995 = sst [smem:[#allocation30_spill]] %s1994_s21  ;;  %p1587_p8 = por %p244_p5, %p1567_p2 }
  0x23   : > { %1997 = sst [smem:[#allocation31_spill]] %s1996_s22  ;;  %p869_p9 = scmp.ge.s32.totalorder %s1436_s16, 1 }
  0x24   : > { %s1998_s23 = scalar_select %p1587_p8, 1, 0 }
  0x25   : > { %p1592_p10 = por %p250_p7, %p225_p3  ;;  %p258_p11 = scmp.lt.s32.totalorder %s1436_s16, 5 }
  0x26   : > { %1999 = sst [smem:[#allocation32_spill]] %s1998_s23  ;;  %s1438_s26 = smov [#allocation7]  }
  0x27   : > { %s2000_s24 = scalar_select %p1592_p10, 1, 0 }
  0x28   : > { %p1597_p12 = pnand %p869_p9, %p258_p11  ;;  %s270_s27 = sshll.u32 %s1438_s26, 4  ;;  %s271_s27 = int_to_ptr.vmem [resolvable:$true] %s270_s27 }
  0x29   : > { %2001 = sst [smem:[#allocation33_spill]] %s2000_s24  ;;  %s1439_s17 = smov [#allocation10]  }
  0x2a   : > { %s2002_s25 = scalar_select %p1597_p12, 1, 0 }
  0x2b   : > { %p951_p13 = pneg %p1597_p12  ;;  %s296_s18 = sshll.u32 %s1439_s17, 4  ;;  %s297_s18 = int_to_ptr.vmem [resolvable:$true] %s296_s18 }
  0x2c   : > { %s2004_s1 = sld [smem:[#allocation34_spill]] }
  0x2d   : > { %p1605_p0 = pnand %p951_p13, %p1563_p1 }
  0x2f   : > { %p1617_p5 = pneg %p1605_p0 }
  0x32   : > { %s1100_s22 = scalar_lea.hbm %s2004_s1, 256 }
  0x33   : > { %p1101_p3 = scmp.ne.s32.totalorder %s2004_s1, %s1100_s22  ;;  %p1107_p11 = scmp.lt.u32.totalorder %s1100_s22, %s2004_s1 }
  0x35   : > { %p1103_p7 = pnand %p1617_p5, %p1101_p3 }
  0x37   : > { %p1104_p9 = pneg %p1103_p7 }
  0x39   : > { %p1109_p13 = pnand %p1107_p11, %p1104_p9 }
  0x3b   : > { %1112 = shalt.err (!%p1109_p13)
}
  0x3c   : > { %s1113_s29 = scalar_lea.vmem %s271_s27, 256  ;;  %p1121_p1 = scmp.lt.s32.totalorder %s271_s27, %s271_s27 }
  0x3d   : > { %p1114_p10 = scmp.ne.s32.totalorder %s271_s27, %s1113_s29  ;;  %p1122_p4 = scmp.lt.s32.totalorder %s1113_s29, %s1113_s29 }
  0x3f   : > { %p1116_p6 = pnand %p1114_p10, %p1617_p5  ;;  %p1123_p12 = por %p1122_p4, %p1121_p1 }
  0x41   : > { %p1117_p8 = pneg %p1116_p6 }
  0x43   : > { %p1124_p2 = pnand %p1123_p12, %p1117_p8 }
  0x45   : > { %1127 = shalt.err (!%p1124_p2)
}
  0x46   : > { %s1974_s8 = smov 64   ;;  %s1976_s10 = smov 4  }
  0x47   : > { %954 = dma.hbm_to_vmem [thread:$0]  (!%p1605_p0), %s2004_s1, 256, %s271_s27, [#allocation8], %s1974_s8, %s1974_s8, %s1976_s10  }
  0x48   : > { %s1442_s23 = smov [#allocation9]   ;;  %s2006_s3 = sld [smem:[#allocation36_spill]] }
  0x49   : > { %s283_s24 = sshll.u32 %s1442_s23, 4  ;;  %s284_s24 = int_to_ptr.vmem [resolvable:$true] %s283_s24 }
  0x4e   : > { %s1128_s13 = scalar_lea.hbm %s2006_s3, 256 }
  0x4f   : > { %p1129_p1 = scmp.ne.s32.totalorder %s2006_s3, %s1128_s13  ;;  %p1135_p6 = scmp.lt.u32.totalorder %s1128_s13, %s2006_s3 }
  0x51   : > { %p1131_p2 = pnand %p1129_p1, %p1617_p5 }
  0x53   : > { %p1132_p4 = pneg %p1131_p2 }
  0x55   : > { %p1137_p8 = pnand %p1135_p6, %p1132_p4 }
  0x57   : > { %1140 = shalt.err (!%p1137_p8)
}
  0x58   : > { %s1141_s27 = scalar_lea.vmem %s297_s18, 256  ;;  %p1149_p7 = scmp.lt.s32.totalorder %s297_s18, %s297_s18 }
  0x59   : > { %p1142_p10 = scmp.ne.s32.totalorder %s297_s18, %s1141_s27  ;;  %p1150_p9 = scmp.lt.s32.totalorder %s1141_s27, %s1141_s27 }
  0x5b   : > { %p1144_p12 = pnand %p1142_p10, %p1617_p5  ;;  %p1151_p11 = por %p1150_p9, %p1149_p7 }
  0x5d   : > { %p1145_p3 = pneg %p1144_p12 }
  0x5f   : > { %p1152_p13 = pnand %p1151_p11, %p1145_p3 }
  0x61   : > { %1155 = shalt.err (!%p1152_p13)
}
  0x62   : > { %s1978_s30 = smov 128   ;;  %s1444_s12 = smov 8  }
  0x63   : > { %960 = dma.hbm_to_vmem [thread:$0]  (!%p1605_p0), %s2006_s3, 256, %s297_s18, [#allocation11], %s1978_s30, %s1978_s30, %s1444_s12  }
  0x64   : > { %s2007_s2 = sld [smem:[#allocation35_spill]] }
  0x6a   : > { %s1156_s22 = scalar_lea.hbm %s2007_s2, 512 }
  0x6b   : > { %p1157_p1 = scmp.ne.s32.totalorder %s2007_s2, %s1156_s22  ;;  %p1163_p6 = scmp.lt.u32.totalorder %s1156_s22, %s2007_s2 }
  0x6d   : > { %p1159_p2 = pnand %p1157_p1, %p1617_p5 }
  0x6f   : > { %p1160_p4 = pneg %p1159_p2 }
  0x71   : > { %p1165_p8 = pnand %p1163_p6, %p1160_p4 }
  0x73   : > { %1168 = shalt.err (!%p1165_p8)
}
  0x74   : > { %s1169_s13 = scalar_lea.vmem %s284_s24, 512  ;;  %p1177_p7 = scmp.lt.s32.totalorder %s284_s24, %s284_s24 }
  0x75   : > { %p1170_p10 = scmp.ne.s32.totalorder %s284_s24, %s1169_s13  ;;  %p1178_p9 = scmp.lt.s32.totalorder %s1169_s13, %s1169_s13 }
  0x77   : > { %p1172_p12 = pnand %p1170_p10, %p1617_p5  ;;  %p1179_p11 = por %p1178_p9, %p1177_p7 }
  0x79   : > { %p1173_p3 = pneg %p1172_p12 }
  0x7b   : > { %p1180_p13 = pnand %p1179_p11, %p1173_p3 }
  0x7d   : > { %1183 = shalt.err (!%p1180_p13)
}
  0x7e   : > { %957 = dma.hbm_to_vmem [thread:$0]  (!%p1605_p0), %s2007_s2, 512, %s284_s24, [#allocation8], %s1978_s30, %s1978_s30, %s1444_s12  }
  0x7f   : > { %s1445_s21 = smov [#allocation12]   ;;  %s1446_s22 = smov [#allocation13]  }
  0x80   : > { %s312_s7 = sshll.u32 %s1445_s21, 4  ;;  %s325_s23 = sshll.u32 %s1446_s22, 4  ;;  %s313_s7 = int_to_ptr.vmem [resolvable:$true] %s312_s7  ;;  %s326_s23 = int_to_ptr.vmem [resolvable:$true] %s325_s23 }
  0x81   : > { %s2008_s5 = sld [smem:[#allocation37_spill]] }
  0x87   : > { %s1184_s27 = scalar_lea.hbm %s2008_s5, 128 }
  0x88   : > { %p1185_p1 = scmp.ne.s32.totalorder %s2008_s5, %s1184_s27  ;;  %p1191_p6 = scmp.lt.u32.totalorder %s1184_s27, %s2008_s5 }
  0x8a   : > { %p1187_p2 = pnand %p1185_p1, %p1617_p5 }
  0x8c   : > { %p1188_p4 = pneg %p1187_p2 }
  0x8e   : > { %p1193_p8 = pnand %p1191_p6, %p1188_p4 }
  0x90   : > { %1196 = shalt.err (!%p1193_p8)
}
  0x91   : > { %s1197_s24 = scalar_lea.vmem %s313_s7, 128  ;;  %p1205_p7 = scmp.lt.s32.totalorder %s313_s7, %s313_s7 }
  0x92   : > { %p1198_p10 = scmp.ne.s32.totalorder %s313_s7, %s1197_s24  ;;  %p1206_p9 = scmp.lt.s32.totalorder %s1197_s24, %s1197_s24 }
  0x94   : > { %p1200_p12 = pnand %p1198_p10, %p1617_p5  ;;  %p1207_p11 = por %p1206_p9, %p1205_p7 }
  0x96   : > { %p1201_p3 = pneg %p1200_p12 }
  0x98   : > { %p1208_p13 = pnand %p1207_p11, %p1201_p3 }
  0x9a   : > { %1211 = shalt.err (!%p1208_p13)
}
  0x9b   : > { %s2009_s8 = smov 4   ;;  %s2010_s19 = smov 64  }
  0x9c   : > { %963 = dma.hbm_to_vmem [thread:$0]  (!%p1605_p0), %s2008_s5, 128, %s313_s7, [#allocation11], %s2010_s19, %s2010_s19, %s2009_s8  }
  0x9d   : > { %s2011_s6 = sld [smem:[#allocation38_spill]] }
  0xa3   : > { %s1212_s29 = scalar_lea.hbm %s2011_s6, 256 }
  0xa4   : > { %p1213_p1 = scmp.ne.s32.totalorder %s2011_s6, %s1212_s29  ;;  %p1219_p6 = scmp.lt.u32.totalorder %s1212_s29, %s2011_s6 }
  0xa6   : > { %p1215_p2 = pnand %p1213_p1, %p1617_p5 }
  0xa8   : > { %p1216_p4 = pneg %p1215_p2 }
  0xaa   : > { %p1221_p8 = pnand %p1219_p6, %p1216_p4 }
  0xac   : > { %1224 = shalt.err (!%p1221_p8)
}
  0xad   : > { %s1225_s10 = scalar_lea.vmem %s326_s23, 256  ;;  %p1233_p7 = scmp.lt.s32.totalorder %s326_s23, %s326_s23 }
  0xae   : > { %p1226_p10 = scmp.ne.s32.totalorder %s326_s23, %s1225_s10  ;;  %p1234_p9 = scmp.lt.s32.totalorder %s1225_s10, %s1225_s10 }
  0xb0   : > { %p1228_p12 = pnand %p1226_p10, %p1617_p5  ;;  %p1235_p11 = por %p1234_p9, %p1233_p7 }
  0xb2   : > { %p1229_p3 = pneg %p1228_p12 }
  0xb4   : > { %p1236_p13 = pnand %p1235_p11, %p1229_p3 }
  0xb6   : > { %1239 = shalt.err (!%p1236_p13)
}
  0xb7   : > { %966 = dma.hbm_to_vmem [thread:$0]  (!%p1605_p0), %s2011_s6, 256, %s326_s23, [#allocation14], %s1978_s30, %s1978_s30, %s1444_s12  }
  0xb8   : > { %s42_s28 = sadd.s32 1, %s1428_s14  ;;  %s45_s26 = sadd.s32 1, %s1432_s15 }
  0xb9   : > { %p43_p5 = scmp.ge.s32.totalorder %s42_s28, 2  ;;  %s54_s22 = sadd.s32 1, %s1416_s4 }
  0xba   : > { %p61_p1 = scmp.ne.s32.totalorder %s1416_s4, %s1412_s11  ;;  %p62_p2 = scmp.eq.s32.totalorder %s1436_s16, 0 }
  0xbb   : > { %s2050_s28 = smov (%p43_p5, %s42_s28), 0  ;;  %s2052_s26 = smov (!%p43_p5, %s45_s26), %s1432_s15 }
  0xbc   : > { %s50_s17 = ssub.s32 %s1428_s14, %s2050_s28  ;;  %p47_p4 = scmp.ge.s32.totalorder %s2052_s26, 2 }
  0xbd   : > { %p2012_p6 = scmp.ne.s32.totalorder %s1993_s20, 0  ;;  %p1737_p8 = por %p62_p2, %p61_p1 }
  0xbe   : > { %s234_s29 = sadd.s32 1, %s1404_s9  ;;  %s2054_s26 = smov (%p47_p4, %s2052_s26), 0 }
  0xbf   : > { %p1733_p0 = por %p2012_p6, %p61_p1  ;;  %p983_p10 = scmp.lt.s32.totalorder %s1436_s16, 4 }
  0xc0   : > { %s339_s27 = sand.u32 1, %s1416_s4   ;;  %s49_s13 = ssub.s32 %s1432_s15, %s2054_s26 }
  0xc1   : > { %s51_s18 = sor.u32 %s50_s17, %s49_s13  ;;  %p232_p12 = scmp.eq.s32.totalorder %s49_s13, 0 }
  0xc2   : > { %p52_p3 = scmp.eq.s32.totalorder %s51_s18, 0  ;;  %s876_s20 = sshll.u32 %s339_s27, 4 }
  0xc3   : > { %s1749_s24 = scalar_select %p232_p12, %s1404_s9, %s234_s29  }
  0xc4   : > { %s1752_s10 = scalar_select %p52_p3, %s1416_s4, %s54_s22  }
  0xc5   : > { %s877_s7 = sshll.u32 %s1432_s15, 3  ;;  %s343_s30 = scalar_lea.vmem [#allocation4], %s876_s20 }
  0xc6   : > { %s348_s21 = sadd.s32 %s1428_s14, %s877_s7  ;;  %s351_s1 = sshll.u32 %s343_s30, 4  ;;  %s1756_s1 = int_to_ptr.vmem [resolvable:$true] %s351_s1 }
  0xc7   : > { %s878_s2 = sshll.u32 %s348_s21, 6  ;;  %p1767_p7 = pnand %p983_p10, %p1737_p8 }
  0xc8   : > { %s1761_s6 = scalar_lea.hbm %s1944_s0, %s878_s2  ;;  %s1771_s30 = scalar_lea.sflag [#allocation5], %s339_s27 }
  0xc9   : > { %s1240_s17 = scalar_lea.hbm %s1761_s6, 256  ;;  %p1242_p11 = pneg %p1767_p7 }
  0xca   : > { %p1241_p9 = scmp.ne.s32.totalorder %s1761_s6, %s1240_s17  ;;  %s1245_s5 = scalar_lea.hbm %s1944_s0, 1024 }
  0xcb   : > { %p1246_p1 = scmp.lt.u32.totalorder %s1761_s6, %s1944_s0  ;;  %p1247_p2 = scmp.lt.u32.totalorder %s1245_s5, %s1240_s17 }
  0xcc   : > { %p1243_p13 = pnand %p1242_p11, %p1241_p9  ;;  %p1249_p6 = scmp.lt.u32.totalorder %s1240_s17, %s1761_s6 }
  0xcd   : > { %p1248_p4 = por %p1247_p2, %p1246_p1 }
  0xce   : > { %p1244_p5 = pneg %p1243_p13 }
  0xcf   : > { %p1250_p8 = por %p1249_p6, %p1248_p4 }
  0xd1   : > { %p1251_p10 = pnand %p1250_p8, %p1244_p5 }
  0xd3   : > { %1254 = shalt.err (!%p1251_p10)
}
  0xd4   : > { %s1255_s27 = scalar_lea.vmem %s1756_s1, 256  ;;  %s1447_s13 = smov [#allocation4]  }
  0xd5   : > { %p1256_p12 = scmp.ne.s32.totalorder %s1756_s1, %s1255_s27  ;;  %s1260_s18 = sshll.u32 %s1447_s13, 4  ;;  %s1261_s18 = int_to_ptr.vmem [resolvable:$false] %s1260_s18 }
  0xd6   : > { %s1262_s20 = scalar_lea.vmem %s1261_s18, 512  ;;  %p1263_p13 = scmp.lt.s32.totalorder %s1756_s1, %s1261_s18 }
  0xd7   : > { %p1258_p3 = pnand %p1256_p12, %p1242_p11  ;;  %p1264_p1 = scmp.lt.s32.totalorder %s1262_s20, %s1255_s27 }
  0xd9   : > { %p1259_p9 = pneg %p1258_p3  ;;  %p1265_p2 = por %p1264_p1, %p1263_p13 }
  0xdb   : > { %p1266_p4 = pnand %p1265_p2, %p1259_p9 }
  0xdd   : > { %1269 = shalt.err (!%p1266_p4)
}
  0xde   : > { %s2016_s7 = smov 128   ;;  %p2017_p11 = scmp.ne.s32.totalorder %s2002_s25, 0 }
  0xdf   : > { %970 = dma.hbm_to_vmem [thread:$0]  (!%p1767_p7), %s1761_s6, 256, %s1756_s1, %s1771_s30, %s2016_s7, %s2010_s19, %s2009_s8  }
  0xe0   : > { %363 = sbr.rel (%p2017_p11) target bundleno = 921 (0x399), region = 48  ;;  %s2018_s21 = sld [smem:[#allocation30_spill]] (!%p2017_p11) }
  0xe1   : > { %s1805_s17 = sand.u32 (!%p2017_p11), 1, %s1412_s11  }
  0xe2   : > { %s880_s2 = sshll.u32 (!%p2017_p11), %s1805_s17, 4  ;;  %s366_s3 = scalar_lea.sflag (!%p2017_p11), [#allocation5], %s1805_s17 }
  0xe3   : > { %s369_s5 = scalar_lea.vmem (!%p2017_p11), [#allocation4], %s880_s2 }
  0xe6   : > { %p2019_p5 = scmp.ne.s32.totalorder (!%p2017_p11), %s2018_s21, 0 }
  0xe8   : > { %1371 = dma.done.wait (%p2019_p5), %s366_s3, 256  }
  0xe9   : > { %1373 = vsyncadd (%p2019_p5), %s366_s3, 4294967040  ;;  %s2020_s22 = sld [smem:[#allocation29_spill]] }
  0xef   : > { %p2021_p6 = scmp.ne.s32.totalorder %s2020_s22, 0 }
  0xf1   : > { %1375 = dma.done.wait (%p2021_p6), [#allocation8], 768  }
  0xf2   : > { %1377 = vsyncadd (%p2021_p6), [#allocation8], 4294966528 }
  0xf3   : > { %1379 = dma.done.wait (%p2021_p6), [#allocation11], 384  }
  0xf4   : > { %1381 = vsyncadd (%p2021_p6), [#allocation11], 4294966912 }
  0xf5   : > { %1383 = dma.done.wait (%p2021_p6), [#allocation14], 256  }
  0xf6   : > { %1385 = vsyncadd (%p2021_p6), [#allocation14], 4294967040  ;;  %s2022_s1 = sld [smem:[#allocation25_spill]]  ;;  %s418_s8 = scalar_lea.vmem [#allocation15], %s1805_s17 }
  0xf7   : > { %s2023_s30 = sld [smem:[#allocation27_spill]] }
  0xfc   : > { %s423_s6 = sand.u32 1, %s2022_s1  }
  0xfd   : > { %s886_s25 = sshll.u32 %s423_s6, 4  ;;  %p887_p7 = scmp.ne.s32.totalorder %s2023_s30, 0 }
  0xfe   : > { %s1829_s19 = scalar_lea.vmem [#allocation16], %s886_s25  ;;  %vm431_vm0 = vcmask (!%p887_p7), 7168   ;;  %v1448_v1 = vmov (!%p887_p7), 0.0  }
  0xff   : > { %430 = sbr.rel (%p887_p7) target bundleno = 262 (0x106), region = 76  ;;  %432 = vst.msk [vmem:[#allocation2] sm:$0xff] (!%p887_p7), %vm431_vm0, %v1448_v1  ;;  %433 = vst.msk [vmem:[#allocation2 + $0x8] sm:$0xff] (!%p887_p7), %vm431_vm0, %v1448_v1 }
 0x106 PF: > { %v1095_v2 = vld [vmem:[%s369_s5] sm:$0xff]   ;;  %vm488_vm1 = vcmask 261120   ;;  %v1096_v3 = vld [vmem:[%s369_s5 + $0x8] sm:$0xff]   ;;  %v1449_v5 = vmov 0   ;;  %v1450_v15 = vmov 0.0   ;;  %vm1451_vm2 = vmmov 0  }
 0x107   : > { %911 = vmatprep.subr.bf16.mxu0 %v1095_v2  ;;  %v1097_v4 = vld [vmem:[#allocation7] sm:$0xff]   ;;  %1093 = vset.pattern.permute.xlu0 %v1449_v5  ;;  %v585_v7 = vld [vmem:[#allocation13] sm:$0xff]  ;;  %v586_v10 = vld [vmem:[#allocation13 + $0x8] sm:$0xff]  ;;  %vm602_vm3 = vcmask 130048   ;;  %v575_v53 = vlaneseq  ;;  %vm657_vm4 = vcmask 7168   ;;  %s2024_s23 = sld [smem:[#allocation27_spill]] }
 0x108   : > { %912 = vmatpush3.bf16.msra.mxu0 %v1095_v2  ;;  %1094 = vset.pattern.permute.xlu1 %v1449_v5  ;;  %v444_v6 = vld [vmem:[#allocation9 + $0x10] sm:$0xff]  ;;  %v1098_v8 = vld [vmem:[#allocation7 + $0x8] sm:$0xff]   ;;  %v442_v11 = vld [vmem:[#allocation9] sm:$0xff] }
 0x109   : > { %913 = vmatprep.subr.bf16.mxu0 %v1096_v3  ;;  %915 = vmatprep.mubr.msk.bf16.mxu0 %vm488_vm1, %v1097_v4  ;;  %v445_v9 = vld [vmem:[#allocation9 + $0x18] sm:$0xff]  ;;  %v443_v12 = vld [vmem:[#allocation9 + $0x8] sm:$0xff]  ;;  %v548_v13 = vld [vmem:[#allocation10] sm:$0xff]  ;;  %v576_v58 = vshrl.u32 %v575_v53, 7 }
 0x10a   : > { %458 = vperm.xlu0 %1093, %v444_v6   ;;  %589 = vperm.xlu1 %1094, %v585_v7   ;;  %v549_v14 = vld [vmem:[#allocation10 + $0x8] sm:$0xff]  ;;  %v1099_v39 = vld [vmem:[#allocation12] sm:$0xff]   ;;  %v649_v54 = vld [vmem:[#allocation2] sm:$0xff] }
 0x10b   : > { %919 = vmatprep.subr.bf16.mxu1 %v1450_v15  ;;  %921 = vmatprep.mubr.msk.bf16.mxu1 %vm1451_vm2, %v1450_v15  ;;  %v569_v49 = vld [vmem:[#allocation3] sm:$0x1]  ;;  %v650_v56 = vld [vmem:[#allocation2 + $0x8] sm:$0xff]  ;;  %v577_v62 = vsub.s32 0, %v576_v58 }
 0x10c   : > { %914 = vmatpush3.bf16.msra.mxu0 %v1096_v3 }
 0x10d   : > { %p896_p8 = scmp.ne.s32.totalorder %s2024_s23, 1 }
 0x10e   : > { %463 = vperm.xlu0 %1093, %v445_v9   ;;  %594 = vperm.xlu1 %1094, %v586_v10  }
 0x10f   : > { %916 = vmatmul.mubr.msk.bf16.vlgmr.msra.gmra.mrb[0].mxu0 %vm488_vm1, %v1098_v8 }
 0x112   : > { %448 = vperm.xlu0 %1093, %v442_v11   ;;  %453 = vperm.xlu1 %1094, %v443_v12  }
 0x116   : > { %552 = vperm.xlu0 %1093, %v548_v13   ;;  %557 = vperm.xlu1 %1094, %v549_v14  }
 0x189   : > { %v590_v16 = vpop.permute.xlu1 %589  ;;  %v459_v17 = vpop.permute.xlu0 %458 }
 0x18d   : > { %v595_v18 = vpop.permute.xlu1 %594  ;;  %v464_v19 = vpop.permute.xlu0 %463 }
 0x191   : > { %v454_v20 = vpop.permute.xlu1 %453  ;;  %v449_v22 = vpop.permute.xlu0 %448 }
 0x195   : > { %v558_v33 = vpop.permute.xlu1 %557  ;;  %v553_v35 = vpop.permute.xlu0 %552 }
 0x1e2   : > { %v917_v21 = vpop.f32.mrb[0].mxu0 }
 0x1e3   : > { %v538_v23 = vadd.f32 %v917_v21, %v459_v17  ;;  %v529_v24 = vpop.f32.mrb[1].mxu0 }
 0x1e4   : > { %v530_v25 = vadd.f32 %v529_v24, %v449_v22  ;;  %v918_v26 = vpop.f32.mrb[2].mxu0 }
 0x1e5   : > { %v541_v27 = vadd.f32 %v918_v26, %v464_v19  ;;  %v532_v28 = vpop.f32.mrb[3].mxu0  ;;  %v546_v31 = vmax.f32 %v538_v23, 0.0 }
 0x1e6   : > { %v544_v29 = vmax.f32 %v530_v25, 0.0  ;;  %v533_v30 = vadd.f32 %v532_v28, %v454_v20 }
 0x1e7   : > { %v547_v32 = vmax.f32 %v541_v27, 0.0 }
 0x1e8   : > { %v545_v34 = vmax.f32 %v533_v30, 0.0  ;;  %v560_v37 = vmul.f32 %v553_v35, %v544_v29 }
 0x1e9   : > { %v584_v36 = vpack.c.bf16 %v547_v32, %v546_v31 }
 0x1ea   : > { %v561_v38 = vmul.f32 %v558_v33, %v545_v34 }
 0x1eb   : > { %920 = vmatpush3.bf16.msra.mxu1 %v584_v36 }
 0x1ec   : > { %v562_v40 = vadd.f32 %v561_v38, %v560_v37 }
 0x1ee   : > { %922 = vmatmul.mubr.msk.bf16.vlgmr.msra.gmra.mrb[0].mxu1 %vm602_vm3, %v1099_v39  ;;  %v563_v50 = vrot.slane %v562_v40, 4 }
 0x1f0   : > { %v564_v51 = vadd.f32 %v563_v50, %v562_v40 }
 0x1f2   : > { %v565_v52 = vrot.slane %v564_v51, 2 }
 0x1f4   : > { %v566_v59 = vadd.f32 %v565_v52, %v564_v51 }
 0x1f6   : > { %v567_v63 = vrot.slane %v566_v59, 1 }
 0x1f8   : > { %v568_v1 = vadd.f32 %v567_v63, %v566_v59 }
 0x2c1   : > { %v640_v41 = vpop.f32.mrb[0].mxu1 }
 0x2c2   : > { %v641_v42 = vadd.f32 %v640_v41, %v590_v16  ;;  %v923_v43 = vpop.f32.mrb[1].mxu1 }
 0x2c3   : > { %v643_v44 = vpop.f32.mrb[2].mxu1 }
 0x2c4   : > { %v647_v45 = vmax.f32 %v641_v42, 0.0  ;;  %v644_v46 = vadd.f32 %v643_v44, %v595_v18  ;;  %v924_v47 = vpop.f32.mrb[3].mxu1 }
 0x2c6   : > { %v648_v48 = vmax.f32 %v644_v46, 0.0  ;;  %651 = vadd.xlane.f32.xlu0 %v647_v45 }
 0x2c8   : > { %653 = vadd.xlane.f32.xlu1 %v648_v48 }
 0x2dc   : > { %572 = vperm.xlu0 %1093, %v569_v49  }
 0x353   : > { %v652_v55 = vpop.xlane.xlu0 %651 }
 0x354   : > { %v655_v57 = vadd.f32 %v652_v55, %v649_v54 }
 0x355   : > { %v654_v60 = vpop.xlane.xlu1 %653 }
 0x356   : > { %658 = vst.msk [vmem:[#allocation2] sm:$0xff] %vm657_vm4, %v655_v57  ;;  %v656_v61 = vadd.f32 %v654_v60, %v650_v56 }
 0x358   : > { %659 = vst.msk [vmem:[#allocation2 + $0x8] sm:$0xff] %vm657_vm4, %v656_v61 }
 0x35b   : > { %v573_v0 = vpop.permute.xlu0 %572 }
 0x35c   : > { %v578_v2 = vrot.slane %v573_v0, %v577_v62  ;;  %663 = sbr.rel (%p896_p8) target bundleno = 867 (0x363), region = 80 }
 0x35d   : > { %v664_v5 = vld [vmem:[#allocation2] sm:$0xff] (!%p896_p8) }
 0x35e   : > { %v579_v3 = vadd.f32 %v578_v2, %v568_v1  ;;  %v666_v7 = vmul.f32 (!%p896_p8), 0.00390625, %v664_v5 }
 0x35f   : > { %v665_v6 = vld [vmem:[#allocation2 + $0x8] sm:$0xff] (!%p896_p8) }
 0x360   : > { %v580_v4 = vmax.f32 %v579_v3, 0.0  ;;  %v667_v8 = vmul.f32 (!%p896_p8), 0.00390625, %v665_v6  ;;  %668 = vst.msk [vmem:[%s1829_s19] sm:$0xff] (!%p896_p8), %vm657_vm4, %v666_v7 }
 0x362   : > { %581 = vst [vmem:[%s418_s8] sm:$0x1] %v580_v4  ;;  %669 = vst.msk [vmem:[%s1829_s19 + $0x8] sm:$0xff] (!%p896_p8), %vm657_vm4, %v667_v8 }
 0x363 PF: > { %s2025_s29 = sld [smem:[#allocation28_spill]]  ;;  %s2026_s27 = sld [smem:[#allocation27_spill]] }
 0x364   : > { %s690_s20 = sshll.u32 %s418_s8, 4  ;;  %s2027_s3 = sld [smem:[#allocation39_spill]]  ;;  %s1847_s20 = int_to_ptr.vmem [resolvable:$true] %s690_s20 }
 0x365   : > { %s671_s22 = scalar_lea.sflag [#allocation6], %s1805_s17  ;;  %s1270_s1 = scalar_lea.vmem %s1847_s20, 16 }
 0x366   : > { %p1271_p10 = scmp.ne.s32.totalorder %s1847_s20, %s1270_s1  ;;  %s1452_s25 = smov [#allocation15]  }
 0x367   : > { %s1274_s30 = sshll.u32 %s1452_s25, 4  ;;  %s1275_s30 = int_to_ptr.vmem [resolvable:$false] %s1274_s30 }
 0x368   : > { %p1272_p12 = pnand %p1271_p10, %p1733_p0  ;;  %s1276_s8 = scalar_lea.vmem %s1275_s30, 32 }
 0x369   : > { %s898_s13 = sshll.u32 %s2025_s29, 1  ;;  %p1277_p9 = scmp.lt.s32.totalorder %s1847_s20, %s1275_s30 }
 0x36a   : > { %s686_s18 = sadd.s32 %s2026_s27, %s898_s13  ;;  %p1273_p3 = pneg %p1272_p12 }
 0x36b   : > { %s899_s7 = sshll.u32 %s686_s18, 4  ;;  %p1278_p13 = scmp.lt.s32.totalorder %s1276_s8, %s1270_s1 }
 0x36c   : > { %s688_s5 = scalar_lea.hbm %s2027_s3, %s899_s7 }
 0x36d   : > { %p1279_p1 = por %p1278_p13, %p1277_p9 }
 0x36f   : > { %p1280_p2 = pnand %p1279_p1, %p1273_p3 }
 0x371   : > { %1283 = shalt.err (!%p1280_p2)
}
 0x372   : > { %s1284_s23 = scalar_lea.hbm %s688_s5, 16  ;;  %s1288_s13 = scalar_lea.hbm %s2027_s3, 64 }
 0x373   : > { %p1285_p4 = scmp.ne.s32.totalorder %s688_s5, %s1284_s23  ;;  %p1289_p6 = scmp.lt.u32.totalorder %s688_s5, %s2027_s3 }
 0x374   : > { %p1290_p7 = scmp.lt.u32.totalorder %s1288_s13, %s1284_s23  ;;  %p1292_p10 = scmp.lt.u32.totalorder %s1284_s23, %s688_s5 }
 0x375   : > { %p1286_p11 = pnand %p1285_p4, %p1733_p0 }
 0x376   : > { %p1291_p8 = por %p1290_p7, %p1289_p6 }
 0x377   : > { %p1287_p5 = pneg %p1286_p11 }
 0x378   : > { %p1293_p12 = por %p1292_p10, %p1291_p8 }
 0x37a   : > { %p1294_p3 = pnand %p1293_p12, %p1287_p5 }
 0x37c   : > { %1297 = shalt.err (!%p1294_p3)
}
 0x37d   : > { %s2029_s2 = sld [smem:[#allocation32_spill]]  ;;  %s904_s1 = sshll.u32 %s2025_s29, 8 }
 0x37e   : > { %947 = dma.vmem_to_hbm [thread:$0]  (%p1733_p0), %s1847_s20, 16, %s688_s5, %s671_s22  }
 0x37f   : > { %s703_s25 = sshll.u32 %s1829_s19, 4  ;;  %s2030_s17 = sld [smem:[#allocation40_spill]]  ;;  %s1876_s25 = int_to_ptr.vmem [resolvable:$true] %s703_s25 }
 0x380   : > { %s1880_s12 = scalar_lea.sflag [#allocation17], %s423_s6  ;;  %s1298_s23 = scalar_lea.vmem %s1876_s25, 256 }
 0x381   : > { %p1299_p9 = scmp.ne.s32.totalorder %s1876_s25, %s1298_s23  ;;  %s1453_s29 = smov [#allocation16]  }
 0x382   : > { %s1302_s19 = sshll.u32 %s1453_s29, 4  ;;  %s1303_s19 = int_to_ptr.vmem [resolvable:$false] %s1302_s19 }
 0x383   : > { %p2031_p13 = scmp.ne.s32.totalorder %s2029_s2, 0  ;;  %s1304_s20 = scalar_lea.vmem %s1303_s19, 512 }
 0x384   : > { %p1305_p2 = scmp.lt.s32.totalorder %s1876_s25, %s1303_s19  ;;  %p1306_p4 = scmp.lt.s32.totalorder %s1304_s20, %s1298_s23 }
 0x385   : > { %s1874_s27 = scalar_lea.hbm %s2030_s17, %s904_s1  ;;  %p1300_p1 = pnand %p1299_p9, %p2031_p13 }
 0x386   : > { %p1307_p11 = por %p1306_p4, %p1305_p2 }
 0x387   : > { %p1301_p0 = pneg %p1300_p1 }
 0x389   : > { %p1308_p5 = pnand %p1307_p11, %p1301_p0 }
 0x38b   : > { %1311 = shalt.err (!%p1308_p5)
}
 0x38c   : > { %s1312_s6 = scalar_lea.hbm %s1874_s27, 256  ;;  %s1316_s13 = scalar_lea.hbm %s2030_s17, 512 }
 0x38d   : > { %p1313_p6 = scmp.ne.s32.totalorder %s1874_s27, %s1312_s6  ;;  %p1317_p10 = scmp.lt.u32.totalorder %s1874_s27, %s2030_s17 }
 0x38e   : > { %p1318_p12 = scmp.lt.u32.totalorder %s1316_s13, %s1312_s6  ;;  %p1320_p9 = scmp.lt.u32.totalorder %s1312_s6, %s1874_s27 }
 0x38f   : > { %p1314_p7 = pnand %p1313_p6, %p2031_p13 }
 0x390   : > { %p1319_p3 = por %p1318_p12, %p1317_p10 }
 0x391   : > { %p1315_p8 = pneg %p1314_p7 }
 0x392   : > { %p1321_p1 = por %p1320_p9, %p1319_p3 }
 0x394   : > { %p1322_p0 = pnand %p1321_p1, %p1315_p8 }
 0x396   : > { %1325 = shalt.err (!%p1322_p0)
}
 0x397   : > { %s1454_s21 = smov 128   ;;  %s1455_s1 = smov 8  }
 0x398   : > { %948 = dma.vmem_to_hbm [thread:$0]  (%p2031_p13), %s1876_s25, 256, %s1874_s27, %s1880_s12, %s1454_s21, %s1454_s21, %s1455_s1  }
 0x399 PF: > { %s2032_s30 = sld [smem:[#allocation26_spill]]  ;;  %s2033_s8 = sld [smem:[#allocation31_spill]] }
 0x39a   : > { %p989_p2 = scmp.ge.s32.totalorder %s1436_s16, 2 }
 0x39f   : > { %s718_s23 = sand.u32 1, %s2032_s30   ;;  %p2034_p4 = scmp.ne.s32.totalorder %s2033_s8, 0 }
 0x3a0   : > { %s719_s29 = scalar_lea.sflag [#allocation6], %s718_s23 }
 0x3a1   : > { %p972_p11 = pnand %p989_p2, %p2034_p4 }
 0x3a3   : > { %1387 = dma.done.wait (!%p972_p11), %s719_s29, 16  }
 0x3a4   : > { %1389 = vsyncadd (!%p972_p11), %s719_s29, 4294967280  ;;  %s2035_s19 = sld [smem:[#allocation24_spill]] }
 0x3a5   : > { %s2036_s20 = sld [smem:[#allocation33_spill]] }
 0x3aa   : > { %s726_s6 = sand.u32 1, %s2035_s19  }
 0x3ab   : > { %p2037_p5 = scmp.ne.s32.totalorder %s2036_s20, 0  ;;  %s727_s5 = scalar_lea.sflag [#allocation17], %s726_s6 }
 0x3ad   : > { %p975_p6 = pnand %p989_p2, %p2037_p5 }
 0x3af   : > { %1391 = dma.done.wait (!%p975_p6), %s727_s5, 256  }
 0x3b0   : > { %1393 = vsyncadd (!%p975_p6), %s727_s5, 4294967040  ;;  %s33_s16 = sadd.s32 1, %s1436_s16   ;;  %s2038_s29 = sld [smem:[#allocation25_spill]] }
 0x3b1   : > { %p30_p13 = scmp.ge.s32.totalorder %s33_s16, 6   ;;  %s2039_s2 = smov %s1752_s10 }
 0x3b2   : > { %s2040_s30 = smov %s1404_s9  ;;  %s2041_s9 = smov %s1749_s24 }
 0x3b3   : > { %s2042_s10 = smov %s1412_s11  ;;  %s2043_s11 = smov %s1416_s4 }
 0x3b4   : > { %s2044_s4 = smov %s2039_s2  ;;  %s2045_s12 = smov %s1428_s14 }
 0x3b5   : > { %s2046_s13 = smov %s1432_s15  ;;  %s2047_s14 = smov %s2050_s28 }
 0x3b6   : > { %s2048_s15 = smov %s2054_s26  ;;  %32 = sbr.rel (!%p30_p13) target bundleno = 22 (0x16), region = 138 }
 0x3bd   :  { %732 = vsyncpa [#allocation5], 1 }
 0x3be   :  { %734 = vsyncpa [#allocation5 + $0x1], 1 }
 0x3bf   :  { %735 = vsyncpa [#allocation8], 1 }
 0x3c0   :  { %736 = vsyncpa [#allocation11], 1 }
 0x3c1   :  { %737 = vsyncpa [#allocation14], 1 }
 0x3c2   :  { %738 = vsyncpa [#allocation6], 1 }
 0x3c3   :  { %740 = vsyncpa [#allocation6 + $0x1], 1 }
 0x3c4   :  { %741 = vsyncpa [#allocation17], 1 }
 0x3c5   :  { %743 = vsyncpa [#allocation17 + $0x1], 1 }

// kernel: _lambda_.4
= control target key start
LH: loop header
LB: loop body
LE: loop exit
PB: predicated region body
PF: predicated region fallthrough
CT: control target
= control target key end

     0   :  { %s2503_s0 = inlined_call_operand.hbm [shape: f32[2,1,256], index: 0, kind: input, shape index: {}]   ;;  %s2504_s1 = inlined_call_operand.hbm [shape: f32[2,16,1], index: 1, kind: input, shape index: {}]   ;;  %s2505_s2 = inlined_call_operand.hbm [shape: bf16[2,32,256], index: 2, kind: input, shape index: {}]   ;;  %s2506_s3 = inlined_call_operand.hbm [shape: bf16[32,32], index: 3, kind: input, shape index: {}]   ;;  %s2507_s4 = inlined_call_operand.hbm [shape: f32[32,1], index: 4, kind: input, shape index: {}]   ;;  %s2508_s5 = inlined_call_operand.hbm [shape: bf16[16,16], index: 5, kind: input, shape index: {}]   ;;  %s2509_s6 = inlined_call_operand.hbm [shape: f32[16,1], index: 6, kind: input, shape index: {}]   ;;  %s2510_s7 = inlined_call_operand.hbm [shape: bf16[16,16], index: 7, kind: input, shape index: {}]   ;;  %s2511_s8 = inlined_call_operand.hbm [shape: f32[16,1], index: 8, kind: input, shape index: {}]   ;;  %s2512_s9 = inlined_call_operand.hbm [shape: f32[2,1,256], index: 9, kind: output, shape index: {0}]   ;;  %s2513_s10 = inlined_call_operand.hbm [shape: f32[2,16,1], index: 10, kind: output, shape index: {1}]  }
   0x1   :  { %2539 = sst [smem:[#allocation38_spill]] %s2503_s0 }
   0x2   :  { %2540 = sst [smem:[#allocation39_spill]] %s2504_s1 }
   0x3   :  { %2541 = sst [smem:[#allocation40_spill]] %s2505_s2 }
   0x4   :  { %2542 = sst [smem:[#allocation41_spill]] %s2506_s3 }
   0x5   :  { %2543 = sst [smem:[#allocation42_spill]] %s2507_s4 }
   0x6   :  { %2544 = sst [smem:[#allocation43_spill]] %s2508_s5 }
   0x7   :  { %2545 = sst [smem:[#allocation44_spill]] %s2509_s6 }
   0x8   :  { %2546 = sst [smem:[#allocation45_spill]] %s2510_s7 }
   0x9   :  { %2547 = sst [smem:[#allocation46_spill]] %s2511_s8 }
   0xa   :  { %2548 = sst [smem:[#allocation47_spill]] %s2512_s9 }
   0xb   :  { %2549 = sst [smem:[#allocation48_spill]] %s2513_s10 }
   0xc   :  { %16 = vsyncpa [#allocation4], 0 }
   0xd   :  { %18 = vsyncpa [#allocation4 + $0x1], 0 }
   0xe   :  { %19 = vsyncpa [#allocation7], 0 }
   0xf   :  { %21 = vsyncpa [#allocation7 + $0x1], 0 }
  0x10   :  { %22 = vsyncpa [#allocation10], 0 }
  0x11   :  { %23 = vsyncpa [#allocation13], 0 }
  0x12   :  { %24 = vsyncpa [#allocation16], 0 }
  0x13   :  { %25 = vsyncpa [#allocation5], 0 }
  0x14   :  { %27 = vsyncpa [#allocation5 + $0x1], 0 }
  0x15   :  { %28 = vsyncpa [#allocation20], 0 }
  0x16   :  { %30 = vsyncpa [#allocation20 + $0x1], 0  ;;  %s1904_s13 = smov 0   ;;  %s1906_s14 = smov 0  }
  0x17   :  { %s1908_s15 = smov 0   ;;  %s1910_s16 = smov 0  }
  0x18   :  { %s1912_s17 = smov 0   ;;  %s1914_s18 = smov 0  }
  0x19   :  { %s1916_s19 = smov 0   ;;  %s1918_s20 = smov 0  }
  0x1a   :  { %s1920_s21 = smov 0   ;;  %s1922_s22 = smov 0  }
  0x1b   :  { %s1924_s23 = smov 0  }
  0x1c LB: > { %2550 = sst [smem:[#allocation29_spill]] %s1798_s16  ;;  %s1960_s24 = sadd.s32 4294967295, %s1826_s23   ;;  %s1826_s23 = sphi %s1924_s23, %s36_s23   ;;  %s1822_s22 = sphi %s1922_s22, %s2627_s22   ;;  %s1818_s21 = sphi %s1920_s21, %s2626_s21   ;;  %s1814_s20 = sphi %s1918_s20, %s2625_s20   ;;  %s1810_s19 = sphi %s1916_s19, %s2624_s19   ;;  %s1806_s18 = sphi %s1914_s18, %s2618_s18   ;;  %s1802_s17 = sphi %s1912_s17, %s2617_s17   ;;  %s1798_s16 = sphi %s1910_s16, %s2616_s16   ;;  %s1794_s15 = sphi %s1908_s15, %s2623_s15   ;;  %s1790_s14 = sphi %s1906_s14, %s2622_s14   ;;  %s1786_s13 = sphi %s1904_s13, %s2621_s13  }
  0x1d   : > { %2551 = sst [smem:[#allocation30_spill]] %s1802_s17  ;;  %p1122_p0 = scmp.ge.s32.totalorder %s1826_s23, 1 }
  0x1e   : > { %2552 = sst [smem:[#allocation31_spill]] %s1806_s18  ;;  %p2521_p1 = scmp.eq.s32.totalorder %s1960_s24, 0 }
  0x1f   : > { %2553 = sst [smem:[#allocation32_spill]] %s1810_s19  ;;  %p315_p2 = scmp.lt.s32.totalorder %s1826_s23, 5 }
  0x20   : > { %2554 = sst [smem:[#allocation33_spill]] %s1814_s20  ;;  %s1828_s26 = smov [#allocation9]  }
  0x21   : > { %p1965_p3 = pnand %p1122_p0, %p315_p2  ;;  %s327_s27 = sshll.u32 %s1828_s26, 4  ;;  %s1969_s27 = int_to_ptr.vmem [resolvable:$true] %s327_s27 }
  0x22   : > { %s1829_s29 = smov [#allocation12]   ;;  %s1830_s11 = smov [#allocation15]  }
  0x23   : > { %s2555_s25 = scalar_select %p1965_p3, 1, 0 }
  0x24   : > { %p1232_p4 = pneg %p1965_p3  ;;  %s353_s30 = sshll.u32 %s1829_s29, 4  ;;  %s1979_s30 = int_to_ptr.vmem [resolvable:$true] %s353_s30 }
  0x25   : > { %2556 = sst [smem:[#allocation34_spill]] %s2555_s25  ;;  %s1981_s12 = sshll.u32 %s1830_s11, 4  ;;  %s380_s12 = int_to_ptr.vmem [resolvable:$true] %s1981_s12 }
  0x26   : > { %p1975_p5 = pnand %p1232_p4, %p2521_p1  ;;  %s2558_s3 = sld [smem:[#allocation41_spill]] }
  0x28   : > { %s2557_s28 = scalar_select %p1975_p5, 1, 0 }
  0x29   : > { %p1991_p7 = pneg %p1975_p5 }
  0x2c   : > { %s1394_s26 = scalar_lea.hbm %s2558_s3, 256 }
  0x2d   : > { %p1395_p6 = scmp.ne.s32.totalorder %s2558_s3, %s1394_s26  ;;  %p1401_p10 = scmp.lt.u32.totalorder %s1394_s26, %s2558_s3 }
  0x2f   : > { %p1397_p8 = pnand %p1991_p7, %p1395_p6 }
  0x31   : > { %p1398_p9 = pneg %p1397_p8 }
  0x33   : > { %p1403_p11 = pnand %p1401_p10, %p1398_p9 }
  0x35   : > { %1406 = shalt.err (!%p1403_p11)
}
  0x36   : > { %s1407_s9 = scalar_lea.vmem %s1969_s27, 256  ;;  %p1415_p2 = scmp.lt.s32.totalorder %s1969_s27, %s1969_s27 }
  0x37   : > { %p1408_p12 = scmp.ne.s32.totalorder %s1969_s27, %s1407_s9  ;;  %p1416_p4 = scmp.lt.s32.totalorder %s1407_s9, %s1407_s9 }
  0x39   : > { %p1410_p13 = pnand %p1408_p12, %p1991_p7  ;;  %p1417_p6 = por %p1416_p4, %p1415_p2 }
  0x3b   : > { %p1411_p0 = pneg %p1410_p13 }
  0x3d   : > { %p1418_p8 = pnand %p1417_p6, %p1411_p0 }
  0x3f   : > { %1421 = shalt.err (!%p1418_p8)
}
  0x40   : > { %s2523_s10 = smov 64   ;;  %s2524_s19 = smov 4  }
  0x41   : > { %1235 = dma.hbm_to_vmem [thread:$0]  (!%p1975_p5), %s2558_s3, 256, %s1969_s27, [#allocation10], %s2523_s10, %s2523_s10, %s2524_s19  }
  0x42   : > { %s2560_s5 = sld [smem:[#allocation43_spill]] }
  0x48   : > { %s1422_s9 = scalar_lea.hbm %s2560_s5, 128 }
  0x49   : > { %p1423_p9 = scmp.ne.s32.totalorder %s2560_s5, %s1422_s9  ;;  %p1429_p12 = scmp.lt.u32.totalorder %s1422_s9, %s2560_s5 }
  0x4b   : > { %p1425_p10 = pnand %p1423_p9, %p1991_p7 }
  0x4d   : > { %p1426_p11 = pneg %p1425_p10 }
  0x4f   : > { %p1431_p13 = pnand %p1429_p12, %p1426_p11 }
  0x51   : > { %1434 = shalt.err (!%p1431_p13)
}
  0x52   : > { %s1435_s27 = scalar_lea.vmem %s1979_s30, 128  ;;  %p1443_p6 = scmp.lt.s32.totalorder %s1979_s30, %s1979_s30 }
  0x53   : > { %p1436_p0 = scmp.ne.s32.totalorder %s1979_s30, %s1435_s27  ;;  %p1444_p8 = scmp.lt.s32.totalorder %s1435_s27, %s1435_s27 }
  0x55   : > { %p1438_p2 = pnand %p1436_p0, %p1991_p7  ;;  %p1445_p9 = por %p1444_p8, %p1443_p6 }
  0x57   : > { %p1439_p4 = pneg %p1438_p2 }
  0x59   : > { %p1446_p10 = pnand %p1445_p9, %p1439_p4 }
  0x5b   : > { %1449 = shalt.err (!%p1446_p10)
}
  0x5c   : > { %1241 = dma.hbm_to_vmem [thread:$0]  (!%p1975_p5), %s2560_s5, 128, %s1979_s30, [#allocation13], %s2523_s10, %s2523_s10, %s2524_s19  }
  0x5d   : > { %s2561_s7 = sld [smem:[#allocation45_spill]] }
  0x63   : > { %s1450_s20 = scalar_lea.hbm %s2561_s7, 128 }
  0x64   : > { %p1451_p11 = scmp.ne.s32.totalorder %s2561_s7, %s1450_s20  ;;  %p1457_p0 = scmp.lt.u32.totalorder %s1450_s20, %s2561_s7 }
  0x66   : > { %p1453_p12 = pnand %p1451_p11, %p1991_p7 }
  0x68   : > { %p1454_p13 = pneg %p1453_p12 }
  0x6a   : > { %p1459_p2 = pnand %p1457_p0, %p1454_p13 }
  0x6c   : > { %1462 = shalt.err (!%p1459_p2)
}
  0x6d   : > { %s1463_s27 = scalar_lea.vmem %s380_s12, 128  ;;  %p1471_p9 = scmp.lt.s32.totalorder %s380_s12, %s380_s12 }
  0x6e   : > { %p1464_p4 = scmp.ne.s32.totalorder %s380_s12, %s1463_s27  ;;  %p1472_p10 = scmp.lt.s32.totalorder %s1463_s27, %s1463_s27 }
  0x70   : > { %p1466_p6 = pnand %p1464_p4, %p1991_p7  ;;  %p1473_p1 = por %p1472_p10, %p1471_p9 }
  0x72   : > { %p1467_p8 = pneg %p1466_p6 }
  0x74   : > { %p1474_p3 = pnand %p1473_p1, %p1467_p8 }
  0x76   : > { %1477 = shalt.err (!%p1474_p3)
}
  0x77   : > { %1247 = dma.hbm_to_vmem [thread:$0]  (!%p1975_p5), %s2561_s7, 128, %s380_s12, [#allocation16], %s2523_s10, %s2523_s10, %s2524_s19  }
  0x78   : > { %p2528_p1 = scmp.eq.s32.totalorder %s1826_s23, 0  ;;  %p2527_p3 = scmp.ne.s32.totalorder %s1794_s15, %s1790_s14 }
  0x79   : > { %p2526_p11 = scmp.ne.s32.totalorder %s1790_s14, %s1786_s13  ;;  %p2562_p13 = scmp.eq.s32.totalorder %s1960_s24, 0 }
  0x7a   : > { %p92_p12 = por %p2527_p3, %p2528_p1  ;;  %p2525_p2 = scmp.lt.s32.totalorder %s1826_s23, 4 }
  0x7b   : > { %p2079_p0 = por %p2526_p11, %p2562_p13  ;;  %s425_s17 = sand.u32 1, %s1826_s23  }
  0x7c   : > { %s427_s20 = sand.u32 1, %s1794_s15   ;;  %s1168_s29 = sshll.u32 %s1822_s22, 8 }
  0x7d   : > { %s2563_s16 = scalar_select %p2079_p0, 1, 0 }
  0x7e   : > { %s1132_s26 = sshll.u32 %s427_s20, 4  ;;  %s2564_s1 = sld [smem:[#allocation39_spill]] }
  0x7f   : > { %s429_s27 = scalar_lea.vmem [#allocation6], %s1132_s26  ;;  %p2096_p4 = pnand %p2525_p2, %p92_p12 }
  0x80   : > { %s436_s30 = sshll.u32 %s429_s27, 4  ;;  %s1833_s20 = smov [#allocation11]   ;;  %s2092_s30 = int_to_ptr.vmem [resolvable:$true] %s436_s30 }
  0x81   : > { %s2100_s10 = sshll.u32 %s1833_s20, 4  ;;  %p1480_p8 = pneg %p2096_p4  ;;  %s341_s10 = int_to_ptr.vmem [resolvable:$true] %s2100_s10 }
  0x84   : > { %s2090_s9 = scalar_lea.hbm %s2564_s1, %s1168_s29  ;;  %s2102_s29 = scalar_lea.sflag [#allocation7], %s425_s17 }
  0x85   : > { %s1478_s12 = scalar_lea.hbm %s2090_s9, 256  ;;  %s1483_s27 = scalar_lea.hbm %s2564_s1, 512 }
  0x86   : > { %p1479_p6 = scmp.ne.s32.totalorder %s2090_s9, %s1478_s12  ;;  %p1484_p12 = scmp.lt.u32.totalorder %s2090_s9, %s2564_s1 }
  0x87   : > { %p1485_p13 = scmp.lt.u32.totalorder %s1483_s27, %s1478_s12  ;;  %p1487_p11 = scmp.lt.u32.totalorder %s1478_s12, %s2090_s9 }
  0x88   : > { %p1481_p9 = pnand %p1480_p8, %p1479_p6 }
  0x89   : > { %p1486_p2 = por %p1485_p13, %p1484_p12 }
  0x8a   : > { %p1482_p10 = pneg %p1481_p9 }
  0x8b   : > { %p1488_p3 = por %p1487_p11, %p1486_p2 }
  0x8d   : > { %p1489_p1 = pnand %p1488_p3, %p1482_p10 }
  0x8f   : > { %1492 = shalt.err (!%p1489_p1)
}
  0x90   : > { %s1493_s17 = scalar_lea.vmem %s2092_s30, 256  ;;  %s1834_s20 = smov [#allocation6]  }
  0x91   : > { %p1494_p6 = scmp.ne.s32.totalorder %s2092_s30, %s1493_s17  ;;  %s1498_s26 = sshll.u32 %s1834_s20, 4  ;;  %s1499_s26 = int_to_ptr.vmem [resolvable:$false] %s1498_s26 }
  0x92   : > { %s1500_s19 = scalar_lea.vmem %s1499_s26, 512  ;;  %p1501_p5 = scmp.lt.s32.totalorder %s2092_s30, %s1499_s26 }
  0x93   : > { %p1496_p9 = pnand %p1494_p6, %p1480_p8  ;;  %p1502_p12 = scmp.lt.s32.totalorder %s1500_s19, %s1493_s17 }
  0x95   : > { %p1497_p0 = pneg %p1496_p9  ;;  %p1503_p13 = por %p1502_p12, %p1501_p5 }
  0x97   : > { %p1504_p11 = pnand %p1503_p13, %p1497_p0 }
  0x99   : > { %1507 = shalt.err (!%p1504_p11)
}
  0x9a   : > { %s2532_s2 = smov 128   ;;  %s1836_s12 = smov 8  }
  0x9b   : > { %1257 = dma.hbm_to_vmem [thread:$0]  (!%p2096_p4), %s2090_s9, 256, %s2092_s30, %s2102_s29, %s2532_s2, %s2532_s2, %s1836_s12  }
  0x9c   : > { %s1837_s11 = smov [#allocation14]   ;;  %s2566_s4 = sld [smem:[#allocation42_spill]] }
  0x9d   : > { %s366_s27 = sshll.u32 %s1837_s11, 4  ;;  %s367_s27 = int_to_ptr.vmem [resolvable:$true] %s366_s27 }
  0xa2   : > { %s1508_s26 = scalar_lea.hbm %s2566_s4, 512 }
  0xa3   : > { %p1509_p5 = scmp.ne.s32.totalorder %s2566_s4, %s1508_s26  ;;  %p1515_p0 = scmp.lt.u32.totalorder %s1508_s26, %s2566_s4 }
  0xa5   : > { %p1511_p1 = pnand %p1509_p5, %p1991_p7 }
  0xa7   : > { %p1512_p3 = pneg %p1511_p1 }
  0xa9   : > { %p1517_p2 = pnand %p1515_p0, %p1512_p3 }
  0xab   : > { %1520 = shalt.err (!%p1517_p2)
}
  0xac   : > { %s1521_s9 = scalar_lea.vmem %s341_s10, 512  ;;  %p1529_p6 = scmp.lt.s32.totalorder %s341_s10, %s341_s10 }
  0xad   : > { %p1522_p4 = scmp.ne.s32.totalorder %s341_s10, %s1521_s9  ;;  %p1530_p9 = scmp.lt.s32.totalorder %s1521_s9, %s1521_s9 }
  0xaf   : > { %p1524_p8 = pnand %p1522_p4, %p1991_p7  ;;  %p1531_p12 = por %p1530_p9, %p1529_p6 }
  0xb1   : > { %p1525_p10 = pneg %p1524_p8 }
  0xb3   : > { %p1532_p13 = pnand %p1531_p12, %p1525_p10 }
  0xb5   : > { %1535 = shalt.err (!%p1532_p13)
}
  0xb6   : > { %p2567_p11 = scmp.ne.s32.totalorder %s2557_s28, 0  ;;  %s2568_s6 = sld [smem:[#allocation44_spill]] }
  0xb8   : > { %1238 = dma.hbm_to_vmem [thread:$0]  (!%p2567_p11), %s2566_s4, 512, %s341_s10, [#allocation10], %s2532_s2, %s2532_s2, %s1836_s12  }
  0xbc   : > { %s1536_s17 = scalar_lea.hbm %s2568_s6, 256 }
  0xbd   : > { %p1537_p5 = scmp.ne.s32.totalorder %s2568_s6, %s1536_s17  ;;  %p1543_p0 = scmp.lt.u32.totalorder %s1536_s17, %s2568_s6 }
  0xbf   : > { %p1539_p1 = pnand %p1537_p5, %p1991_p7 }
  0xc1   : > { %p1540_p3 = pneg %p1539_p1 }
  0xc3   : > { %p1545_p2 = pnand %p1543_p0, %p1540_p3 }
  0xc5   : > { %1548 = shalt.err (!%p1545_p2)
}
  0xc6   : > { %s1549_s9 = scalar_lea.vmem %s367_s27, 256  ;;  %p1557_p6 = scmp.lt.s32.totalorder %s367_s27, %s367_s27 }
  0xc7   : > { %p1550_p4 = scmp.ne.s32.totalorder %s367_s27, %s1549_s9  ;;  %p1558_p9 = scmp.lt.s32.totalorder %s1549_s9, %s1549_s9 }
  0xc9   : > { %p1552_p8 = pnand %p1550_p4, %p1991_p7  ;;  %p1559_p12 = por %p1558_p9, %p1557_p6 }
  0xcb   : > { %p1553_p10 = pneg %p1552_p8 }
  0xcd   : > { %p1560_p13 = pnand %p1559_p12, %p1553_p10 }
  0xcf   : > { %1563 = shalt.err (!%p1560_p13)
}
  0xd0   : > { %1244 = dma.hbm_to_vmem [thread:$0]  (!%p2567_p11), %s2568_s6, 256, %s367_s27, [#allocation13], %s2532_s2, %s2532_s2, %s1836_s12  }
  0xd1   : > { %s1838_s3 = smov [#allocation17]   ;;  %s2569_s8 = sld [smem:[#allocation46_spill]] }
  0xd2   : > { %s392_s30 = sshll.u32 %s1838_s3, 4  ;;  %s393_s30 = int_to_ptr.vmem [resolvable:$true] %s392_s30 }
  0xd7   : > { %s1564_s20 = scalar_lea.hbm %s2569_s8, 256 }
  0xd8   : > { %p1565_p5 = scmp.ne.s32.totalorder %s2569_s8, %s1564_s20  ;;  %p1571_p0 = scmp.lt.u32.totalorder %s1564_s20, %s2569_s8 }
  0xda   : > { %p1567_p1 = pnand %p1565_p5, %p1991_p7 }
  0xdc   : > { %p1568_p3 = pneg %p1567_p1 }
  0xde   : > { %p1573_p2 = pnand %p1571_p0, %p1568_p3 }
  0xe0   : > { %1576 = shalt.err (!%p1573_p2)
}
  0xe1   : > { %s1577_s27 = scalar_lea.vmem %s393_s30, 256  ;;  %p1585_p6 = scmp.lt.s32.totalorder %s393_s30, %s393_s30 }
  0xe2   : > { %p1578_p4 = scmp.ne.s32.totalorder %s393_s30, %s1577_s27  ;;  %p1586_p9 = scmp.lt.s32.totalorder %s1577_s27, %s1577_s27 }
  0xe4   : > { %p1580_p8 = pnand %p1578_p4, %p1991_p7  ;;  %p1587_p12 = por %p1586_p9, %p1585_p6 }
  0xe6   : > { %p1581_p10 = pneg %p1580_p8 }
  0xe8   : > { %p1588_p13 = pnand %p1587_p12, %p1581_p10 }
  0xea   : > { %1591 = shalt.err (!%p1588_p13)
}
  0xeb   : > { %s2570_s25 = sld [smem:[#allocation30_spill]]  ;;  %s2571_s3 = sld [smem:[#allocation29_spill]] }
  0xec   : > { %1250 = dma.hbm_to_vmem [thread:$0]  (!%p2567_p11), %s2569_s8, 256, %s393_s30, [#allocation16], %s2532_s2, %s2532_s2, %s1836_s12  }
  0xed   : > { %s1121_s28 = sadd.s32 4294967294, %s1826_s23   ;;  %s45_s11 = sadd.s32 1, %s1818_s21 }
  0xee   : > { %p46_p7 = scmp.ge.s32.totalorder %s45_s11, 2  ;;  %s48_s17 = sadd.s32 1, %s1822_s22 }
  0xef   : > { %s57_s20 = sadd.s32 1, %s1806_s18  ;;  %p2573_p1 = scmp.eq.s32.totalorder %s1826_s23, 0 }
  0xf0   : > { %s2629_s11 = smov (%p46_p7, %s45_s11), 0  ;;  %s2631_s17 = smov (!%p46_p7, %s48_s17), %s1822_s22 }
  0xf1   : > { %p64_p5 = scmp.ne.s32.totalorder %s1806_s18, %s2570_s25  ;;  %2572 = sst [smem:[#allocation35_spill]] %s2629_s11 }
  0xf2   : > { %s53_s26 = ssub.s32 %s1818_s21, %s2629_s11  ;;  %p50_p3 = scmp.ge.s32.totalorder %s2631_s17, 2 }
  0xf3   : > { %p2210_p11 = por %p2573_p1, %p64_p5  ;;  %p70_p0 = scmp.ne.s32.totalorder %s2570_s25, %s2571_s3 }
  0xf4   : > { %p276_p2 = scmp.eq.s32.totalorder %s1960_s24, 3  ;;  %p282_p4 = scmp.eq.s32.totalorder %s1121_s28, 3 }
  0xf5   : > { %s2633_s17 = smov (%p50_p3, %s2631_s17), 0  ;;  %p2576_p8 = scmp.eq.s32.totalorder %s1960_s24, 0 }
  0xf6   : > { %2575 = sst [smem:[#allocation36_spill]] %s2633_s17  ;;  %p2225_p6 = por %p276_p2, %p64_p5 }
  0xf7   : > { %p2221_p10 = por %p2576_p8, %p70_p0  ;;  %s52_s0 = ssub.s32 %s1822_s22, %s2633_s17 }
  0xf8   : > { %s2578_s19 = scalar_select %p2225_p6, 1, 0 }
  0xf9   : > { %p2231_p9 = por %p282_p4, %p70_p0  ;;  %s54_s27 = sor.u32 %s53_s26, %s52_s0 }
  0xfa   : > { %p81_p12 = scmp.eq.s32.totalorder %s52_s0, 0  ;;  %p55_p13 = scmp.eq.s32.totalorder %s54_s27, 0 }
  0xfb   : > { %s2579_s9 = scalar_select %p2231_p9, 1, 0 }
  0xfc   : > { %p2580_p7 = scmp.ne.s32.totalorder %s1794_s15, %s1790_s14  ;;  %s2582_s1 = sadd.s32 1, %s1794_s15 }
  0xfd   : > { %s2245_s25 = scalar_select %p81_p12, %s1794_s15, %s2582_s1  }
  0xfe   : > { %p2238_p1 = por %p276_p2, %p2580_p7  ;;  %p2584_p5 = scmp.ne.s32.totalorder %s1790_s14, %s1786_s13 }
  0xff   : > { %s2248_s3 = scalar_select %p55_p13, %s1806_s18, %s57_s20  }
 0x100   : > { %s2581_s10 = scalar_select %p2238_p1, 1, 0 }
 0x101   : > { %2583 = sst [smem:[#allocation37_spill]] %s2248_s3  ;;  %p2253_p3 = por %p282_p4, %p2584_p5 }
 0x102   : > { %s2258_s2 = sand.u32 1, %s1806_s18   ;;  %s1130_s26 = sshll.u32 %s1822_s22, 1 }
 0x103   : > { %s2585_s28 = scalar_select %p2253_p3, 1, 0 }
 0x104   : > { %s409_s0 = scalar_lea.vmem [#allocation3], %s2258_s2  ;;  %s414_s4 = sadd.s32 %s1818_s21, %s1130_s26 }
 0x105   : > { %s418_s27 = sshll.u32 %s409_s0, 4  ;;  %s1131_s1 = sshll.u32 %s414_s4, 4  ;;  %s2263_s27 = int_to_ptr.vmem [resolvable:$true] %s418_s27 }
 0x106   : > { %p2586_p0 = scmp.lt.s32.totalorder %s1826_s23, 4  ;;  %s2588_s7 = sld [smem:[#allocation38_spill]] }
 0x107   : > { %s407_s0 = scalar_lea.sflag [#allocation4], %s2258_s2 }
 0x108   : > { %p2269_p2 = pnand %p2586_p0, %p2210_p11 }
 0x10a   : > { %p1594_p11 = pneg %p2269_p2 }
 0x10c   : > { %s2276_s8 = scalar_lea.hbm %s2588_s7, %s1131_s1  ;;  %s1597_s6 = scalar_lea.hbm %s2588_s7, 64 }
 0x10d   : > { %s1592_s4 = scalar_lea.hbm %s2276_s8, 16  ;;  %p1598_p13 = scmp.lt.u32.totalorder %s2276_s8, %s2588_s7 }
 0x10e   : > { %p1593_p4 = scmp.ne.s32.totalorder %s2276_s8, %s1592_s4  ;;  %p1599_p7 = scmp.lt.u32.totalorder %s1597_s6, %s1592_s4 }
 0x10f   : > { %p1601_p0 = scmp.lt.u32.totalorder %s1592_s4, %s2276_s8 }
 0x110   : > { %p1595_p8 = pnand %p1594_p11, %p1593_p4  ;;  %p1600_p5 = por %p1599_p7, %p1598_p13 }
 0x112   : > { %p1596_p12 = pneg %p1595_p8  ;;  %p1602_p3 = por %p1601_p0, %p1600_p5 }
 0x114   : > { %p1603_p9 = pnand %p1602_p3, %p1596_p12 }
 0x116   : > { %1606 = shalt.err (!%p1603_p9)
}
 0x117   : > { %s1607_s26 = scalar_lea.vmem %s2263_s27, 16  ;;  %s1839_s12 = smov [#allocation3]  }
 0x118   : > { %p1608_p4 = scmp.ne.s32.totalorder %s2263_s27, %s1607_s26  ;;  %s1612_s5 = sshll.u32 %s1839_s12, 4  ;;  %s1613_s5 = int_to_ptr.vmem [resolvable:$false] %s1612_s5 }
 0x119   : > { %s1614_s17 = scalar_lea.vmem %s1613_s5, 32  ;;  %p1615_p6 = scmp.lt.s32.totalorder %s2263_s27, %s1613_s5 }
 0x11a   : > { %p1610_p8 = pnand %p1608_p4, %p1594_p11  ;;  %p1616_p13 = scmp.lt.s32.totalorder %s1614_s17, %s1607_s26 }
 0x11c   : > { %p1611_p1 = pneg %p1610_p8  ;;  %p1617_p7 = por %p1616_p13, %p1615_p6 }
 0x11e   : > { %p1618_p5 = pnand %p1617_p7, %p1611_p1 }
 0x120   : > { %1621 = shalt.err (!%p1618_p5)
}
 0x121   : > { %1254 = dma.hbm_to_vmem [thread:$0]  (!%p2269_p2), %s2276_s8, 16, %s2263_s27, %s407_s0  }
 0x122   : > { %s1136_s4 = sshll.u32 %s1822_s22, 3  ;;  %s2589_s6 = sshll.u32 %s2258_s2, 4 }
 0x123   : > { %s450_s1 = scalar_lea.vmem [#allocation8], %s2589_s6  ;;  %s455_s7 = sadd.s32 %s1818_s21, %s1136_s4 }
 0x124   : > { %s458_s12 = sshll.u32 %s450_s1, 4  ;;  %s1137_s26 = sshll.u32 %s455_s7, 6  ;;  %s2309_s12 = int_to_ptr.vmem [resolvable:$true] %s458_s12 }
 0x125   : > { %s2590_s11 = sld [smem:[#allocation40_spill]] }
 0x12b   : > { %s2314_s3 = scalar_lea.hbm %s2590_s11, %s1137_s26  ;;  %s1627_s27 = scalar_lea.hbm %s2590_s11, 1024 }
 0x12c   : > { %s1622_s18 = scalar_lea.hbm %s2314_s3, 256  ;;  %p1628_p3 = scmp.lt.u32.totalorder %s2314_s3, %s2590_s11 }
 0x12d   : > { %p1623_p6 = scmp.ne.s32.totalorder %s2314_s3, %s1622_s18  ;;  %p1629_p12 = scmp.lt.u32.totalorder %s1627_s27, %s1622_s18 }
 0x12e   : > { %p1631_p4 = scmp.lt.u32.totalorder %s1622_s18, %s2314_s3 }
 0x12f   : > { %p1625_p9 = pnand %p1623_p6, %p1594_p11  ;;  %p1630_p0 = por %p1629_p12, %p1628_p3 }
 0x131   : > { %p1626_p1 = pneg %p1625_p9  ;;  %p1632_p8 = por %p1631_p4, %p1630_p0 }
 0x133   : > { %p1633_p13 = pnand %p1632_p8, %p1626_p1 }
 0x135   : > { %1636 = shalt.err (!%p1633_p13)
}
 0x136   : > { %s1637_s4 = scalar_lea.vmem %s2309_s12, 256  ;;  %s1840_s6 = smov [#allocation8]  }
 0x137   : > { %p1638_p7 = scmp.ne.s32.totalorder %s2309_s12, %s1637_s4  ;;  %s1642_s1 = sshll.u32 %s1840_s6, 4  ;;  %s1643_s1 = int_to_ptr.vmem [resolvable:$false] %s1642_s1 }
 0x138   : > { %s1644_s26 = scalar_lea.vmem %s1643_s1, 512  ;;  %p1645_p9 = scmp.lt.s32.totalorder %s2309_s12, %s1643_s1 }
 0x139   : > { %p1640_p5 = pnand %p1638_p7, %p1594_p11  ;;  %p1646_p3 = scmp.lt.s32.totalorder %s1644_s26, %s1637_s4 }
 0x13b   : > { %p1641_p6 = pneg %p1640_p5  ;;  %p1647_p12 = por %p1646_p3, %p1645_p9 }
 0x13d   : > { %p1648_p0 = pnand %p1647_p12, %p1641_p6 }
 0x13f   : > { %1651 = shalt.err (!%p1648_p0)
}
 0x140   : > { %s2591_s18 = smov 4   ;;  %s2592_s5 = smov 64  }
 0x141   : > { %s2593_s17 = smov 128   ;;  %s2594_s8 = sld [smem:[#allocation34_spill]] }
 0x142   : > { %1260 = dma.hbm_to_vmem [thread:$0]  (!%p2269_p2), %s2314_s3, 256, %s2309_s12, %s2102_s29, %s2593_s17, %s2592_s5, %s2591_s18  }
 0x147   : > { %p2595_p11 = scmp.ne.s32.totalorder %s2594_s8, 0 }
 0x148   : > { %s2596_s2 = sld [smem:[#allocation30_spill]] (!%p2595_p11) }
 0x149   : > { %470 = sbr.rel (%p2595_p11) target bundleno = 1031 (0x407), region = 56 }
 0x14e   : > { %s2346_s27 = sand.u32 (!%p2595_p11), 1, %s2596_s2  }
 0x14f   : > { %s473_s7 = scalar_lea.sflag (!%p2595_p11), [#allocation4], %s2346_s27  ;;  %s475_s0 = scalar_lea.vmem (!%p2595_p11), [#allocation3], %s2346_s27 }
 0x150   : > { %1753 = dma.done.wait (%p2221_p10), %s473_s7, 16  }
 0x151   : > { %1755 = vsyncadd (%p2221_p10), %s473_s7, 4294967280  ;;  %s480_s29 = sand.u32 1, %s1960_s24   ;;  %s482_s3 = sand.u32 1, %s1790_s14  }
 0x152   : > { %s2358_s20 = sshll.u32 %s482_s3, 4  ;;  %s481_s12 = scalar_lea.sflag [#allocation7], %s480_s29 }
 0x153   : > { %s484_s4 = scalar_lea.vmem [#allocation6], %s2358_s20  ;;  %p2597_p2 = scmp.ne.s32.totalorder %s2563_s16, 0 }
 0x155   : > { %1757 = dma.done.wait (%p2597_p2), %s481_s12, 256  }
 0x156   : > { %1759 = vsyncadd (%p2597_p2), %s481_s12, 4294967040  ;;  %s1140_s6 = sshll.u32 %s2346_s27, 4 }
 0x157   : > { %s493_s1 = scalar_lea.vmem [#allocation8], %s1140_s6 }
 0x158   : > { %1761 = dma.done.wait (%p2221_p10), %s481_s12, 256  }
 0x159   : > { %1763 = vsyncadd (%p2221_p10), %s481_s12, 4294967040  ;;  %p2598_p1 = scmp.eq.s32.totalorder %s1960_s24, 0 }
 0x15b   : > { %1765 = dma.done.wait (%p2598_p1), [#allocation10], 768   ;;  %p2599_p4 = pmov %p2598_p1 }
 0x15c   : > { %p2600_p8 = pmov %p2598_p1 }
 0x15d   : > { %1767 = vsyncadd (%p2599_p4), [#allocation10], 4294966528 }
 0x15e   : > { %1769 = dma.done.wait (%p2600_p8), [#allocation13], 384   ;;  %p2601_p13 = pmov %p2598_p1 }
 0x15f   : > { %p2602_p7 = pmov %p2598_p1 }
 0x160   : > { %1771 = vsyncadd (%p2601_p13), [#allocation13], 4294966912 }
 0x161   : > { %1773 = dma.done.wait (%p2602_p7), [#allocation16], 384   ;;  %p2603_p5 = pmov %p2598_p1 }
 0x162   : > { %s559_s16 = scalar_lea.vmem [#allocation18], %s2346_s27  ;;  %s2384_s30 = scalar_lea.vmem [#allocation19], %s2358_s20 }
 0x163   : > { %1775 = vsyncadd (%p2603_p5), [#allocation16], 4294966912  ;;  %s2604_s26 = sld [smem:[#allocation32_spill]] }
 0x169   : > { %p1148_p10 = scmp.ne.s32.totalorder %s2604_s26, 0 }
 0x16a   : > { %vm572_vm0 = vcmask (!%p1148_p10), 7168   ;;  %v1841_v0 = vmov (!%p1148_p10), 0.0  }
 0x16b   : > { %571 = sbr.rel (%p1148_p10) target bundleno = 370 (0x172), region = 96  ;;  %573 = vst.msk [vmem:[#allocation2] sm:$0xff] (!%p1148_p10), %vm572_vm0, %v1841_v0  ;;  %574 = vst.msk [vmem:[#allocation2 + $0x8] sm:$0xff] (!%p1148_p10), %vm572_vm0, %v1841_v0 }
 0x172 PF: > { %v1388_v1 = vld [vmem:[%s493_s1] sm:$0xff]   ;;  %vm629_vm1 = vcmask 261120   ;;  %v1389_v2 = vld [vmem:[%s493_s1 + $0x8] sm:$0xff]   ;;  %v1842_v4 = vmov 0   ;;  %v1843_v16 = vmov 0.0   ;;  %vm1844_vm2 = vmmov 0  }
 0x173   : > { %1178 = vmatprep.subr.bf16.mxu0 %v1388_v1  ;;  %v1390_v3 = vld [vmem:[#allocation9] sm:$0xff]   ;;  %1386 = vset.pattern.permute.xlu0 %v1842_v4  ;;  %v583_v5 = vld [vmem:[#allocation11] sm:$0xff]  ;;  %v1391_v6 = vld [vmem:[#allocation9 + $0x8] sm:$0xff]   ;;  %vm709_vm3 = vcmask 130048   ;;  %vm773_vm4 = vcmask 7168   ;;  %s2605_s24 = sld [smem:[#allocation32_spill]] }
 0x174   : > { %1179 = vmatpush3.bf16.msra.mxu0 %v1388_v1  ;;  %1387 = vset.pattern.permute.xlu1 %v1842_v4  ;;  %v585_v7 = vld [vmem:[#allocation11 + $0x10] sm:$0xff]  ;;  %v584_v8 = vld [vmem:[#allocation11 + $0x8] sm:$0xff]  ;;  %v586_v9 = vld [vmem:[#allocation11 + $0x18] sm:$0xff] }
 0x175   : > { %1180 = vmatprep.subr.bf16.mxu0 %v1389_v2  ;;  %1182 = vmatprep.mubr.msk.bf16.mxu0 %vm629_vm1, %v1390_v3  ;;  %v692_v10 = vld [vmem:[#allocation14] sm:$0xff]  ;;  %v693_v11 = vld [vmem:[#allocation14 + $0x8] sm:$0xff]  ;;  %v779_v12 = vld [vmem:[#allocation17] sm:$0xff] }
 0x176   : > { %589 = vperm.xlu0 %1386, %v583_v5   ;;  %599 = vperm.xlu1 %1387, %v585_v7   ;;  %v780_v13 = vld [vmem:[#allocation17 + $0x8] sm:$0xff]  ;;  %v842_v14 = vld [vmem:[%s484_s4] sm:$0xff]  ;;  %v1393_v36 = vld [vmem:[#allocation15] sm:$0xff]  }
 0x177   : > { %v843_v15 = vld [vmem:[%s484_s4 + $0x8] sm:$0xff]  ;;  %1186 = vmatprep.subr.bf16.mxu1 %v1843_v16  ;;  %1188 = vmatprep.mubr.msk.bf16.mxu1 %vm1844_vm2, %v1843_v16  ;;  %v1392_v35 = vld [vmem:[#allocation12] sm:$0xff]  }
 0x178   : > { %1181 = vmatpush3.bf16.msra.mxu0 %v1389_v2  ;;  %v1157_v43 = vld [vmem:[%s475_s0] ss:$0 sm:$0xff] }
 0x179   : > { %v756_v7 = vld [vmem:[#allocation2] sm:$0xff]  ;;  %p1160_p6 = scmp.ne.s32.totalorder %s2605_s24, 1 }
 0x17a   : > { %594 = vperm.xlu0 %1386, %v584_v8   ;;  %604 = vperm.xlu1 %1387, %v586_v9   ;;  %v757_v9 = vld [vmem:[#allocation2 + $0x8] sm:$0xff] }
 0x17b   : > { %1183 = vmatmul.mubr.msk.bf16.vlgmr.msra.gmra.mrb[0].mxu0 %vm629_vm1, %v1391_v6 }
 0x17e   : > { %696 = vperm.xlu0 %1386, %v692_v10   ;;  %701 = vperm.xlu1 %1387, %v693_v11  }
 0x182   : > { %783 = vperm.xlu0 %1386, %v779_v12   ;;  %788 = vperm.xlu1 %1387, %v780_v13  }
 0x186   : > { %846 = vperm.xlu0 %1386, %v842_v14   ;;  %851 = vperm.xlu1 %1387, %v843_v15  }
 0x1f5   : > { %v600_v17 = vpop.permute.xlu1 %599  ;;  %v590_v18 = vpop.permute.xlu0 %589 }
 0x1f9   : > { %v605_v20 = vpop.permute.xlu1 %604  ;;  %v595_v25 = vpop.permute.xlu0 %594 }
 0x1fd   : > { %v697_v37 = vpop.permute.xlu0 %696  ;;  %v702_v41 = vpop.permute.xlu1 %701 }
 0x201   : > { %v784_v49 = vpop.permute.xlu0 %783  ;;  %v789_v51 = vpop.permute.xlu1 %788 }
 0x205   : > { %v847_v60 = vpop.permute.xlu0 %846  ;;  %v852_v61 = vpop.permute.xlu1 %851 }
 0x24e   : > { %v1184_v19 = vpop.f32.mrb[0].mxu0 }
 0x24f   : > { %v679_v21 = vadd.f32 %v1184_v19, %v600_v17  ;;  %v670_v22 = vpop.f32.mrb[1].mxu0 }
 0x250   : > { %v671_v23 = vadd.f32 %v670_v22, %v590_v18  ;;  %v1185_v24 = vpop.f32.mrb[2].mxu0 }
 0x251   : > { %v682_v26 = vadd.f32 %v1185_v24, %v605_v20  ;;  %v673_v27 = vpop.f32.mrb[3].mxu0  ;;  %v687_v29 = vmax.f32 %v679_v21, 0.0 }
 0x252   : > { %v674_v28 = vadd.f32 %v673_v27, %v595_v25  ;;  %v685_v31 = vmax.f32 %v671_v23, 0.0 }
 0x253   : > { %v688_v30 = vmax.f32 %v682_v26, 0.0 }
 0x254   : > { %v686_v32 = vmax.f32 %v674_v28, 0.0 }
 0x255   : > { %v778_v33 = vpack.c.bf16 %v688_v30, %v687_v29 }
 0x256   : > { %v691_v34 = vpack.c.bf16 %v686_v32, %v685_v31 }
 0x258   : > { %1187 = vmatpush3.bf16.msra.mxu1 %v691_v34 }
 0x259   : > { %1192 = vmatprep.subr.bf16.mxu1 %v1843_v16 }
 0x25b   : > { %1189 = vmatmul.mubr.msk.bf16.vlgmr.msra.gmra.mrb[0].mxu1 %vm709_vm3, %v1392_v35 }
 0x25c   : > { %1193 = vmatpush3.bf16.msra.mxu1 %v778_v33  ;;  %1194 = vmatprep.mubr.msk.bf16.mxu1 %vm1844_vm2, %v1843_v16 }
 0x263   : > { %1195 = vmatmul.mubr.msk.bf16.vlgmr.msra.gmra.mrb[4].mxu1 %vm709_vm3, %v1393_v36 }
 0x32e   : > { %v747_v38 = vpop.f32.mrb[0].mxu1 }
 0x32f   : > { %v748_v39 = vadd.f32 %v747_v38, %v697_v37  ;;  %v1190_v40 = vpop.f32.mrb[1].mxu1 }
 0x330   : > { %v750_v42 = vpop.f32.mrb[2].mxu1 }
 0x331   : > { %v754_v44 = vmax.f32 %v748_v39, 0.0  ;;  %v751_v45 = vadd.f32 %v750_v42, %v702_v41  ;;  %v1191_v46 = vpop.f32.mrb[3].mxu1 }
 0x333   : > { %v755_v47 = vmax.f32 %v751_v45, 0.0  ;;  %v765_v48 = vmul.f32 %v1157_v43, %v754_v44 }
 0x335   : > { %767 = vadd.xlane.f32.xlu0 %v765_v48  ;;  %v766_v50 = vmul.f32 %v1157_v43, %v755_v47 }
 0x336   : > { %v833_v52 = vpop.f32.mrb[4].mxu1 }
 0x337   : > { %v834_v53 = vadd.f32 %v833_v52, %v784_v49  ;;  %769 = vadd.xlane.f32.xlu1 %v766_v50  ;;  %v1196_v54 = vpop.f32.mrb[5].mxu1 }
 0x338   : > { %v836_v55 = vpop.f32.mrb[6].mxu1 }
 0x339   : > { %v840_v56 = vmax.f32 %v834_v53, 0.0  ;;  %v837_v57 = vadd.f32 %v836_v55, %v789_v51  ;;  %v1197_v58 = vpop.f32.mrb[7].mxu1 }
 0x33b   : > { %v841_v59 = vmax.f32 %v837_v57, 0.0  ;;  %v854_v62 = vmul.f32 %v847_v60, %v840_v56 }
 0x33d   : > { %v855_v63 = vmul.f32 %v852_v61, %v841_v59 }
 0x33f   : > { %v856_v0 = vadd.f32 %v855_v63, %v854_v62 }
 0x341   : > { %v857_v1 = vrot.slane %v856_v0, 4 }
 0x343   : > { %v858_v2 = vadd.f32 %v857_v1, %v856_v0 }
 0x345   : > { %v859_v3 = vrot.slane %v858_v2, 2 }
 0x347   : > { %v860_v4 = vadd.f32 %v859_v3, %v858_v2 }
 0x349   : > { %v861_v5 = vrot.slane %v860_v4, 1 }
 0x34b   : > { %v862_v6 = vadd.f32 %v861_v5, %v860_v4 }
 0x34d   : > { %863 = vst [vmem:[%s559_s16] sm:$0x1] %v862_v6 }
 0x3c1   : > { %867 = sbr.rel (%p1160_p6) target bundleno = 976 (0x3d0), region = 100 }
 0x3c2   : > { %v768_v8 = vpop.xlane.xlu0 %767 }
 0x3c3   : > { %v771_v10 = vadd.f32 %v768_v8, %v756_v7 }
 0x3c4   : > { %v770_v11 = vpop.xlane.xlu1 %769 }
 0x3c5   : > { %774 = vst.msk [vmem:[#allocation2] sm:$0xff] %vm773_vm4, %v771_v10  ;;  %v772_v12 = vadd.f32 %v770_v11, %v757_v9 }
 0x3c7   : > { %775 = vst.msk [vmem:[#allocation2 + $0x8] sm:$0xff] %vm773_vm4, %v772_v12 }
 0x3cc   : > { %v868_v13 = vld [vmem:[#allocation2] sm:$0xff] }
 0x3cd   : > { %870 = vst.msk [vmem:[%s2384_s30] sm:$0xff] %vm773_vm4, %v868_v13 }
 0x3ce   : > { %v869_v14 = vld [vmem:[#allocation2 + $0x8] sm:$0xff] }
 0x3cf   : > { %871 = vst.msk [vmem:[%s2384_s30 + $0x8] sm:$0xff] %vm773_vm4, %v869_v14 }
 0x3d0 PF: > { %s2606_s18 = sld [smem:[#allocation33_spill]]  ;;  %s2607_s5 = sld [smem:[#allocation32_spill]] }
 0x3d1   : > { %s892_s2 = sshll.u32 %s559_s16, 4  ;;  %s2608_s20 = sld [smem:[#allocation47_spill]]  ;;  %s2406_s2 = int_to_ptr.vmem [resolvable:$true] %s892_s2 }
 0x3d2   : > { %s873_s6 = scalar_lea.sflag [#allocation5], %s2346_s27  ;;  %s1652_s1 = scalar_lea.vmem %s2406_s2, 16 }
 0x3d3   : > { %p1653_p9 = scmp.ne.s32.totalorder %s2406_s2, %s1652_s1  ;;  %p2610_p3 = scmp.ne.s32.totalorder %s2578_s19, 0 }
 0x3d4   : > { %s1845_s26 = smov [#allocation18]  }
 0x3d5   : > { %p1654_p12 = pnand %p1653_p9, %p2610_p3  ;;  %s1656_s24 = sshll.u32 %s1845_s26, 4  ;;  %s1657_s24 = int_to_ptr.vmem [resolvable:$false] %s1656_s24 }
 0x3d6   : > { %s1162_s17 = sshll.u32 %s2606_s18, 1  ;;  %s1658_s16 = scalar_lea.vmem %s1657_s24, 32 }
 0x3d7   : > { %s888_s8 = sadd.s32 %s2607_s5, %s1162_s17  ;;  %s2609_s12 = smov %s2608_s20 }
 0x3d8   : > { %s1163_s7 = sshll.u32 %s888_s8, 4  ;;  %p1655_p0 = pneg %p1654_p12 }
 0x3d9   : > { %s890_s4 = scalar_lea.hbm %s2608_s20, %s1163_s7  ;;  %p1659_p11 = scmp.lt.s32.totalorder %s2406_s2, %s1657_s24 }
 0x3da   : > { %p1660_p2 = scmp.lt.s32.totalorder %s1658_s16, %s1652_s1 }
 0x3dc   : > { %p1661_p1 = por %p1660_p2, %p1659_p11 }
 0x3de   : > { %p1662_p4 = pnand %p1661_p1, %p1655_p0 }
 0x3e0   : > { %1665 = shalt.err (!%p1662_p4)
}
 0x3e1   : > { %s1666_s5 = scalar_lea.hbm %s890_s4, 16  ;;  %s1670_s8 = scalar_lea.hbm %s2609_s12, 64 }
 0x3e2   : > { %p1667_p8 = scmp.ne.s32.totalorder %s890_s4, %s1666_s5  ;;  %p1671_p5 = scmp.lt.u32.totalorder %s890_s4, %s2609_s12 }
 0x3e3   : > { %p1672_p10 = scmp.lt.u32.totalorder %s1670_s8, %s1666_s5  ;;  %p1674_p9 = scmp.lt.u32.totalorder %s1666_s5, %s890_s4 }
 0x3e4   : > { %p1668_p13 = pnand %p1667_p8, %p2610_p3 }
 0x3e5   : > { %p1673_p6 = por %p1672_p10, %p1671_p5 }
 0x3e6   : > { %p1669_p7 = pneg %p1668_p13 }
 0x3e7   : > { %p1675_p12 = por %p1674_p9, %p1673_p6 }
 0x3e9   : > { %p1676_p0 = pnand %p1675_p12, %p1669_p7 }
 0x3eb   : > { %1679 = shalt.err (!%p1676_p0)
}
 0x3ec   : > { %1228 = dma.vmem_to_hbm [thread:$0]  (%p2610_p3), %s2406_s2, 16, %s890_s4, %s873_s6  }
 0x3ed   : > { %s1169_s29 = sshll.u32 %s2606_s18, 8  ;;  %s905_s20 = sshll.u32 %s2384_s30, 4  ;;  %s2435_s20 = int_to_ptr.vmem [resolvable:$true] %s905_s20 }
 0x3ee   : > { %s2611_s24 = sld [smem:[#allocation48_spill]]  ;;  %s2439_s19 = scalar_lea.sflag [#allocation20], %s482_s3 }
 0x3ef   : > { %s1680_s5 = scalar_lea.vmem %s2435_s20, 256  ;;  %p2612_p2 = scmp.ne.s32.totalorder %s2581_s10, 0 }
 0x3f0   : > { %p1681_p11 = scmp.ne.s32.totalorder %s2435_s20, %s1680_s5  ;;  %s1846_s18 = smov [#allocation19]  }
 0x3f1   : > { %s1684_s30 = sshll.u32 %s1846_s18, 4  ;;  %s1685_s30 = int_to_ptr.vmem [resolvable:$false] %s1684_s30 }
 0x3f2   : > { %p1682_p1 = pnand %p1681_p11, %p2612_p2  ;;  %s1686_s2 = scalar_lea.vmem %s1685_s30, 512 }
 0x3f3   : > { %p1687_p4 = scmp.lt.s32.totalorder %s2435_s20, %s1685_s30  ;;  %p1688_p8 = scmp.lt.s32.totalorder %s1686_s2, %s1680_s5 }
 0x3f4   : > { %s2433_s16 = scalar_lea.hbm %s2611_s24, %s1169_s29  ;;  %p1683_p3 = pneg %p1682_p1 }
 0x3f5   : > { %p1689_p13 = por %p1688_p8, %p1687_p4 }
 0x3f7   : > { %p1690_p7 = pnand %p1689_p13, %p1683_p3 }
 0x3f9   : > { %1693 = shalt.err (!%p1690_p7)
}
 0x3fa   : > { %s1694_s3 = scalar_lea.hbm %s2433_s16, 256  ;;  %s1698_s27 = scalar_lea.hbm %s2611_s24, 512 }
 0x3fb   : > { %p1695_p5 = scmp.ne.s32.totalorder %s2433_s16, %s1694_s3  ;;  %p1699_p9 = scmp.lt.u32.totalorder %s2433_s16, %s2611_s24 }
 0x3fc   : > { %p1700_p12 = scmp.lt.u32.totalorder %s1698_s27, %s1694_s3  ;;  %p1702_p11 = scmp.lt.u32.totalorder %s1694_s3, %s2433_s16 }
 0x3fd   : > { %p1696_p10 = pnand %p1695_p5, %p2612_p2 }
 0x3fe   : > { %p1701_p0 = por %p1700_p12, %p1699_p9 }
 0x3ff   : > { %p1697_p6 = pneg %p1696_p10 }
 0x400   : > { %p1703_p1 = por %p1702_p11, %p1701_p0 }
 0x402   : > { %p1704_p3 = pnand %p1703_p1, %p1697_p6 }
 0x404   : > { %1707 = shalt.err (!%p1704_p3)
}
 0x405   : > { %s1847_s7 = smov 128   ;;  %s1848_s0 = smov 8  }
 0x406   : > { %1229 = dma.vmem_to_hbm [thread:$0]  (%p2612_p2), %s2435_s20, 256, %s2433_s16, %s2439_s19, %s1847_s7, %s1847_s7, %s1848_s0  }
 0x407 PF: > { %s2613_s29 = sld [smem:[#allocation29_spill]]  ;;  %p1281_p4 = scmp.ge.s32.totalorder %s1826_s23, 2 }
 0x408   : > { %p2614_p8 = scmp.ne.s32.totalorder %s2579_s9, 0 }
 0x40a   : > { %p1262_p13 = pnand %p1281_p4, %p2614_p8 }
 0x40d   : > { %s920_s1 = sand.u32 1, %s2613_s29  }
 0x40e   : > { %s921_s26 = scalar_lea.sflag [#allocation5], %s920_s1 }
 0x40f   : > { %1777 = dma.done.wait (!%p1262_p13), %s921_s26, 16  }
 0x410   : > { %1779 = vsyncadd (!%p1262_p13), %s921_s26, 4294967280  ;;  %s928_s5 = sand.u32 1, %s1786_s13   ;;  %p2615_p7 = scmp.ne.s32.totalorder %s2585_s28, 0 }
 0x411   : > { %s929_s18 = scalar_lea.sflag [#allocation20], %s928_s5 }
 0x412   : > { %p1265_p5 = pnand %p1281_p4, %p2615_p7 }
 0x414   : > { %1781 = dma.done.wait (!%p1265_p5), %s929_s18, 256  }
 0x415   : > { %1783 = vsyncadd (!%p1265_p5), %s929_s18, 4294967040  ;;  %s36_s23 = sadd.s32 1, %s1826_s23   ;;  %s2616_s16 = sld [smem:[#allocation30_spill]] }
 0x416   : > { %p33_p2 = scmp.ge.s32.totalorder %s36_s23, 6   ;;  %s2617_s17 = sld [smem:[#allocation31_spill]] }
 0x417   : > { %s2618_s18 = sld [smem:[#allocation37_spill]]  ;;  %s2619_s9 = sld [smem:[#allocation35_spill]] }
 0x418   : > { %s2620_s10 = sld [smem:[#allocation36_spill]]  ;;  %s2621_s13 = smov %s1790_s14 }
 0x419   : > { %s2622_s14 = smov %s1794_s15  ;;  %s2623_s15 = smov %s2245_s25 }
 0x41a   : > { %s2624_s19 = smov %s1818_s21  ;;  %s2625_s20 = smov %s1822_s22 }
 0x41b   :  { %35 = sbr.rel (!%p33_p2) target bundleno = 28 (0x1c), region = 174 }
 0x41d   : > { %s2626_s21 = smov %s2619_s9 }
 0x41e   : > { %s2627_s22 = smov %s2620_s10 }
 0x422   :  { %934 = vsyncpa [#allocation4], 1 }
 0x423   :  { %936 = vsyncpa [#allocation4 + $0x1], 1 }
 0x424   :  { %937 = vsyncpa [#allocation7], 1 }
 0x425   :  { %939 = vsyncpa [#allocation7 + $0x1], 1 }
 0x426   :  { %940 = vsyncpa [#allocation10], 1 }
 0x427   :  { %941 = vsyncpa [#allocation13], 1 }
 0x428   :  { %942 = vsyncpa [#allocation16], 1 }
 0x429   :  { %943 = vsyncpa [#allocation5], 1 }
 0x42a   :  { %945 = vsyncpa [#allocation5 + $0x1], 1 }
 0x42b   :  { %946 = vsyncpa [#allocation20], 1 }
 0x42c   :  { %948 = vsyncpa [#allocation20 + $0x1], 1 }

// kernel: _lambda_.5
= control target key start
LH: loop header
LB: loop body
LE: loop exit
PB: predicated region body
PF: predicated region fallthrough
CT: control target
= control target key end

     0   :  { %s3633_s0 = inlined_call_operand.hbm [shape: bf16[2,32,256], index: 0, kind: input, shape index: {}]   ;;  %s3634_s1 = inlined_call_operand.hbm [shape: bf16[2,32,256], index: 1, kind: input, shape index: {}]   ;;  %s3635_s2 = inlined_call_operand.hbm [shape: f32[2,32,1], index: 2, kind: input, shape index: {}]   ;;  %s3636_s3 = inlined_call_operand.hbm [shape: f32[2,1,256], index: 3, kind: input, shape index: {}]   ;;  %s3637_s4 = inlined_call_operand.hbm [shape: f32[2,256], index: 4, kind: input, shape index: {}]   ;;  %s3638_s5 = inlined_call_operand.hbm [shape: f32[32,288], index: 5, kind: input, shape index: {}]   ;;  %s3639_s6 = inlined_call_operand.hbm [shape: f32[32,1], index: 6, kind: input, shape index: {}]   ;;  %s3640_s7 = inlined_call_operand.hbm [shape: f32[2,32,256], index: 7, kind: output, shape index: {}]  }
   0x1   :  { %3660 = sst [smem:[#allocation28_spill]] %s3634_s1 }
   0x2   :  { %3661 = sst [smem:[#allocation29_spill]] %s3637_s4 }
   0x3   :  { %3662 = sst [smem:[#allocation30_spill]] %s3638_s5 }
   0x4   :  { %3663 = sst [smem:[#allocation31_spill]] %s3640_s7 }
   0x5   :  { %12 = vsyncpa [#allocation5], 0 }
   0x6   :  { %14 = vsyncpa [#allocation5 + $0x1], 0 }
   0x7   :  { %15 = vsyncpa [#allocation8], 0 }
   0x8   :  { %17 = vsyncpa [#allocation8 + $0x1], 0 }
   0x9   :  { %18 = vsyncpa [#allocation11], 0 }
   0xa   :  { %20 = vsyncpa [#allocation11 + $0x1], 0 }
   0xb   :  { %21 = vsyncpa [#allocation14], 0 }
   0xc   :  { %22 = vsyncpa [#allocation6], 0 }
   0xd   :  { %24 = vsyncpa [#allocation6 + $0x1], 0  ;;  %s2713_s24 = smov 0   ;;  %s2715_s25 = smov 0  }
   0xe   :  { %s2717_s26 = smov 0   ;;  %s2719_s27 = smov 0  }
   0xf LB: > { %3664 = sst [smem:[#allocation23_spill]] %s2630_s24  ;;  %s2734_s28 = sadd.s32 4294967295, %s2642_s27   ;;  %s2642_s27 = sphi %s2719_s27, %s3703_s27   ;;  %s2638_s26 = sphi %s2717_s26, %s3705_s26   ;;  %s2634_s25 = sphi %s2715_s25, %s3707_s25   ;;  %s2630_s24 = sphi %s2713_s24, %s3706_s24  }
  0x10   : > { %3665 = sst [smem:[#allocation24_spill]] %s2638_s26  ;;  %s1872_s29 = sadd.s32 4294967294, %s2642_s27  }
  0x11   : > { %s2738_s30 = sadd.s32 1, %s2642_s27   ;;  %s37_s8 = sadd.s32 1, %s2638_s26 }
  0x12   : > { %3666 = sst [smem:[#allocation25_spill]] %s2738_s30  ;;  %s34_s9 = ssub.s32 %s2642_s27, %s2738_s30 }
  0x13   : > { %p44_p0 = scmp.ne.s32.totalorder %s2638_s26, %s2634_s25  ;;  %p35_p1 = scmp.eq.s32.totalorder %s34_s9, 0 }
  0x14   : > { %p45_p2 = scmp.eq.s32.totalorder %s2642_s27, 0  ;;  %p50_p3 = scmp.ne.s32.totalorder %s2634_s25, %s2630_s24 }
  0x15   : > { %p3641_p4 = scmp.eq.s32.totalorder %s2734_s28, 0  ;;  %p215_p7 = scmp.eq.s32.totalorder %s2734_s28, 1 }
  0x16   : > { %s2750_s10 = scalar_select %p35_p1, %s2638_s26, %s37_s8  }
  0x17   : > { %p2752_p5 = por %p45_p2, %p44_p0  ;;  %p2758_p6 = por %p3641_p4, %p50_p3 }
  0x18   : > { %3667 = sst [smem:[#allocation26_spill]] %s2750_s10  ;;  %p221_p8 = scmp.eq.s32.totalorder %s1872_s29, 1 }
  0x19   : > { %s3668_s11 = scalar_select %p2752_p5, 1, 0 }
  0x1a   : > { %s3669_s12 = scalar_select %p2758_p6, 1, 0 }
  0x1b   : > { %p1873_p9 = scmp.ge.s32.totalorder %s2642_s27, 1  ;;  %p228_p10 = scmp.lt.s32.totalorder %s2642_s27, 3 }
  0x1c   : > { %p2765_p11 = por %p215_p7, %p44_p0  ;;  %p2769_p12 = por %p221_p8, %p50_p3 }
  0x1d   : > { %p2773_p13 = pnand %p1873_p9, %p228_p10  ;;  %s2644_s16 = smov [#allocation12]  }
  0x1e   : > { %s3670_s13 = scalar_select %p2765_p11, 1, 0 }
  0x1f   : > { %s3671_s14 = scalar_select %p2769_p12, 1, 0 }
  0x20   : > { %s3673_s15 = scalar_select %p2773_p13, 1, 0 }
  0x21   : > { %3672 = sst [smem:[#allocation27_spill]] %s3671_s14  ;;  %p2023_p2 = pneg %p2773_p13 }
  0x22   : > { %s241_s17 = sshll.u32 %s2644_s16, 4  ;;  %s2645_s19 = smov [#allocation13]   ;;  %s242_s17 = int_to_ptr.vmem [resolvable:$true] %s241_s17 }
  0x23   : > { %p2782_p0 = pnand %p2023_p2, %p3641_p4  ;;  %s251_s20 = sshll.u32 %s2645_s19, 4  ;;  %s2786_s20 = int_to_ptr.vmem [resolvable:$true] %s251_s20 }
  0x24   : > { %s3675_s4 = sld [smem:[#allocation29_spill]] }
  0x25   : > { %s3674_s18 = scalar_select %p2782_p0, 1, 0 }
  0x26   : > { %p2796_p7 = pneg %p2782_p0 }
  0x28   : > { %s3676_s9 = scalar_select %p2796_p7, 1, 0 }
  0x2a   : > { %s2356_s23 = scalar_lea.hbm %s3675_s4, 64 }
  0x2b   : > { %p2357_p3 = scmp.ne.s32.totalorder %s3675_s4, %s2356_s23  ;;  %p2363_p10 = scmp.lt.u32.totalorder %s2356_s23, %s3675_s4 }
  0x2d   : > { %p2359_p8 = pnand %p2796_p7, %p2357_p3 }
  0x2f   : > { %p2360_p9 = pneg %p2359_p8 }
  0x31   : > { %p2365_p2 = pnand %p2363_p10, %p2360_p9 }
  0x33   : > { %2368 = shalt.err (!%p2365_p2)
}
  0x34   : > { %s2369_s21 = scalar_lea.vmem %s242_s17, 64  ;;  %p2377_p11 = scmp.lt.s32.totalorder %s242_s17, %s242_s17 }
  0x35   : > { %p2370_p1 = scmp.ne.s32.totalorder %s242_s17, %s2369_s21  ;;  %p2378_p6 = scmp.lt.s32.totalorder %s2369_s21, %s2369_s21 }
  0x37   : > { %p2372_p4 = pnand %p2370_p1, %p2796_p7  ;;  %p2379_p13 = por %p2378_p6, %p2377_p11 }
  0x39   : > { %p2373_p12 = pneg %p2372_p4 }
  0x3b   : > { %p2380_p5 = pnand %p2379_p13, %p2373_p12 }
  0x3d   : > { %2383 = shalt.err (!%p2380_p5)
}
  0x3e   : > { %2026 = dma.hbm_to_vmem [thread:$0]  (!%p2782_p0), %s3675_s4, 64, %s242_s17, [#allocation11]  }
  0x3f   : > { %s3677_s5 = sld [smem:[#allocation30_spill]] }
  0x45   : > { %s2384_s16 = scalar_lea.hbm %s3677_s5, 1536 }
  0x46   : > { %p2385_p4 = scmp.ne.s32.totalorder %s3677_s5, %s2384_s16  ;;  %p2391_p5 = scmp.lt.u32.totalorder %s2384_s16, %s3677_s5 }
  0x48   : > { %p2387_p1 = pnand %p2385_p4, %p2796_p7 }
  0x4a   : > { %p2388_p6 = pneg %p2387_p1 }
  0x4c   : > { %p2393_p11 = pnand %p2391_p5, %p2388_p6 }
  0x4e   : > { %2396 = shalt.err (!%p2393_p11)
}
  0x4f   : > { %s2397_s17 = scalar_lea.vmem %s2786_s20, 1536  ;;  %p2405_p8 = scmp.lt.s32.totalorder %s2786_s20, %s2786_s20 }
  0x50   : > { %p2398_p12 = scmp.ne.s32.totalorder %s2786_s20, %s2397_s17  ;;  %p2406_p9 = scmp.lt.s32.totalorder %s2397_s17, %s2397_s17 }
  0x52   : > { %p2400_p13 = pnand %p2398_p12, %p2796_p7  ;;  %p2407_p10 = por %p2406_p9, %p2405_p8 }
  0x54   : > { %p2401_p3 = pneg %p2400_p13 }
  0x56   : > { %p2408_p2 = pnand %p2407_p10, %p2401_p3 }
  0x58   : > { %2411 = shalt.err (!%p2408_p2)
}
  0x59   : > { %s2646_s10 = smov 384   ;;  %s2647_s30 = smov 24  }
  0x5a   : > { %2029 = dma.hbm_to_vmem [thread:$0]  (!%p2782_p0), %s3677_s5, 1536, %s2786_s20, [#allocation14], %s2646_s10, %s2646_s10, %s2647_s30  }
  0x5b   : > { %p2053_p4 = scmp.lt.s32.totalorder %s2642_s27, 2  ;;  %s2837_s23 = sand.u32 1, %s2638_s26  }
  0x5c   : > { %s2840_s8 = sshll.u32 %s2837_s23, 5  ;;  %s2843_s16 = sshll.u32 %s2642_s27, 9 }
  0x5d   : > { %p3678_p1 = scmp.ne.s32.totalorder %s3668_s11, 0  ;;  %s3649_s21 = sand.u32 1, %s2642_s27  }
  0x5e   : > { %s3680_s1 = sld [smem:[#allocation28_spill]]  ;;  %s303_s10 = scalar_lea.vmem [#allocation7], %s2840_s8 }
  0x5f   : > { %p2847_p6 = pnand %p2053_p4, %p3678_p1  ;;  %s310_s30 = sshll.u32 %s303_s10, 4  ;;  %s2859_s30 = int_to_ptr.vmem [resolvable:$true] %s310_s30 }
  0x60   : > { %s2648_s11 = smov [#allocation15]   ;;  %s2865_s4 = scalar_lea.sflag [#allocation8], %s3649_s21 }
  0x61   : > { %s3679_s19 = scalar_select %p2847_p6, 1, 0 }
  0x62   : > { %s2861_s29 = sshll.u32 %s2648_s11, 4  ;;  %p2871_p11 = pneg %p2847_p6  ;;  %s265_s29 = int_to_ptr.vmem [resolvable:$true] %s2861_s29 }
  0x64   : > { %s2856_s20 = scalar_lea.hbm %s3680_s1, %s2843_s16  ;;  %s2417_s26 = scalar_lea.hbm %s3680_s1, 1024 }
  0x65   : > { %s2412_s5 = scalar_lea.hbm %s2856_s20, 512  ;;  %p2418_p3 = scmp.lt.u32.totalorder %s2856_s20, %s3680_s1 }
  0x66   : > { %p2413_p5 = scmp.ne.s32.totalorder %s2856_s20, %s2412_s5  ;;  %p2419_p8 = scmp.lt.u32.totalorder %s2417_s26, %s2412_s5 }
  0x67   : > { %p2421_p10 = scmp.lt.u32.totalorder %s2412_s5, %s2856_s20 }
  0x68   : > { %p2415_p12 = pnand %p2871_p11, %p2413_p5  ;;  %p2420_p9 = por %p2419_p8, %p2418_p3 }
  0x6a   : > { %p2416_p13 = pneg %p2415_p12  ;;  %p2422_p2 = por %p2421_p10, %p2420_p9 }
  0x6c   : > { %p2423_p4 = pnand %p2422_p2, %p2416_p13 }
  0x6e   : > { %2426 = shalt.err (!%p2423_p4)
}
  0x6f   : > { %s2427_s21 = scalar_lea.vmem %s2859_s30, 512  ;;  %s2649_s22 = smov [#allocation7]  }
  0x70   : > { %p2428_p1 = scmp.ne.s32.totalorder %s2859_s30, %s2427_s21  ;;  %s2432_s10 = sshll.u32 %s2649_s22, 4  ;;  %s2433_s10 = int_to_ptr.vmem [resolvable:$false] %s2432_s10 }
  0x71   : > { %s2434_s14 = scalar_lea.vmem %s2433_s10, 1024  ;;  %p2435_p0 = scmp.lt.s32.totalorder %s2859_s30, %s2433_s10 }
  0x72   : > { %p2430_p5 = pnand %p2428_p1, %p2871_p11  ;;  %p2436_p7 = scmp.lt.s32.totalorder %s2434_s14, %s2427_s21 }
  0x74   : > { %p2431_p12 = pneg %p2430_p5  ;;  %p2437_p3 = por %p2436_p7, %p2435_p0 }
  0x76   : > { %p2438_p8 = pnand %p2437_p3, %p2431_p12 }
  0x78   : > { %2441 = shalt.err (!%p2438_p8)
}
  0x79   : > { %s2650_s5 = smov 128   ;;  %s2651_s26 = smov 8  }
  0x7a   : > { %2039 = dma.hbm_to_vmem [thread:$0]  (!%p2847_p6), %s2856_s20, 512, %s2859_s30, %s2865_s4, %s2650_s5, %s2650_s5, %s2651_s26  }
  0x7b   : > { %s2442_s21 = scalar_lea.hbm %s3639_s6, 512  ;;  %p3682_p7 = scmp.ne.s32.totalorder %s3676_s9, 0 }
  0x7c   : > { %p2443_p0 = scmp.ne.s32.totalorder %s3639_s6, %s2442_s21  ;;  %p2449_p10 = scmp.lt.u32.totalorder %s2442_s21, %s3639_s6 }
  0x7e   : > { %p2445_p13 = pnand %p2443_p0, %p3682_p7 }
  0x80   : > { %p2446_p9 = pneg %p2445_p13 }
  0x82   : > { %p2451_p2 = pnand %p2449_p10, %p2446_p9 }
  0x84   : > { %2454 = shalt.err (!%p2451_p2)
}
  0x85   : > { %s2455_s7 = scalar_lea.vmem %s265_s29, 512  ;;  %p2463_p12 = scmp.lt.s32.totalorder %s265_s29, %s265_s29 }
  0x86   : > { %p2456_p4 = scmp.ne.s32.totalorder %s265_s29, %s2455_s7  ;;  %p2464_p3 = scmp.lt.s32.totalorder %s2455_s7, %s2455_s7 }
  0x88   : > { %p2458_p1 = pnand %p2456_p4, %p3682_p7  ;;  %p2465_p8 = por %p2464_p3, %p2463_p12 }
  0x8a   : > { %p2459_p5 = pneg %p2458_p1 }
  0x8c   : > { %p2466_p6 = pnand %p2465_p8, %p2459_p5 }
  0x8e   : > { %2469 = shalt.err (!%p2466_p6)
}
  0x8f   : > { %p3683_p0 = scmp.ne.s32.totalorder %s3674_s18, 0  ;;  %s2924_s7 = scalar_lea.hbm %s3633_s0, %s2843_s16 }
  0x90   : > { %s282_s18 = scalar_lea.vmem [#allocation4], %s2840_s8  ;;  %s2933_s21 = scalar_lea.hbm %s3635_s2, %s2843_s16 }
  0x91   : > { %2032 = dma.hbm_to_vmem [thread:$0]  (!%p3683_p0), %s3639_s6, 512, %s265_s29, [#allocation14], %s2650_s5, %s2650_s5, %s2651_s26  }
  0x92   : > { %s289_s30 = sshll.u32 %s282_s18, 4  ;;  %s279_s10 = scalar_lea.sflag [#allocation5], %s2837_s23  ;;  %s2927_s30 = int_to_ptr.vmem [resolvable:$true] %s289_s30 }
  0x93   : > { %s2470_s29 = scalar_lea.hbm %s2924_s7, 512  ;;  %s2475_s24 = scalar_lea.hbm %s3633_s0, 1024 }
  0x94   : > { %p2471_p6 = scmp.ne.s32.totalorder %s2924_s7, %s2470_s29  ;;  %p2476_p9 = scmp.lt.u32.totalorder %s2924_s7, %s3633_s0 }
  0x95   : > { %p2477_p10 = scmp.lt.u32.totalorder %s2475_s24, %s2470_s29  ;;  %p2479_p4 = scmp.lt.u32.totalorder %s2470_s29, %s2924_s7 }
  0x96   : > { %p2473_p7 = pnand %p2471_p6, %p2871_p11 }
  0x97   : > { %p2478_p2 = por %p2477_p10, %p2476_p9 }
  0x98   : > { %p2474_p13 = pneg %p2473_p7 }
  0x99   : > { %p2480_p1 = por %p2479_p4, %p2478_p2 }
  0x9b   : > { %p2481_p5 = pnand %p2480_p1, %p2474_p13 }
  0x9d   : > { %2484 = shalt.err (!%p2481_p5)
}
  0x9e   : > { %s2485_s16 = scalar_lea.vmem %s2927_s30, 512  ;;  %s2652_s18 = smov [#allocation4]  }
  0x9f   : > { %p2486_p12 = scmp.ne.s32.totalorder %s2927_s30, %s2485_s16  ;;  %s2490_s11 = sshll.u32 %s2652_s18, 4  ;;  %s2491_s11 = int_to_ptr.vmem [resolvable:$false] %s2490_s11 }
  0xa0   : > { %s2492_s22 = scalar_lea.vmem %s2491_s11, 1024  ;;  %p2493_p0 = scmp.lt.s32.totalorder %s2927_s30, %s2491_s11 }
  0xa1   : > { %p2488_p3 = pnand %p2486_p12, %p2871_p11  ;;  %p2494_p6 = scmp.lt.s32.totalorder %s2492_s22, %s2485_s16 }
  0xa3   : > { %p2489_p8 = pneg %p2488_p3  ;;  %p2495_p7 = por %p2494_p6, %p2493_p0 }
  0xa5   : > { %p2496_p9 = pnand %p2495_p7, %p2489_p8 }
  0xa7   : > { %2499 = shalt.err (!%p2496_p9)
}
  0xa8   : > { %p3684_p13 = scmp.ne.s32.totalorder %s3679_s19, 0  ;;  %s324_s29 = scalar_lea.vmem [#allocation9], %s2840_s8 }
  0xa9   : > { %s331_s14 = sshll.u32 %s324_s29, 4  ;;  %s1887_s1 = sshll.u32 %s2837_s23, 1  ;;  %s2963_s14 = int_to_ptr.vmem [resolvable:$true] %s331_s14 }
  0xaa   : > { %2036 = dma.hbm_to_vmem [thread:$0]  (!%p3684_p13), %s2924_s7, 512, %s2927_s30, %s279_s10, %s2650_s5, %s2650_s5, %s2651_s26  }
  0xab   : > { %s2500_s24 = scalar_lea.hbm %s2933_s21, 512  ;;  %s2505_s16 = scalar_lea.hbm %s3635_s2, 1024 }
  0xac   : > { %p2501_p10 = scmp.ne.s32.totalorder %s2933_s21, %s2500_s24  ;;  %p2506_p1 = scmp.lt.u32.totalorder %s2933_s21, %s3635_s2 }
  0xad   : > { %p2507_p5 = scmp.lt.u32.totalorder %s2505_s16, %s2500_s24  ;;  %p2509_p3 = scmp.lt.u32.totalorder %s2500_s24, %s2933_s21 }
  0xae   : > { %p2503_p2 = pnand %p2501_p10, %p2871_p11 }
  0xaf   : > { %p2508_p12 = por %p2507_p5, %p2506_p1 }
  0xb0   : > { %p2504_p4 = pneg %p2503_p2 }
  0xb1   : > { %p2510_p8 = por %p2509_p3, %p2508_p12 }
  0xb3   : > { %p2511_p0 = pnand %p2510_p8, %p2504_p4 }
  0xb5   : > { %2514 = shalt.err (!%p2511_p0)
}
  0xb6   : > { %s2515_s8 = scalar_lea.vmem %s2963_s14, 512  ;;  %s2653_s7 = smov [#allocation9]  }
  0xb7   : > { %p2516_p6 = scmp.ne.s32.totalorder %s2963_s14, %s2515_s8  ;;  %s2520_s30 = sshll.u32 %s2653_s7, 4  ;;  %s2521_s30 = int_to_ptr.vmem [resolvable:$false] %s2520_s30 }
  0xb8   : > { %s2522_s10 = scalar_lea.vmem %s2521_s30, 1024  ;;  %p2523_p10 = scmp.lt.s32.totalorder %s2963_s14, %s2521_s30 }
  0xb9   : > { %p2518_p7 = pnand %p2516_p6, %p2871_p11  ;;  %p2524_p2 = scmp.lt.s32.totalorder %s2522_s10, %s2515_s8 }
  0xbb   : > { %p2519_p9 = pneg %p2518_p7  ;;  %p2525_p1 = por %p2524_p2, %p2523_p10 }
  0xbd   : > { %p2526_p5 = pnand %p2525_p1, %p2519_p9 }
  0xbf   : > { %2529 = shalt.err (!%p2526_p5)
}
  0xc0   : > { %2042 = dma.hbm_to_vmem [thread:$0]  (!%p3684_p13), %s2933_s21, 512, %s2963_s14, %s2865_s4, %s2650_s5, %s2650_s5, %s2651_s26  }
  0xc1   : > { %s1911_s22 = sshll.u32 %s2642_s27, 5  ;;  %s345_s20 = scalar_lea.vmem [#allocation10], %s1887_s1 }
  0xc2   : > { %s2995_s9 = scalar_lea.hbm %s3636_s3, %s1911_s22  ;;  %s353_s16 = sshll.u32 %s345_s20, 4  ;;  %s354_s16 = int_to_ptr.vmem [resolvable:$true] %s353_s16 }
  0xc3   : > { %s3685_s18 = sand.u32 1, %s2642_s27   ;;  %s2530_s8 = scalar_lea.hbm %s2995_s9, 32 }
  0xc4   : > { %s342_s11 = scalar_lea.sflag [#allocation11], %s3685_s18  ;;  %p2531_p4 = scmp.ne.s32.totalorder %s2995_s9, %s2530_s8 }
  0xc5   : > { %s2535_s26 = scalar_lea.hbm %s3636_s3, 64  ;;  %p2536_p8 = scmp.lt.u32.totalorder %s2995_s9, %s3636_s3 }
  0xc6   : > { %p2533_p12 = pnand %p2531_p4, %p2871_p11  ;;  %p2537_p0 = scmp.lt.u32.totalorder %s2535_s26, %s2530_s8 }
  0xc7   : > { %p2539_p7 = scmp.lt.u32.totalorder %s2530_s8, %s2995_s9 }
  0xc8   : > { %p2534_p3 = pneg %p2533_p12  ;;  %p2538_p6 = por %p2537_p0, %p2536_p8 }
  0xca   : > { %p2540_p9 = por %p2539_p7, %p2538_p6 }
  0xcc   : > { %p2541_p10 = pnand %p2540_p9, %p2534_p3 }
  0xce   : > { %2544 = shalt.err (!%p2541_p10)
}
  0xcf   : > { %s2545_s14 = scalar_lea.vmem %s354_s16, 32  ;;  %s2654_s1 = smov [#allocation10]  }
  0xd0   : > { %p2546_p2 = scmp.ne.s32.totalorder %s354_s16, %s2545_s14  ;;  %s2550_s7 = sshll.u32 %s2654_s1, 4  ;;  %s2551_s7 = int_to_ptr.vmem [resolvable:$false] %s2550_s7 }
  0xd1   : > { %s2552_s30 = scalar_lea.vmem %s2551_s7, 64  ;;  %p2553_p4 = scmp.lt.s32.totalorder %s354_s16, %s2551_s7 }
  0xd2   : > { %p2548_p1 = pnand %p2546_p2, %p2871_p11  ;;  %p2554_p12 = scmp.lt.s32.totalorder %s2552_s30, %s2545_s14 }
  0xd4   : > { %p2549_p5 = pneg %p2548_p1  ;;  %p2555_p13 = por %p2554_p12, %p2553_p4 }
  0xd6   : > { %p2556_p0 = pnand %p2555_p13, %p2549_p5 }
  0xd8   : > { %2559 = shalt.err (!%p2556_p0)
}
  0xd9   : > { %p3686_p8 = scmp.ne.s32.totalorder %s3679_s19, 0  ;;  %p3687_p3 = scmp.ne.s32.totalorder %s3673_s15, 0 }
  0xda   : > { %s3021_s17 = sand.u32 (!%p3687_p3), 1, %s2634_s25   ;;  %p3688_p11 = scmp.ne.s32.totalorder (!%p3687_p3), %s3669_s12, 0 }
  0xdb   : > { %2045 = dma.hbm_to_vmem [thread:$0]  (!%p3686_p8), %s2995_s9, 32, %s354_s16, %s342_s11  }
  0xdc   : > { %362 = sbr.rel (%p3687_p3) target bundleno = 972 (0x3cc), region = 48  ;;  %s1891_s10 = sshll.u32 (!%p3687_p3), %s3021_s17, 5 }
  0xdd   : > { %s365_s22 = scalar_lea.sflag (!%p3687_p3), [#allocation5], %s3021_s17  ;;  %s3025_s29 = scalar_lea.vmem (!%p3687_p3), [#allocation4], %s1891_s10 }
  0xe3   : > { %2605 = dma.done.wait (%p3688_p11), %s365_s22, 512  }
  0xe4   : > { %2607 = vsyncadd (%p3688_p11), %s365_s22, 4294966784  ;;  %s373_s19 = sand.u32 1, %s2734_s28   ;;  %s3032_s24 = scalar_lea.vmem [#allocation7], %s1891_s10 }
  0xe5   : > { %s374_s15 = scalar_lea.sflag [#allocation8], %s373_s19 }
  0xe6   : > { %2609 = dma.done.wait (%p3688_p11), %s374_s15, 1024  }
  0xe7   : > { %2611 = vsyncadd (%p3688_p11), %s374_s15, 4294966272  ;;  %s1894_s9 = sshll.u32 %s3021_s17, 1  ;;  %s386_s20 = scalar_lea.vmem [#allocation9], %s1891_s10 }
  0xe8   : > { %s392_s16 = scalar_lea.sflag [#allocation11], %s373_s19  ;;  %s3039_s18 = scalar_lea.vmem [#allocation10], %s1894_s9 }
  0xe9   : > { %2613 = dma.done.wait (%p3688_p11), %s392_s16, 32  }
  0xea   : > { %2615 = vsyncadd (%p3688_p11), %s392_s16, 4294967264  ;;  %p3689_p13 = scmp.eq.s32.totalorder %s2734_s28, 0 }
  0xec   : > { %2617 = dma.done.wait (%p3689_p13), [#allocation11], 64   ;;  %p3690_p6 = pmov %p3689_p13 }
  0xee   : > { %2619 = vsyncadd (%p3690_p6), [#allocation11], 4294967232  ;;  %p3691_p7 = pmov %p3690_p6 }
  0xef   : > { %p3692_p9 = pmov %p3690_p6 }
  0xf0   : > { %2621 = dma.done.wait (%p3691_p7), [#allocation14], 2048  }
  0xf1   : > { %2623 = vsyncadd (%p3692_p9), [#allocation14], 4294965248  ;;  %v2655_v0 = vmov 0   ;;  %v487_v1 = vld [vmem:[%s386_s20] sm:$0xff]  ;;  %v489_v2 = vld [vmem:[%s386_s20 + $0x10] sm:$0xff]  ;;  %vm453_vm0 = vcmask 138240   ;;  %v522_v6 = vlaneseq }
  0xf2   : > { %2114 = vset.pattern.permute.xlu0 %v2655_v0  ;;  %2115 = vset.pattern.permute.xlu1 %v2655_v0  ;;  %v488_v3 = vld [vmem:[%s386_s20 + $0x8] sm:$0xff]  ;;  %v490_v4 = vld [vmem:[%s386_s20 + $0x18] sm:$0xff]  ;;  %vm458_vm1 = vcmask 277640   ;;  %v3658_v5 = vmov 0.0   ;;  %v519_v8 = vld [vmem:[%s3039_s18] sm:$0x3] }
  0xf3   : > { %493 = vperm.xlu0 %2114, %v487_v1   ;;  %503 = vperm.xlu1 %2115, %v489_v2   ;;  %459 = vst.msk [vmem:[#allocation2 + $0x10] sm:$0xff] %vm458_vm1, %v3658_v5  ;;  %460 = vst.msk [vmem:[#allocation2 + $0x28] sm:$0xff] %vm458_vm1, %v3658_v5  ;;  %v523_v7 = vshrl.u32 %v522_v6, 7  ;;  %v520_v9 = vadd.f32 2.0, %v519_v8  ;;  %v463_v12 = vld [vmem:[%s3025_s29] sm:$0xff]  ;;  %v464_v18 = vld [vmem:[%s3025_s29 + $0x8] sm:$0xff] }
  0xf4   : > { %454 = vst.msk [vmem:[#allocation2] sm:$0xff] %vm453_vm0, %v3658_v5  ;;  %455 = vst.msk [vmem:[#allocation2 + $0x18] sm:$0xff] %vm453_vm0, %v3658_v5  ;;  %1650 = vmatprep.mubr.f32.mxu0 %v3658_v5  ;;  %v475_v13 = vld [vmem:[%s3032_s24] sm:$0xff]  ;;  %v467_v16 = vunpack.c.l.bf16 %v463_v12  ;;  %v468_v17 = vunpack.c.h.bf16 %v463_v12  ;;  %v465_v21 = vld [vmem:[%s3025_s29 + $0x10] sm:$0xff]  ;;  %v469_v26 = vunpack.c.l.bf16 %v464_v18  ;;  %v470_v27 = vunpack.c.h.bf16 %v464_v18  ;;  %s2657_s12 = smov 17   ;;  %s2658_s11 = smov 2  }
  0xf5   : > { %456 = vst.msk [vmem:[#allocation2 + $0x30] sm:$0xff] %vm453_vm0, %v3658_v5  ;;  %457 = vst.msk [vmem:[#allocation2 + $0x48] sm:$0xff] %vm453_vm0, %v3658_v5  ;;  %v3067_v10 = vsub.s32 0, %v523_v7  ;;  %v3069_v11 = vsub.s32 1, %v523_v7  ;;  %v479_v19 = vunpack.c.l.bf16 %v475_v13  ;;  %v480_v20 = vunpack.c.h.bf16 %v475_v13  ;;  %v477_v22 = vld [vmem:[%s3032_s24 + $0x10] sm:$0xff]  ;;  %v476_v23 = vld [vmem:[%s3032_s24 + $0x8] sm:$0xff] }
  0xf6   : > { %461 = vst.msk [vmem:[#allocation2 + $0x40] sm:$0xff] %vm458_vm1, %v3658_v5  ;;  %462 = vst.msk [vmem:[#allocation2 + $0x58] sm:$0xff] %vm458_vm1, %v3658_v5  ;;  %v471_v29 = vunpack.c.l.bf16 %v465_v21  ;;  %v472_v30 = vunpack.c.h.bf16 %v465_v21  ;;  %v483_v31 = vunpack.c.l.bf16 %v477_v22  ;;  %v484_v32 = vunpack.c.h.bf16 %v477_v22  ;;  %v466_v42 = vld [vmem:[%s3025_s29 + $0x18] sm:$0xff]  ;;  %v723_v0 = vld [vmem:[#allocation12 + $0x1] ss:$2 sm:$0x3] }
  0xf7   : > { %498 = vperm.xlu0 %2114, %v488_v3   ;;  %508 = vperm.xlu1 %2115, %v490_v4   ;;  %v525_v14 = vrot.slane %v520_v9, %v3067_v10  ;;  %v529_v15 = vrot.slane %v520_v9, %v3069_v11  ;;  %v481_v35 = vunpack.c.l.bf16 %v476_v23  ;;  %v482_v36 = vunpack.c.h.bf16 %v476_v23  ;;  %v478_v47 = vld [vmem:[%s3032_s24 + $0x18] sm:$0xff]  ;;  %v827_v6 = vld [vmem:[#allocation12] ss:$2 sm:$0x3]  ;;  %s2659_s8 = smov 16   ;;  %s2660_s4 = smov 18  }
  0xf8   : > { %v473_v51 = vunpack.c.l.bf16 %v466_v42  ;;  %v474_v52 = vunpack.c.h.bf16 %v466_v42  ;;  %v485_v55 = vunpack.c.l.bf16 %v478_v47  ;;  %v486_v56 = vunpack.c.h.bf16 %v478_v47  ;;  %v1004_v9 = vld [vmem:[#allocation12 + $0x1] ss:$2 sm:$0x3]  ;;  %s2661_s5 = smov 32   ;;  %s2662_s26 = smov 34  }
  0xf9   : > { %v532_v24 = vmul.f32 %v525_v14, %v467_v16  ;;  %v533_v25 = vmul.f32 %v529_v15, %v468_v17  ;;  %v534_v40 = vmul.f32 %v525_v14, %v469_v26  ;;  %v535_v41 = vmul.f32 %v529_v15, %v470_v27  ;;  %v1285_v17 = vld [vmem:[#allocation12 + $0x1] ss:$2 sm:$0x3]  ;;  %s2663_s21 = smov 127   ;;  %s2664_s23 = smov 111  }
  0xfa   : > { %v536_v44 = vmul.f32 %v525_v14, %v471_v29  ;;  %v537_v45 = vmul.f32 %v529_v15, %v472_v30  ;;  %v538_v62 = vmul.f32 %v525_v14, %v473_v51  ;;  %v539_v63 = vmul.f32 %v529_v15, %v474_v52  ;;  %v1108_v14 = vld [vmem:[#allocation12] ss:$2 sm:$0x3]  ;;  %s2665_s14 = smov 95   ;;  %s2666_s1 = smov 126  }
  0xfb   : > { %v732_v3 = vrot.slane %v723_v0, %v3069_v11  ;;  %v728_v4 = vrot.slane %v723_v0, %v3067_v10  ;;  %v836_v7 = vrot.slane %v827_v6, %v3069_v11  ;;  %v832_v8 = vrot.slane %v827_v6, %v3067_v10  ;;  %s2667_s7 = smov 112   ;;  %s2668_s30 = smov 110  }
  0xfc   : > { %v1013_v12 = vrot.slane %v1004_v9, %v3069_v11  ;;  %v1009_v13 = vrot.slane %v1004_v9, %v3067_v10  ;;  %v1117_v15 = vrot.slane %v1108_v14, %v3069_v11  ;;  %v1113_v16 = vrot.slane %v1108_v14, %v3067_v10  ;;  %s2669_s10 = smov 96   ;;  %s2670_s22 = smov 94  }
  0xfd   : > { %v1294_v18 = vrot.slane %v1285_v17, %v3069_v11  ;;  %vm588_vm2 = vcmask 1047688   ;;  %vm1122_vm3 = vcmask 261120   ;;  %vm1299_vm4 = vcmask 277504   ;;  %s1898_s29 = sshll.u32 %s3021_s17, 6  ;;  %s1912_s24 = sshll.u32 %s2734_s28, 10 }
  0xfe   : > { %vm737_vm5 = vcmask 15360   ;;  %vm841_vm6 = vcmask 130048   ;;  %vm1018_vm7 = vcmask 146432   ;;  %vm685_vm8 = vcmask 1039360   ;;  %s3571_s19 = scalar_lea.vmem [#allocation16], %s1898_s29  ;;  %s3697_s16 = sld [smem:[#allocation31_spill]] }
  0xff   : > { %vm790_vm9 = vcmask 1031168   ;;  %vm894_vm10 = vcmask 916480   ;;  %vm967_vm11 = vcmask 908288   ;;  %vm1071_vm12 = vcmask 900096   ;;  %s1705_s15 = sshll.u32 %s3571_s19, 4  ;;  %p3698_p2 = scmp.ne.s32.totalorder %s3670_s13, 0  ;;  %s3581_s15 = int_to_ptr.vmem [resolvable:$true] %s1705_s15 }
 0x100   : > { %vm1248_vm13 = vcmask 777216   ;;  %vm1175_vm14 = vcmask 785408   ;;  %vm1352_vm15 = vcmask 769024   ;;  %s2671_s28 = smov [#allocation16]  }
 0x104   : > { %s3586_s18 = scalar_lea.hbm %s3697_s16, %s1912_s24 }
 0x172   : > { %v494_v28 = vpop.permute.xlu0 %493  ;;  %v504_v37 = vpop.permute.xlu1 %503 }
 0x173   : > { %v511_v33 = vmul.f32 %v494_v28, %v479_v19  ;;  %v512_v34 = vmul.f32 %v494_v28, %v480_v20  ;;  %v515_v43 = vmul.f32 %v504_v37, %v483_v31  ;;  %v516_v48 = vmul.f32 %v504_v37, %v484_v32  ;;  %v609_v20 = vld [vmem:[#allocation12] ss:$2 sm:$0x3] }
 0x174   : > { %v1290_v19 = vrot.slane %v1285_v17, %v3067_v10 }
 0x175   : > { %v540_v38 = vadd.f32 %v532_v24, %v511_v33  ;;  %v541_v39 = vadd.f32 %v533_v25, %v512_v34  ;;  %v544_v58 = vadd.f32 %v536_v44, %v515_v43  ;;  %v545_v59 = vadd.f32 %v537_v45, %v516_v48 }
 0x176   : > { %v499_v46 = vpop.permute.xlu0 %498  ;;  %v509_v57 = vpop.permute.xlu1 %508  ;;  %v618_v24 = vrot.slane %v609_v20, %v3069_v11  ;;  %v614_v33 = vrot.slane %v609_v20, %v3067_v10 }
 0x177   : > { %v513_v49 = vmul.f32 %v499_v46, %v481_v35  ;;  %v514_v50 = vmul.f32 %v499_v46, %v482_v36  ;;  %558 = vrot.lane.b32.xlu1 %v541_v39, %s2657_s12  ;;  %556 = vrot.lane.b32.xlu0 %v540_v38, %s2657_s12  ;;  %v517_v60 = vmul.f32 %v509_v57, %v485_v55 }
 0x178   : > { %v518_v61 = vmul.f32 %v509_v57, %v486_v56 }
 0x179   : > { %v542_v53 = vadd.f32 %v534_v40, %v513_v49  ;;  %v543_v54 = vadd.f32 %v535_v41, %v514_v50  ;;  %v546_v1 = vadd.f32 %v538_v62, %v517_v60 }
 0x17a   : > { %v547_v2 = vadd.f32 %v539_v63, %v518_v61 }
 0x17b   : > { %562 = vrot.lane.b32.xlu1 %v543_v54, %s2657_s12  ;;  %560 = vrot.lane.b32.xlu0 %v542_v53, %s2657_s12 }
 0x17f   : > { %566 = vrot.lane.b32.xlu1 %v545_v59, %s2657_s12  ;;  %564 = vrot.lane.b32.xlu0 %v544_v58, %s2657_s12 }
 0x183   : > { %570 = vrot.lane.b32.xlu1 %v547_v2, %s2657_s12  ;;  %568 = vrot.lane.b32.xlu0 %v546_v1, %s2657_s12  ;;  %s1692_s12 = scalar_lea.sflag [#allocation6], %s3021_s17 }
 0x187   : > { %735 = vrot.lane.b32.xlu1 %v732_v3, %s2658_s11  ;;  %733 = vrot.lane.b32.xlu0 %v728_v4, %s2658_s11  ;;  %s2560_s11 = scalar_lea.vmem %s3581_s15, 1024 }
 0x188   : > { %p2561_p10 = scmp.ne.s32.totalorder %s3581_s15, %s2560_s11 }
 0x18a   : > { %p2562_p1 = pnand %p2561_p10, %p3698_p2 }
 0x18b   : > { %839 = vrot.lane.b32.xlu1 %v836_v7, %s2659_s8  ;;  %837 = vrot.lane.b32.xlu0 %v832_v8, %s2659_s8 }
 0x18c   : > { %p2563_p5 = pneg %p2562_p1 }
 0x18f   : > { %1016 = vrot.lane.b32.xlu1 %v1013_v12, %s2660_s4  ;;  %1014 = vrot.lane.b32.xlu0 %v1009_v13, %s2660_s4  ;;  %s2564_s4 = sshll.u32 %s2671_s28, 4  ;;  %s2565_s4 = int_to_ptr.vmem [resolvable:$false] %s2564_s4 }
 0x190   : > { %p2567_p4 = scmp.lt.s32.totalorder %s3581_s15, %s2565_s4 }
 0x193   : > { %1120 = vrot.lane.b32.xlu1 %v1117_v15, %s2661_s5  ;;  %1118 = vrot.lane.b32.xlu0 %v1113_v16, %s2661_s5  ;;  %s2566_s5 = scalar_lea.vmem %s2565_s4, 2048 }
 0x194   : > { %p2568_p12 = scmp.lt.s32.totalorder %s2566_s5, %s2560_s11 }
 0x196   : > { %p2569_p0 = por %p2568_p12, %p2567_p4 }
 0x197   : > { %1297 = vrot.lane.b32.xlu1 %v1294_v18, %s2662_s26  ;;  %1295 = vrot.lane.b32.xlu0 %v1290_v19, %s2662_s26 }
 0x198   : > { %p2570_p8 = pnand %p2569_p0, %p2563_p5 }
 0x1e9   : > { %v559_v21 = vpop.permute.xlu1 %558  ;;  %v557_v22 = vpop.permute.xlu0 %556 }
 0x1ea   : > { %591 = vst.msk [vmem:[#allocation2 + $0x10] sm:$0xff] %vm453_vm0, %v559_v21  ;;  %v3095_v23 = vsel %vm453_vm0, %v557_v22, %v559_v21 }
 0x1eb   : > { %589 = vst.msk [vmem:[#allocation2] sm:$0xff] %vm588_vm2, %v557_v22  ;;  %v622_v28 = vmul.f32 %v618_v24, %v3095_v23 }
 0x1ed   : > { %v563_v25 = vpop.permute.xlu1 %562  ;;  %v561_v26 = vpop.permute.xlu0 %560 }
 0x1ee   : > { %594 = vst.msk [vmem:[#allocation2 + $0x28] sm:$0xff] %vm453_vm0, %v563_v25  ;;  %v3101_v27 = vsel %vm453_vm0, %v561_v26, %v563_v25 }
 0x1ef   : > { %592 = vst.msk [vmem:[#allocation2 + $0x18] sm:$0xff] %vm588_vm2, %v561_v26  ;;  %v624_v29 = vmul.f32 %v618_v24, %v3101_v27 }
 0x1f1   : > { %v567_v30 = vpop.permute.xlu1 %566  ;;  %v565_v31 = vpop.permute.xlu0 %564  ;;  %v1913_v32 = vpack.c.bf16 %v624_v29, %v622_v28  ;;  %v3137_v48 = vld [vmem:[#allocation2 + $0x10] sm:$0xff] }
 0x1f2   : > { %597 = vst.msk [vmem:[#allocation2 + $0x40] sm:$0xff] %vm453_vm0, %v567_v30  ;;  %v3108_v11 = vsel %vm453_vm0, %v565_v31, %v567_v30  ;;  %v3112_v34 = vld [vmem:[#allocation2] sm:$0xff]  ;;  %v2136_v53 = vpack.i.bf16 %v3137_v48, %v3095_v23 }
 0x1f3   : > { %595 = vst.msk [vmem:[#allocation2 + $0x30] sm:$0xff] %vm588_vm2, %v565_v31  ;;  %1914 = vmatprep.subr.bf16.mxu1 %v1913_v32  ;;  %v621_v10 = vmul.f32 %v3112_v34, %v614_v33  ;;  %v626_v41 = vmul.f32 %v618_v24, %v3108_v11 }
 0x1f5   : > { %v571_v35 = vpop.permute.xlu1 %570  ;;  %v569_v36 = vpop.permute.xlu0 %568  ;;  %v3168_v61 = vld [vmem:[#allocation2 + $0x28] sm:$0xff] }
 0x1f6   : > { %v3114_v37 = vld [vmem:[#allocation2 + $0x18] sm:$0xff]  ;;  %600 = vst.msk [vmem:[#allocation2 + $0x58] sm:$0xff] %vm453_vm0, %v571_v35  ;;  %v3118_v38 = vsel %vm453_vm0, %v569_v36, %v571_v35  ;;  %v2141_v0 = vpack.i.bf16 %v3168_v61, %v3101_v27 }
 0x1f7   : > { %598 = vst.msk [vmem:[#allocation2 + $0x48] sm:$0xff] %vm588_vm2, %v569_v36  ;;  %v3123_v39 = vpack.i.bf16 %v3114_v37, %v3112_v34  ;;  %v623_v40 = vmul.f32 %v3114_v37, %v614_v33  ;;  %v628_v42 = vmul.f32 %v618_v24, %v3118_v38 }
 0x1f9   : > { %2117 = vrot.lane.b32.xlu0 %v3123_v39, %s2663_s21  ;;  %v1915_v43 = vpack.c.bf16 %v623_v40, %v621_v10  ;;  %v3131_v44 = vpop.permute.xlu1 %735  ;;  %v3133_v45 = vpop.permute.xlu0 %733  ;;  %v1917_v46 = vpack.c.bf16 %v628_v42, %v626_v41  ;;  %v3178_v1 = vld [vmem:[#allocation2 + $0x40] sm:$0xff] }
 0x1fa   : > { %v3135_v47 = vld [vmem:[#allocation2 + $0x30] sm:$0xff]  ;;  %v742_v4 = vmul.f32 %v3133_v45, %v3112_v34  ;;  %v745_v6 = vmul.f32 %v3133_v45, %v3114_v37  ;;  %v3190_v8 = vpack.i.bf16 %v3178_v1, %v3108_v11 }
 0x1fb   : > { %1916 = vmatpush1.bf16.msra.mxu1 %v1915_v43  ;;  %v625_v54 = vmul.f32 %v3135_v47, %v614_v33 }
 0x1fc   : > { %1918 = vmatprep.subr.bf16.mxu1 %v1917_v46  ;;  %v2186_v17 = vpack.i.bf16 %v745_v6, %v742_v4 }
 0x1fd   : > { %2127 = vrot.lane.b32.xlu0 %v3123_v39, %s2664_s23  ;;  %v3141_v49 = vpop.permute.xlu1 %839  ;;  %v3143_v50 = vpop.permute.xlu0 %837  ;;  %v3155_v56 = vld [vmem:[#allocation2 + $0x58] sm:$0xff] }
 0x1fe   : > { %v3145_v51 = vld [vmem:[#allocation2 + $0x48] sm:$0xff]  ;;  %v3166_v60 = vpack.i.bf16 %v3155_v56, %v3118_v38  ;;  %v846_v18 = vmul.f32 %v3143_v50, %v3112_v34  ;;  %v849_v24 = vmul.f32 %v3143_v50, %v3114_v37 }
 0x1ff   : > { %v3149_v52 = vpack.i.bf16 %v3145_v51, %v3135_v47  ;;  %v627_v55 = vmul.f32 %v3145_v51, %v614_v33 }
 0x201   : > { %2122 = vrot.lane.b32.xlu1 %v3149_v52, %s2663_s21  ;;  %2137 = vrot.lane.b32.xlu0 %v2136_v53, %s2663_s21  ;;  %v1919_v57 = vpack.c.bf16 %v627_v55, %v625_v54  ;;  %v3160_v58 = vpop.permute.xlu1 %1016  ;;  %v3162_v59 = vpop.permute.xlu0 %1014 }
 0x202   : > { %v1023_v4 = vmul.f32 %v3162_v59, %v3112_v34  ;;  %v1026_v6 = vmul.f32 %v3162_v59, %v3114_v37 }
 0x203   : > { %1920 = vmatpush1.bf16.msra.mxu1 %v1919_v57 }
 0x204   : > { %v2206_v5 = vpack.i.bf16 %v1026_v6, %v1023_v4 }
 0x205   : > { %2132 = vrot.lane.b32.xlu1 %v3149_v52, %s2664_s23  ;;  %2152 = vrot.lane.b32.xlu0 %v3166_v60, %s2663_s21  ;;  %v1121_v62 = vpop.permute.xlu1 %1120  ;;  %v3174_v63 = vpop.permute.xlu0 %1118 }
 0x206   : > { %v1123_v2 = vsel %vm1122_vm3, %v3174_v63, %v1121_v62  ;;  %v3208_v15 = vmul.f32 %v1121_v62, %v3137_v48  ;;  %v3218_v21 = vmul.f32 %v1121_v62, %v3155_v56  ;;  %v3226_v25 = vmul.f32 %v1121_v62, %v3168_v61 }
 0x207   : > { %v3205_v14 = vmul.f32 %v1123_v2, %v3095_v23  ;;  %v3215_v20 = vmul.f32 %v1123_v2, %v3118_v38  ;;  %v3221_v22 = vmul.f32 %v1123_v2, %v3101_v27  ;;  %v3229_v26 = vmul.f32 %v1123_v2, %v3108_v11 }
 0x208   : > { %v3232_v28 = vmul.f32 %v1121_v62, %v3178_v1  ;;  %v2196_v2 = vpack.i.bf16 %v849_v24, %v846_v18  ;;  %v855_v18 = vmul.f32 %v3143_v50, %v3145_v51  ;;  %v744_v62 = vmul.f32 %v3131_v44, %v3137_v48 }
 0x209   : > { %2142 = vrot.lane.b32.xlu1 %v2141_v0, %s2663_s21  ;;  %2157 = vrot.lane.b32.xlu0 %v2136_v53, %s2664_s23  ;;  %v1296_v3 = vpop.permute.xlu0 %1295  ;;  %v1298_v7 = vpop.permute.xlu1 %1297  ;;  %v2306_v19 = vpack.i.bf16 %v3208_v15, %v3205_v14  ;;  %v2321_v29 = vpack.i.bf16 %v3218_v21, %v3215_v20  ;;  %v2311_v32 = vpack.i.bf16 %v3226_v25, %v3221_v22 }
 0x20a   : > { %v3193_v9 = vmul.f32 %v1296_v3, %v3112_v34  ;;  %v3196_v12 = vmul.f32 %v1296_v3, %v3114_v37  ;;  %v1300_v16 = vsel %vm1299_vm4, %v1296_v3, %v1298_v7  ;;  %v3242_v31 = vmul.f32 %v1298_v7, %v3168_v61 }
 0x20b   : > { %v3239_v30 = vmul.f32 %v1300_v16, %v3101_v27  ;;  %v2316_v33 = vpack.i.bf16 %v3232_v28, %v3229_v26  ;;  %v3249_v35 = vmul.f32 %v1300_v16, %v3095_v23  ;;  %v3252_v36 = vmul.f32 %v1298_v7, %v3137_v48 }
 0x20c   : > { %v2271_v13 = vpack.i.bf16 %v3196_v12, %v3193_v9  ;;  %v3257_v40 = vmul.f32 %v1300_v16, %v3118_v38  ;;  %v3260_v41 = vmul.f32 %v1298_v7, %v3155_v56  ;;  %v3263_v42 = vmul.f32 %v1300_v16, %v3108_v11  ;;  %v1462_v9 = vld [vmem:[#allocation15 + $0x8] sm:$0xff]  ;;  %v1464_v12 = vld [vmem:[#allocation15 + $0x18] sm:$0xff] }
 0x20d   : > { %2147 = vrot.lane.b32.xlu1 %v3190_v8, %s2663_s21  ;;  %2172 = vrot.lane.b32.xlu0 %v3166_v60, %s2664_s23  ;;  %v2336_v10 = vpack.i.bf16 %v3242_v31, %v3239_v30  ;;  %v2331_v43 = vpack.i.bf16 %v3252_v36, %v3249_v35  ;;  %v3268_v46 = vmul.f32 %v1298_v7, %v3178_v1 }
 0x20e   : > { %v3274_v54 = vmul.f32 %v1296_v3, %v3145_v51  ;;  %v748_v7 = vmul.f32 %v3133_v45, %v3135_v47  ;;  %v738_v16 = vsel %vm737_vm5, %v3133_v45, %v3131_v44  ;;  %v1133_v4 = vmul.f32 %v3174_v63, %v3135_v47 }
 0x20f   : > { %v1136_v6 = vmul.f32 %v3174_v63, %v3145_v51 }
 0x211   : > { %2162 = vrot.lane.b32.xlu1 %v2141_v0, %s2664_s23  ;;  %2177 = vrot.lane.b32.xlu0 %v2136_v53, %s2665_s14  ;;  %v3271_v53 = vmul.f32 %v1296_v3, %v3135_v47  ;;  %v751_v3 = vmul.f32 %v3133_v45, %v3145_v51  ;;  %v743_v45 = vmul.f32 %v738_v16, %v3095_v23 }
 0x213   : > { %v2191_v24 = vpack.i.bf16 %v751_v3, %v748_v7  ;;  %v1029_v3 = vmul.f32 %v3162_v59, %v3135_v47  ;;  %v753_v7 = vmul.f32 %v3131_v44, %v3155_v56 }
 0x215   : > { %2167 = vrot.lane.b32.xlu1 %v3190_v8, %s2664_s23  ;;  %2187 = vrot.lane.b32.xlu0 %v2186_v17, %s2666_s1  ;;  %v852_v17 = vmul.f32 %v3143_v50, %v3135_v47  ;;  %v747_v47 = vmul.f32 %v3131_v44, %v3168_v61 }
 0x217   : > { %v2201_v57 = vpack.i.bf16 %v855_v18, %v852_v17  ;;  %v842_v17 = vsel %vm841_vm6, %v3143_v50, %v3141_v49  ;;  %v749_v50 = vmul.f32 %v738_v16, %v3108_v11 }
 0x219   : > { %2182 = vrot.lane.b32.xlu1 %v2141_v0, %s2665_s14  ;;  %2197 = vrot.lane.b32.xlu0 %v2196_v2, %s2667_s7  ;;  %v1127_v0 = vmul.f32 %v3174_v63, %v3112_v34  ;;  %v1130_v2 = vmul.f32 %v3174_v63, %v3114_v37  ;;  %v1032_v34 = vmul.f32 %v3162_v59, %v3145_v51 }
 0x21a   : > { %v847_v51 = vmul.f32 %v842_v17, %v3095_v23  ;;  %v848_v63 = vmul.f32 %v3141_v49, %v3137_v48 }
 0x21b   : > { %v2216_v55 = vpack.i.bf16 %v1130_v2, %v1127_v0  ;;  %v2211_v37 = vpack.i.bf16 %v1032_v34, %v1029_v3  ;;  %v857_v3 = vmul.f32 %v3141_v49, %v3155_v56 }
 0x21c   : > { %v2246_v2 = vpack.i.bf16 %v848_v63, %v847_v51 }
 0x21d   : > { %2192 = vrot.lane.b32.xlu1 %v2191_v24, %s2666_s1  ;;  %2207 = vrot.lane.b32.xlu0 %v2206_v5, %s2668_s30  ;;  %v2226_v5 = vpack.i.bf16 %v744_v62, %v743_v45  ;;  %v2221_v62 = vpack.i.bf16 %v1136_v6, %v1133_v4  ;;  %v750_v24 = vmul.f32 %v3131_v44, %v3178_v1 }
 0x21e   : > { %v856_v45 = vmul.f32 %v842_v17, %v3118_v38  ;;  %v853_v4 = vmul.f32 %v842_v17, %v3108_v11  ;;  %v854_v6 = vmul.f32 %v3141_v49, %v3178_v1 }
 0x21f   : > { %v2236_v34 = vpack.i.bf16 %v750_v24, %v749_v50 }
 0x221   : > { %2202 = vrot.lane.b32.xlu1 %v2201_v57, %s2667_s7  ;;  %2217 = vrot.lane.b32.xlu0 %v2216_v55, %s2669_s10  ;;  %v752_v55 = vmul.f32 %v738_v16, %v3118_v38  ;;  %v746_v57 = vmul.f32 %v738_v16, %v3101_v27  ;;  %v851_v16 = vmul.f32 %v3141_v49, %v3168_v61 }
 0x223   : > { %v2241_v18 = vpack.i.bf16 %v753_v7, %v752_v55  ;;  %v2231_v0 = vpack.i.bf16 %v747_v47, %v746_v57  ;;  %v1019_v7 = vsel %vm1018_vm7, %v3162_v59, %v3160_v58  ;;  %v2256_v55 = vpack.i.bf16 %v854_v6, %v853_v4 }
 0x224   : > { %v1024_v57 = vmul.f32 %v1019_v7, %v3095_v23  ;;  %v1025_v47 = vmul.f32 %v3160_v58, %v3137_v48  ;;  %v1034_v59 = vmul.f32 %v3160_v58, %v3155_v56  ;;  %v1028_v48 = vmul.f32 %v3160_v58, %v3168_v61  ;;  %v1463_v61 = vld [vmem:[#allocation15 + $0x10] sm:$0xff] }
 0x225   : > { %2212 = vrot.lane.b32.xlu1 %v2211_v37, %s2668_s30  ;;  %2227 = vrot.lane.b32.xlu0 %v2226_v5, %s2666_s1  ;;  %v2261_v5 = vpack.i.bf16 %v857_v3, %v856_v45  ;;  %v850_v37 = vmul.f32 %v842_v17, %v3101_v27  ;;  %v1033_v17 = vmul.f32 %v1019_v7, %v3118_v38 }
 0x226   : > { %v2286_v49 = vpack.i.bf16 %v1025_v47, %v1024_v57  ;;  %v1030_v56 = vmul.f32 %v1019_v7, %v3108_v11  ;;  %v1378_v11 = vld [vmem:[#allocation13 + $0x8] sm:$0xff] }
 0x227   : > { %v2251_v44 = vpack.i.bf16 %v851_v16, %v850_v37  ;;  %v2301_v23 = vpack.i.bf16 %v1034_v59, %v1033_v17  ;;  %1561 = vmatprep.mubr.f32.mxu1 %v1378_v11 }
 0x229   : > { %2222 = vrot.lane.b32.xlu1 %v2221_v62, %s2669_s10  ;;  %2242 = vrot.lane.b32.xlu0 %v2241_v18, %s2666_s1 }
 0x22d   : > { %2232 = vrot.lane.b32.xlu1 %v2231_v0, %s2666_s1  ;;  %2247 = vrot.lane.b32.xlu0 %v2246_v2, %s2667_s7 }
 0x231   : > { %2237 = vrot.lane.b32.xlu1 %v2236_v34, %s2666_s1  ;;  %2262 = vrot.lane.b32.xlu0 %v2261_v5, %s2667_s7 }
 0x235   : > { %2252 = vrot.lane.b32.xlu1 %v2251_v44, %s2667_s7  ;;  %2267 = vrot.lane.b32.xlu0 %v3123_v39, %s2665_s14  ;;  %v1027_v39 = vmul.f32 %v1019_v7, %v3101_v27 }
 0x237   : > { %v2291_v38 = vpack.i.bf16 %v1028_v48, %v1027_v39 }
 0x239   : > { %2257 = vrot.lane.b32.xlu1 %v2256_v55, %s2667_s7  ;;  %2277 = vrot.lane.b32.xlu0 %v3190_v8, %s2665_s14  ;;  %v1031_v8 = vmul.f32 %v3160_v58, %v3178_v1  ;;  %v3693_v58 = vpack.i.bf16 %v3260_v41, %v3257_v40  ;;  %v3695_v1 = vpack.i.bf16 %v3274_v54, %v3271_v53 }
 0x23b   : > { %v2296_v27 = vpack.i.bf16 %v1031_v8, %v1030_v56 }
 0x23d   : > { %2272 = vrot.lane.b32.xlu1 %v2271_v13, %s2670_s22  ;;  %2287 = vrot.lane.b32.xlu0 %v2286_v49, %s2668_s30 }
 0x241   : > { %2282 = vrot.lane.b32.xlu1 %v3166_v60, %s2665_s14  ;;  %2302 = vrot.lane.b32.xlu0 %v2301_v23, %s2668_s30  ;;  %v3694_v60 = vpack.i.bf16 %v3268_v46, %v3263_v42 }
 0x245   : > { %2292 = vrot.lane.b32.xlu1 %v2291_v38, %s2668_s30  ;;  %2307 = vrot.lane.b32.xlu0 %v2306_v19, %s2669_s10 }
 0x249   : > { %2297 = vrot.lane.b32.xlu1 %v2296_v27, %s2668_s30  ;;  %2322 = vrot.lane.b32.xlu0 %v2321_v29, %s2669_s10 }
 0x24d   : > { %2312 = vrot.lane.b32.xlu1 %v2311_v32, %s2669_s10  ;;  %2327 = vrot.lane.b32.xlu0 %v3149_v52, %s2665_s14  ;;  %v1461_v52 = vld [vmem:[#allocation15] sm:$0xff] }
 0x251   : > { %2317 = vrot.lane.b32.xlu1 %v2316_v33, %s2669_s10  ;;  %2337 = vrot.lane.b32.xlu0 %v2336_v10, %s2670_s22 }
 0x255   : > { %2332 = vrot.lane.b32.xlu1 %v2331_v43, %s2670_s22  ;;  %2347 = vrot.lane.b32.xlu0 %v3693_v58, %s2670_s22 }
 0x259   : > { %2342 = vrot.lane.b32.xlu1 %v3694_v60, %s2670_s22  ;;  %1467 = vperm.xlu0 %2114, %v1461_v52  }
 0x25d   : > { %2352 = vrot.lane.b32.xlu1 %v3695_v1, %s2670_s22  ;;  %1477 = vperm.xlu0 %2114, %v1463_v61  }
 0x261   : > { %1472 = vperm.xlu1 %2115, %v1462_v9  }
 0x265   : > { %1482 = vperm.xlu1 %2115, %v1464_v12  }
 0x26b   : > { %v2118_v13 = vpop.permute.xlu0 %2117 }
 0x26c   : > { %v2119_v26 = vunpack.i.l.bf16 %v2118_v13  ;;  %v2120_v30 = vunpack.i.h.bf16 %v2118_v13 }
 0x26f   : > { %v3413_v14 = vpop.permute.xlu0 %2127 }
 0x273   : > { %v2123_v15 = vpop.permute.xlu1 %2122  ;;  %v2138_v19 = vpop.permute.xlu0 %2137 }
 0x274   : > { %v2140_v22 = vunpack.i.h.bf16 %v2138_v19  ;;  %v2139_v25 = vunpack.i.l.bf16 %v2138_v19  ;;  %v2125_v54 = vunpack.i.h.bf16 %v2123_v15  ;;  %v2124_v62 = vunpack.i.l.bf16 %v2123_v15 }
 0x276   : > { %v687_v33 = vsel %vm685_vm8, %v2139_v25, %v2140_v22  ;;  %v686_v35 = vsel %vm685_vm8, %v2119_v26, %v2139_v25 }
 0x277   : > { %v3415_v20 = vpop.permute.xlu1 %2132  ;;  %v2153_v21 = vpop.permute.xlu0 %2152 }
 0x278   : > { %v2155_v36 = vunpack.i.h.bf16 %v2153_v21  ;;  %v2154_v10 = vunpack.i.l.bf16 %v2153_v21 }
 0x27a   : > { %v693_v50 = vsel %vm685_vm8, %v2154_v10, %v2155_v36  ;;  %v692_v0 = vsel %vm685_vm8, %v2125_v54, %v2154_v10 }
 0x27b   : > { %v2143_v28 = vpop.permute.xlu1 %2142  ;;  %v3417_v29 = vpop.permute.xlu0 %2157 }
 0x27c   : > { %v2145_v31 = vunpack.i.h.bf16 %v2143_v28  ;;  %v2144_v32 = vunpack.i.l.bf16 %v2143_v28 }
 0x27e   : > { %v689_v40 = vsel %vm685_vm8, %v2144_v32, %v2145_v31  ;;  %v688_v41 = vsel %vm685_vm8, %v2120_v30, %v2144_v32 }
 0x27f   : > { %v2148_v42 = vpop.permute.xlu1 %2147  ;;  %v3423_v43 = vpop.permute.xlu0 %2172  ;;  %v1921_v46 = vpack.c.bf16 %v689_v40, %v687_v33  ;;  %v1923_v53 = vpack.c.bf16 %v688_v41, %v686_v35 }
 0x280   : > { %v2150_v18 = vunpack.i.h.bf16 %v2148_v42  ;;  %v2149_v51 = vunpack.i.l.bf16 %v2148_v42 }
 0x281   : > { %1922 = vmatprep.subr.bf16.mxu1 %v1921_v46 }
 0x282   : > { %1924 = vmatpush1.bf16.msra.mxu1 %v1923_v53  ;;  %v691_v63 = vsel %vm685_vm8, %v2149_v51, %v2150_v18  ;;  %v690_v24 = vsel %vm685_vm8, %v2124_v62, %v2149_v51 }
 0x283   : > { %v3429_v2 = vpop.permute.xlu1 %2162  ;;  %v3431_v45 = vpop.permute.xlu0 %2177  ;;  %v1925_v3 = vpack.c.bf16 %v693_v50, %v691_v63  ;;  %v1927_v34 = vpack.c.bf16 %v692_v0, %v690_v24 }
 0x284   : > { %v2165_v54 = vunpack.i.h.bf16 %v3429_v2  ;;  %v2164_v62 = vunpack.i.l.bf16 %v3429_v2 }
 0x285   : > { %1926 = vmatprep.subr.bf16.mxu1 %v1925_v3  ;;  %v2160_v3 = vunpack.i.h.bf16 %v3417_v29 }
 0x286   : > { %1928 = vmatpush1.bf16.msra.mxu1 %v1927_v34  ;;  %v2159_v34 = vunpack.i.l.bf16 %v3417_v29 }
 0x287   : > { %v3433_v5 = vpop.permute.xlu1 %2167  ;;  %v2188_v37 = vpop.permute.xlu0 %2187 }
 0x288   : > { %v2189_v39 = vunpack.i.l.bf16 %v2188_v37  ;;  %v2190_v56 = vunpack.i.h.bf16 %v2188_v37 }
 0x28b   : > { %v3435_v16 = vpop.permute.xlu1 %2182  ;;  %v2198_v44 = vpop.permute.xlu0 %2197 }
 0x28c   : > { %v2199_v35 = vunpack.i.l.bf16 %v2198_v44  ;;  %v2200_v42 = vunpack.i.h.bf16 %v2198_v44 }
 0x28f   : > { %v2193_v4 = vpop.permute.xlu1 %2192  ;;  %v3437_v6 = vpop.permute.xlu0 %2207 }
 0x290   : > { %v2195_v19 = vunpack.i.h.bf16 %v2193_v4  ;;  %v2194_v21 = vunpack.i.l.bf16 %v2193_v4 }
 0x293   : > { %v3439_v7 = vpop.permute.xlu1 %2202  ;;  %v3441_v55 = vpop.permute.xlu0 %2217 }
 0x297   : > { %v3443_v57 = vpop.permute.xlu1 %2212  ;;  %v2228_v47 = vpop.permute.xlu0 %2227 }
 0x298   : > { %v2230_v59 = vunpack.i.h.bf16 %v2228_v47  ;;  %v2229_v23 = vunpack.i.l.bf16 %v2228_v47  ;;  %v2205_v47 = vunpack.i.h.bf16 %v3439_v7 }
 0x29a   : > { %v792_v11 = vsel %vm790_vm9, %v2229_v23, %v2230_v59  ;;  %v791_v58 = vsel %vm790_vm9, %v2189_v39, %v2229_v23  ;;  %v2170_v39 = vunpack.i.h.bf16 %v3433_v5 }
 0x29b   : > { %v3445_v49 = vpop.permute.xlu1 %2222  ;;  %v2243_v17 = vpop.permute.xlu0 %2242 }
 0x29c   : > { %v2245_v52 = vunpack.i.h.bf16 %v2243_v17  ;;  %v2244_v60 = vunpack.i.l.bf16 %v2243_v17  ;;  %v2204_v17 = vunpack.i.l.bf16 %v3439_v7  ;;  %v2130_v7 = vunpack.i.h.bf16 %v3413_v14 }
 0x29e   : > { %v798_v31 = vsel %vm790_vm9, %v2244_v60, %v2245_v52  ;;  %v797_v33 = vsel %vm790_vm9, %v2195_v19, %v2244_v60  ;;  %v2134_v19 = vunpack.i.l.bf16 %v3415_v20 }
 0x29f   : > { %v2233_v48 = vpop.permute.xlu1 %2232  ;;  %v2248_v38 = vpop.permute.xlu0 %2247 }
 0x2a0   : > { %v2235_v8 = vunpack.i.h.bf16 %v2233_v48  ;;  %v2234_v27 = vunpack.i.l.bf16 %v2233_v48  ;;  %v2250_v26 = vunpack.i.h.bf16 %v2248_v38  ;;  %v2249_v28 = vunpack.i.l.bf16 %v2248_v38 }
 0x2a1   : > { %v2169_v48 = vunpack.i.l.bf16 %v3433_v5  ;;  %v971_v38 = vsel %vm967_vm11, %v2164_v62, %v2165_v54  ;;  %v2175_v5 = vunpack.i.h.bf16 %v3423_v43 }
 0x2a2   : > { %v794_v61 = vsel %vm790_vm9, %v2234_v27, %v2235_v8  ;;  %v793_v1 = vsel %vm790_vm9, %v2190_v56, %v2234_v27  ;;  %v896_v18 = vsel %vm894_vm10, %v2249_v28, %v2250_v26  ;;  %v895_v51 = vsel %vm894_vm10, %v2199_v35, %v2249_v28 }
 0x2a3   : > { %v2238_v9 = vpop.permute.xlu1 %2237  ;;  %v2263_v12 = vpop.permute.xlu0 %2262  ;;  %v1929_v13 = vpack.c.bf16 %v794_v61, %v792_v11  ;;  %v1931_v15 = vpack.c.bf16 %v793_v1, %v791_v58  ;;  %v2174_v61 = vunpack.i.l.bf16 %v3423_v43  ;;  %v969_v1 = vsel %vm967_vm11, %v2159_v34, %v2160_v3 }
 0x2a4   : > { %v2240_v22 = vunpack.i.h.bf16 %v2238_v9  ;;  %v2239_v25 = vunpack.i.l.bf16 %v2238_v9  ;;  %v2265_v63 = vunpack.i.h.bf16 %v2263_v12  ;;  %v2264_v50 = vunpack.i.l.bf16 %v2263_v12 }
 0x2a5   : > { %1930 = vmatprep.subr.bf16.mxu1 %v1929_v13  ;;  %v2129_v9 = vunpack.i.l.bf16 %v3413_v14  ;;  %v1945_v12 = vpack.c.bf16 %v971_v38, %v969_v1  ;;  %v970_v13 = vsel %vm967_vm11, %v2130_v7, %v2164_v62  ;;  %v2135_v43 = vunpack.i.h.bf16 %v3415_v20 }
 0x2a6   : > { %1932 = vmatpush1.bf16.msra.mxu1 %v1931_v15  ;;  %v796_v30 = vsel %vm790_vm9, %v2239_v25, %v2240_v22  ;;  %v795_v32 = vsel %vm790_vm9, %v2194_v21, %v2239_v25  ;;  %v902_v56 = vsel %vm894_vm10, %v2264_v50, %v2265_v63  ;;  %v901_v27 = vsel %vm894_vm10, %v2205_v47, %v2264_v50 }
 0x2a7   : > { %v2253_v36 = vpop.permute.xlu1 %2252  ;;  %v3455_v10 = vpop.permute.xlu0 %2267  ;;  %v1933_v40 = vpack.c.bf16 %v798_v31, %v796_v30  ;;  %v1935_v41 = vpack.c.bf16 %v797_v33, %v795_v32  ;;  %v973_v15 = vsel %vm967_vm11, %v2169_v48, %v2170_v39  ;;  %v968_v25 = vsel %vm967_vm11, %v2129_v9, %v2159_v34 }
 0x2a8   : > { %v2255_v46 = vunpack.i.h.bf16 %v2253_v36  ;;  %v2254_v53 = vunpack.i.l.bf16 %v2253_v36  ;;  %v1947_v26 = vpack.c.bf16 %v970_v13, %v968_v25  ;;  %v975_v14 = vsel %vm967_vm11, %v2174_v61, %v2175_v5 }
 0x2a9   : > { %1934 = vmatprep.subr.bf16.mxu1 %v1933_v40  ;;  %v1949_v31 = vpack.c.bf16 %v975_v14, %v973_v15  ;;  %v972_v32 = vsel %vm967_vm11, %v2134_v19, %v2169_v48  ;;  %v2180_v33 = vunpack.i.h.bf16 %v3431_v45  ;;  %v2179_v35 = vunpack.i.l.bf16 %v3431_v45 }
 0x2aa   : > { %1936 = vmatpush1.bf16.msra.mxu1 %v1935_v41  ;;  %v898_v24 = vsel %vm894_vm10, %v2254_v53, %v2255_v46  ;;  %v897_v0 = vsel %vm894_vm10, %v2200_v42, %v2254_v53  ;;  %v2209_v36 = vunpack.i.l.bf16 %v3437_v6  ;;  %v974_v20 = vsel %vm967_vm11, %v2135_v43, %v2174_v61 }
 0x2ab   : > { %v2258_v37 = vpop.permute.xlu1 %2257  ;;  %v3465_v44 = vpop.permute.xlu0 %2277  ;;  %v1937_v2 = vpack.c.bf16 %v898_v24, %v896_v18  ;;  %v1939_v4 = vpack.c.bf16 %v897_v0, %v895_v51  ;;  %v2210_v42 = vunpack.i.h.bf16 %v3437_v6  ;;  %v1951_v54 = vpack.c.bf16 %v974_v20, %v972_v32 }
 0x2ac   : > { %v2260_v59 = vunpack.i.h.bf16 %v2258_v37  ;;  %v2259_v23 = vunpack.i.l.bf16 %v2258_v37  ;;  %v2185_v62 = vunpack.i.h.bf16 %v3435_v16  ;;  %v2184_v18 = vunpack.i.l.bf16 %v3435_v16 }
 0x2ad   : > { %1938 = vmatprep.subr.bf16.mxu1 %v1937_v2  ;;  %v2214_v47 = vunpack.i.l.bf16 %v3443_v57  ;;  %v3508_v48 = vsel %vm1248_vm13, %v2179_v35, %v2180_v33  ;;  %v2269_v7 = vunpack.i.l.bf16 %v3455_v10  ;;  %v2220_v61 = vunpack.i.h.bf16 %v3441_v55 }
 0x2ae   : > { %1940 = vmatpush1.bf16.msra.mxu1 %v1939_v4  ;;  %v900_v29 = vsel %vm894_vm10, %v2259_v23, %v2260_v59  ;;  %v899_v8 = vsel %vm894_vm10, %v2204_v17, %v2259_v23  ;;  %v2215_v4 = vunpack.i.h.bf16 %v3443_v57  ;;  %v3513_v38 = vsel %vm1248_vm13, %v2184_v18, %v2185_v62 }
 0x2af   : > { %v3477_v11 = vpop.permute.xlu1 %2272  ;;  %v2288_v58 = vpop.permute.xlu0 %2287  ;;  %v1941_v52 = vpack.c.bf16 %v902_v56, %v900_v29  ;;  %v1943_v60 = vpack.c.bf16 %v901_v27, %v899_v8  ;;  %v2219_v27 = vunpack.i.l.bf16 %v3441_v55  ;;  %v2225_v13 = vunpack.i.h.bf16 %v3445_v49 }
 0x2b0   : > { %v2290_v28 = vunpack.i.h.bf16 %v2288_v58  ;;  %v2289_v30 = vunpack.i.l.bf16 %v2288_v58  ;;  %v2270_v15 = vunpack.i.h.bf16 %v3455_v10  ;;  %v2224_v14 = vunpack.i.l.bf16 %v3445_v49 }
 0x2b1   : > { %1942 = vmatprep.subr.bf16.mxu1 %v1941_v52  ;;  %v1249_v10 = vsel %vm1248_vm13, %v2269_v7, %v2179_v35  ;;  %v2280_v20 = vunpack.i.h.bf16 %v3465_v44  ;;  %v2275_v62 = vunpack.i.h.bf16 %v3477_v11  ;;  %v2274_v16 = vunpack.i.l.bf16 %v3477_v11 }
 0x2b2   : > { %1944 = vmatpush1.bf16.msra.mxu1 %v1943_v60  ;;  %v1073_v51 = vsel %vm1071_vm12, %v2289_v30, %v2290_v28  ;;  %v1072_v63 = vsel %vm1071_vm12, %v2209_v36, %v2289_v30  ;;  %v1251_v49 = vsel %vm1248_vm13, %v2270_v15, %v2184_v18  ;;  %v1381_v15 = vld [vmem:[#allocation13 + $0x20] sm:$0xff] }
 0x2b3   : > { %v3486_v21 = vpop.permute.xlu1 %2282  ;;  %v2303_v22 = vpop.permute.xlu0 %2302  ;;  %1946 = vmatprep.subr.bf16.mxu1 %v1945_v12  ;;  %v1969_v12 = vpack.c.bf16 %v3513_v38, %v3508_v48  ;;  %v1971_v38 = vpack.c.bf16 %v1251_v49, %v1249_v10 }
 0x2b4   : > { %v2305_v50 = vunpack.i.h.bf16 %v2303_v22  ;;  %v2304_v24 = vunpack.i.l.bf16 %v2303_v22  ;;  %v2285_v33 = vunpack.i.h.bf16 %v3486_v21  ;;  %v2284_v36 = vunpack.i.l.bf16 %v3486_v21 }
 0x2b6   : > { %1948 = vmatpush1.bf16.msra.mxu1 %v1947_v26  ;;  %v1079_v57 = vsel %vm1071_vm12, %v2304_v24, %v2305_v50  ;;  %v1078_v8 = vsel %vm1071_vm12, %v2215_v4, %v2304_v24 }
 0x2b7   : > { %v2293_v40 = vpop.permute.xlu1 %2292  ;;  %v2308_v41 = vpop.permute.xlu0 %2307  ;;  %1950 = vmatprep.subr.bf16.mxu1 %v1949_v31 }
 0x2b8   : > { %v2295_v46 = vunpack.i.h.bf16 %v2293_v40  ;;  %v2294_v53 = vunpack.i.l.bf16 %v2293_v40  ;;  %v2310_v23 = vunpack.i.h.bf16 %v2308_v41  ;;  %v2309_v39 = vunpack.i.l.bf16 %v2308_v41 }
 0x2ba   : > { %1952 = vmatpush1.bf16.msra.mxu1 %v1951_v54  ;;  %v1075_v0 = vsel %vm1071_vm12, %v2294_v53, %v2295_v46  ;;  %v1074_v3 = vsel %vm1071_vm12, %v2210_v42, %v2294_v53  ;;  %v1177_v19 = vsel %vm1175_vm14, %v2309_v39, %v2310_v23  ;;  %v1176_v22 = vsel %vm1175_vm14, %v2219_v27, %v2309_v39 }
 0x2bb   : > { %v2298_v34 = vpop.permute.xlu1 %2297  ;;  %v2323_v6 = vpop.permute.xlu0 %2322  ;;  %v1953_v37 = vpack.c.bf16 %v1075_v0, %v1073_v51  ;;  %v1955_v2 = vpack.c.bf16 %v1074_v3, %v1072_v63  ;;  %v2279_v54 = vunpack.i.l.bf16 %v3465_v44  ;;  %v1256_v3 = vsel %vm1248_vm13, %v2284_v36, %v2285_v33 }
 0x2bc   : > { %v2300_v17 = vunpack.i.h.bf16 %v2298_v34  ;;  %v2299_v59 = vunpack.i.l.bf16 %v2298_v34  ;;  %v2325_v25 = vunpack.i.h.bf16 %v2323_v6  ;;  %v2324_v43 = vunpack.i.l.bf16 %v2323_v6 }
 0x2bd   : > { %1954 = vmatprep.subr.bf16.mxu1 %v1953_v37 }
 0x2be   : > { %1956 = vmatpush1.bf16.msra.mxu1 %v1955_v2  ;;  %v1077_v29 = vsel %vm1071_vm12, %v2299_v59, %v2300_v17  ;;  %v1076_v56 = vsel %vm1071_vm12, %v2214_v47, %v2299_v59  ;;  %v1183_v35 = vsel %vm1175_vm14, %v2324_v43, %v2325_v25  ;;  %v1182_v21 = vsel %vm1175_vm14, %v2225_v13, %v2324_v43  ;;  %v1384_v25 = vld [vmem:[#allocation13 + $0x38] sm:$0xff] }
 0x2bf   : > { %v2313_v58 = vpop.permute.xlu1 %2312  ;;  %v3521_v52 = vpop.permute.xlu0 %2327  ;;  %v1957_v60 = vpack.c.bf16 %v1079_v57, %v1077_v29  ;;  %v1959_v5 = vpack.c.bf16 %v1078_v8, %v1076_v56  ;;  %v1254_v29 = vsel %vm1248_vm13, %v2279_v54, %v2280_v20  ;;  %v3696_v43 = vmov 0.0  }
 0x2c0   : > { %v2315_v1 = vunpack.i.h.bf16 %v2313_v58  ;;  %v2314_v9 = vunpack.i.l.bf16 %v2313_v58  ;;  %v2330_v34 = vunpack.i.h.bf16 %v3521_v52  ;;  %v2329_v6 = vunpack.i.l.bf16 %v3521_v52 }
 0x2c1   : > { %1958 = vmatprep.subr.bf16.mxu1 %v1957_v60  ;;  %v1973_v57 = vpack.c.bf16 %v1256_v3, %v1254_v29 }
 0x2c2   : > { %1960 = vmatpush1.bf16.msra.mxu1 %v1959_v5  ;;  %v1179_v26 = vsel %vm1175_vm14, %v2314_v9, %v2315_v1  ;;  %v1178_v55 = vsel %vm1175_vm14, %v2220_v61, %v2314_v9  ;;  %v1253_v56 = vsel %vm1248_vm13, %v2329_v6, %v2279_v54  ;;  %v1255_v8 = vsel %vm1248_vm13, %v2330_v34, %v2284_v36  ;;  %v1377_v1 = vld [vmem:[#allocation13] sm:$0xff] }
 0x2c3   : > { %v2318_v28 = vpop.permute.xlu1 %2317  ;;  %v2338_v30 = vpop.permute.xlu0 %2337  ;;  %v1961_v31 = vpack.c.bf16 %v1179_v26, %v1177_v19  ;;  %v1963_v32 = vpack.c.bf16 %v1178_v55, %v1176_v22  ;;  %v1975_v61 = vpack.c.bf16 %v1255_v8, %v1253_v56  ;;  %v1379_v19 = vld [vmem:[#allocation13 + $0x10] sm:$0xff]  ;;  %v1380_v22 = vld [vmem:[#allocation13 + $0x18] sm:$0xff]  ;;  %v1382_v26 = vld [vmem:[#allocation13 + $0x28] sm:$0xff] }
 0x2c4   : > { %v2320_v40 = vunpack.i.h.bf16 %v2318_v28  ;;  %v2319_v41 = vunpack.i.l.bf16 %v2318_v28  ;;  %v2340_v42 = vunpack.i.h.bf16 %v2338_v30  ;;  %v2339_v46 = vunpack.i.l.bf16 %v2338_v30  ;;  %v1383_v55 = vld [vmem:[#allocation13 + $0x30] sm:$0xff]  ;;  %v1385_v28 = vld [vmem:[#allocation13 + $0x40] sm:$0xff]  ;;  %v1386_v30 = vld [vmem:[#allocation13 + $0x48] sm:$0xff] }
 0x2c5   : > { %1962 = vmatprep.subr.bf16.mxu1 %v1961_v31  ;;  %v1388_v31 = vld [vmem:[#allocation13 + $0x58] sm:$0xff] }
 0x2c6   : > { %1964 = vmatpush1.bf16.msra.mxu1 %v1963_v32  ;;  %v1181_v45 = vsel %vm1175_vm14, %v2319_v41, %v2320_v40  ;;  %v1180_v53 = vsel %vm1175_vm14, %v2224_v14, %v2319_v41  ;;  %v1356_v37 = vsel %vm1352_vm15, %v2339_v46, %v2340_v42  ;;  %v1355_v44 = vsel %vm1352_vm15, %v2275_v62, %v2339_v46  ;;  %v1387_v14 = vld [vmem:[#allocation13 + $0x50] sm:$0xff] }
 0x2c7   : > { %v2333_v51 = vpop.permute.xlu1 %2332  ;;  %v2348_v63 = vpop.permute.xlu0 %2347  ;;  %v1965_v50 = vpack.c.bf16 %v1183_v35, %v1181_v45  ;;  %v1967_v24 = vpack.c.bf16 %v1182_v21, %v1180_v53 }
 0x2c8   : > { %v2335_v18 = vunpack.i.h.bf16 %v2333_v51  ;;  %v2334_v0 = vunpack.i.l.bf16 %v2333_v51  ;;  %v2350_v2 = vunpack.i.h.bf16 %v2348_v63  ;;  %v2349_v4 = vunpack.i.l.bf16 %v2348_v63 }
 0x2c9   : > { %1966 = vmatprep.subr.bf16.mxu1 %v1965_v50 }
 0x2ca   : > { %1968 = vmatpush1.bf16.msra.mxu1 %v1967_v24  ;;  %v1354_v47 = vsel %vm1352_vm15, %v2334_v0, %v2335_v18  ;;  %v1353_v11 = vsel %vm1352_vm15, %v2274_v16, %v2334_v0  ;;  %v1360_v7 = vsel %vm1352_vm15, %v2349_v4, %v2350_v2 }
 0x2cb   : > { %v2343_v17 = vpop.permute.xlu1 %2342  ;;  %1970 = vmatprep.subr.bf16.mxu1 %v1969_v12  ;;  %v1977_v59 = vpack.c.bf16 %v1356_v37, %v1354_v47  ;;  %v1979_v23 = vpack.c.bf16 %v1355_v44, %v1353_v11 }
 0x2cc   : > { %v2345_v39 = vunpack.i.h.bf16 %v2343_v17  ;;  %v2344_v48 = vunpack.i.l.bf16 %v2343_v17 }
 0x2cd   : > { %1978 = vmatprep.subr.bf16.mxu0 %v1977_v59 }
 0x2ce   : > { %1972 = vmatpush1.bf16.msra.mxu1 %v1971_v38  ;;  %1980 = vmatpush1.bf16.msra.mxu0 %v1979_v23  ;;  %v1358_v27 = vsel %vm1352_vm15, %v2344_v48, %v2345_v39 }
 0x2cf   : > { %v2353_v58 = vpop.permute.xlu1 %2352  ;;  %1974 = vmatprep.subr.bf16.mxu1 %v1973_v57  ;;  %v1981_v52 = vpack.c.bf16 %v1360_v7, %v1358_v27 }
 0x2d0   : > { %v2355_v60 = vunpack.i.h.bf16 %v2353_v58  ;;  %v2354_v5 = vunpack.i.l.bf16 %v2353_v58 }
 0x2d1   : > { %1982 = vmatprep.subr.bf16.mxu0 %v1981_v52 }
 0x2d2   : > { %1976 = vmatpush1.bf16.msra.mxu1 %v1975_v61  ;;  %v1357_v9 = vsel %vm1352_vm15, %v2354_v5, %v2344_v48  ;;  %v1359_v12 = vsel %vm1352_vm15, %v2355_v60, %v2349_v4 }
 0x2d3   : > { %v1983_v13 = vpack.c.bf16 %v1359_v12, %v1357_v9 }
 0x2d5   : > { %1562 = vmatmul.mubr.f32.vlgmr.msra.gmra.mrb[0].mxu1 %v1377_v1  ;;  %1984 = vmatpush1.bf16.msra.mxu0 %v1983_v13 }
 0x2d6   : > { %1567 = vmatprep.mubr.f32.mxu1 %v1381_v15 }
 0x2d8   : > { %1899 = vmatmul.mubr.msk.f32.vlgmr.msra.gmra.mrb[0].mxu0 %vm1122_vm3, %v1379_v19  ;;  %v1468_v32 = vpop.permute.xlu0 %1467 }
 0x2d9   : > { %1568 = vmatmul.mubr.f32.gmra.mrb[2].mxu1 %v1380_v22  ;;  %1656 = vmatprep.mubr.f32.mxu0 %v3696_v43 }
 0x2da   : > { %1573 = vmatprep.mubr.f32.mxu1 %v1384_v25 }
 0x2dc   : > { %1900 = vmatmul.mubr.msk.f32.gmra.mrb[2].mxu0 %vm1122_vm3, %v1382_v26  ;;  %v1478_v62 = vpop.permute.xlu0 %1477 }
 0x2dd   : > { %1574 = vmatmul.mubr.f32.gmra.mrb[4].mxu1 %v1383_v55  ;;  %1662 = vmatprep.mubr.f32.mxu0 %v3696_v43 }
 0x2de   : > { %1579 = vmatprep.mubr.f32.mxu1 %v1387_v14 }
 0x2e0   : > { %1901 = vmatmul.mubr.msk.f32.gmra.mrb[4].mxu0 %vm1122_vm3, %v1385_v28  ;;  %v1473_v41 = vpop.permute.xlu1 %1472 }
 0x2e1   : > { %1580 = vmatmul.mubr.f32.gmra.mrb[6].mxu1 %v1386_v30  ;;  %1668 = vmatprep.mubr.f32.mxu0 %v3696_v43 }
 0x2e4   : > { %1902 = vmatmul.mubr.msk.f32.gmra.mrb[6].mxu0 %vm1122_vm3, %v1388_v31  ;;  %v1483_v37 = vpop.permute.xlu1 %1482 }
 0x3a8   : > { %v1563_v10 = vpop.f32.mrb[0].mxu1 }
 0x3a9   : > { %v1564_v33 = vadd.f32 %v1563_v10, %v1468_v32  ;;  %v1565_v36 = vpop.f32.mrb[1].mxu1 }
 0x3aa   : > { %v1566_v40 = vadd.f32 %v1565_v36, %v1468_v32 }
 0x3ab   : > { %v1652_v20 = vpop.f32.mrb[0].mxu0 }
 0x3ac   : > { %v1653_v42 = vadd.f32 %v1652_v20, %v1564_v33  ;;  %v1569_v46 = vpop.f32.mrb[2].mxu1  ;;  %v1654_v49 = vpop.f32.mrb[1].mxu0 }
 0x3ad   : > { %v1570_v45 = vadd.f32 %v1569_v46, %v1473_v41  ;;  %v1655_v35 = vadd.f32 %v1654_v49, %v1566_v40  ;;  %v1571_v53 = vpop.f32.mrb[3].mxu1 }
 0x3ae   : > { %v1675_v21 = vmax.f32 %v1653_v42, 0.0  ;;  %v1572_v54 = vadd.f32 %v1571_v53, %v1473_v41 }
 0x3af   : > { %v1676_v51 = vmax.f32 %v1655_v35, 0.0  ;;  %v1658_v63 = vpop.f32.mrb[2].mxu0 }
 0x3b0   : > { %1683 = vst [vmem:[%s3571_s19] sm:$0xff] %v1675_v21  ;;  %v1659_v50 = vadd.f32 %v1658_v63, %v1570_v45  ;;  %v1575_v24 = vpop.f32.mrb[4].mxu1  ;;  %v1660_v16 = vpop.f32.mrb[3].mxu0 }
 0x3b1   : > { %1684 = vst [vmem:[%s3571_s19 + $0x8] sm:$0xff] %v1676_v51  ;;  %v1576_v18 = vadd.f32 %v1575_v24, %v1478_v62  ;;  %v1661_v0 = vadd.f32 %v1660_v16, %v1572_v54  ;;  %v1577_v3 = vpop.f32.mrb[5].mxu1 }
 0x3b2   : > { %v1677_v34 = vmax.f32 %v1659_v50, 0.0  ;;  %v1578_v6 = vadd.f32 %v1577_v3, %v1478_v62 }
 0x3b3   : > { %v1678_v44 = vmax.f32 %v1661_v0, 0.0  ;;  %v1664_v2 = vpop.f32.mrb[4].mxu0 }
 0x3b4   : > { %1685 = vst [vmem:[%s3571_s19 + $0x10] sm:$0xff] %v1677_v34  ;;  %v1665_v4 = vadd.f32 %v1664_v2, %v1576_v18  ;;  %v1581_v47 = vpop.f32.mrb[6].mxu1  ;;  %v1666_v11 = vpop.f32.mrb[5].mxu0 }
 0x3b5   : > { %1686 = vst [vmem:[%s3571_s19 + $0x18] sm:$0xff] %v1678_v44  ;;  %v1582_v17 = vadd.f32 %v1581_v47, %v1483_v37  ;;  %v1667_v59 = vadd.f32 %v1666_v11, %v1578_v6  ;;  %v1583_v23 = vpop.f32.mrb[7].mxu1 }
 0x3b6   : > { %v1679_v39 = vmax.f32 %v1665_v4, 0.0  ;;  %v1584_v48 = vadd.f32 %v1583_v23, %v1483_v37 }
 0x3b7   : > { %v1680_v38 = vmax.f32 %v1667_v59, 0.0  ;;  %v1670_v29 = vpop.f32.mrb[6].mxu0 }
 0x3b8   : > { %1687 = vst [vmem:[%s3571_s19 + $0x20] sm:$0xff] %v1679_v39  ;;  %v1671_v57 = vadd.f32 %v1670_v29, %v1582_v17  ;;  %v1672_v56 = vpop.f32.mrb[7].mxu0 }
 0x3b9   : > { %1688 = vst [vmem:[%s3571_s19 + $0x28] sm:$0xff] %v1680_v38  ;;  %v1673_v8 = vadd.f32 %v1672_v56, %v1584_v48 }
 0x3ba   : > { %v1681_v27 = vmax.f32 %v1671_v57, 0.0 }
 0x3bb   : > { %v1682_v7 = vmax.f32 %v1673_v8, 0.0 }
 0x3bc   : > { %1689 = vst [vmem:[%s3571_s19 + $0x30] sm:$0xff] %v1681_v27 }
 0x3bd   : > { %1690 = vst [vmem:[%s3571_s19 + $0x38] sm:$0xff] %v1682_v7 }
 0x3be   : > { %2573 = shalt.err (!%p2570_p8)
}
 0x3bf   : > { %s2574_s26 = scalar_lea.hbm %s3586_s18, 1024  ;;  %s2578_s14 = scalar_lea.hbm %s3697_s16, 2048 }
 0x3c0   : > { %p2575_p3 = scmp.ne.s32.totalorder %s3586_s18, %s2574_s26  ;;  %p2579_p6 = scmp.lt.u32.totalorder %s3586_s18, %s3697_s16 }
 0x3c1   : > { %p2580_p7 = scmp.lt.u32.totalorder %s2578_s14, %s2574_s26  ;;  %p2582_p10 = scmp.lt.u32.totalorder %s2574_s26, %s3586_s18 }
 0x3c2   : > { %p2576_p11 = pnand %p2575_p3, %p3698_p2 }
 0x3c3   : > { %p2581_p9 = por %p2580_p7, %p2579_p6 }
 0x3c4   : > { %p2577_p13 = pneg %p2576_p11 }
 0x3c5   : > { %p2583_p1 = por %p2582_p10, %p2581_p9 }
 0x3c7   : > { %p2584_p5 = pnand %p2583_p1, %p2577_p13 }
 0x3c9   : > { %2587 = shalt.err (!%p2584_p5)
}
 0x3ca   : > { %s2672_s30 = smov 256  }
 0x3cb   : > { %2021 = dma.vmem_to_hbm [thread:$0]  (%p3698_p2), %s3581_s15, 1024, %s3586_s18, %s1692_s12, %s2672_s30, %s2672_s30, %s2659_s8  }
 0x3cc PF: > { %s3699_s10 = sld [smem:[#allocation23_spill]]  ;;  %s3700_s22 = sld [smem:[#allocation27_spill]] }
 0x3cd   : > { %p3702_p12 = scmp.ge.s32.totalorder %s2642_s27, 2 }
 0x3d2   : > { %s1720_s29 = sand.u32 1, %s3699_s10   ;;  %p3701_p4 = scmp.ne.s32.totalorder %s3700_s22, 0 }
 0x3d3   : > { %s1721_s19 = scalar_lea.sflag [#allocation6], %s1720_s29 }
 0x3d4   : > { %p2047_p0 = pnand %p3702_p12, %p3701_p4 }
 0x3d6   : > { %2625 = dma.done.wait (!%p2047_p0), %s1721_s19, 1024  }
 0x3d7   : > { %2627 = vsyncadd (!%p2047_p0), %s1721_s19, 4294966272  ;;  %s3703_s27 = sld [smem:[#allocation25_spill]]  ;;  %s3704_s13 = sld [smem:[#allocation24_spill]] }
 0x3d8   : > { %s3705_s26 = sld [smem:[#allocation26_spill]]  ;;  %s3706_s24 = smov %s2634_s25 }
 0x3dd   : > { %p27_p8 = scmp.ge.s32.totalorder %s3703_s27, 4   ;;  %s3707_s25 = smov %s3704_s13 }
 0x3df   :  { %29 = sbr.rel (!%p27_p8) target bundleno = 15 (0xf), region = 143 }
 0x3e6   :  { %1726 = vsyncpa [#allocation5], 1 }
 0x3e7   :  { %1728 = vsyncpa [#allocation5 + $0x1], 1 }
 0x3e8   :  { %1729 = vsyncpa [#allocation8], 1 }
 0x3e9   :  { %1731 = vsyncpa [#allocation8 + $0x1], 1 }
 0x3ea   :  { %1732 = vsyncpa [#allocation11], 1 }
 0x3eb   :  { %1734 = vsyncpa [#allocation11 + $0x1], 1 }
 0x3ec   :  { %1735 = vsyncpa [#allocation14], 1 }
 0x3ed   :  { %1736 = vsyncpa [#allocation6], 1 }
 0x3ee   :  { %1738 = vsyncpa [#allocation6 + $0x1], 1 }

</bundles_post_ra>
